<compile_context>
chip_gen: v6e
topology: v6e:2x2x1
jax: 0.10.0
libtpu: 0.0.40
codegen_flags: <defaults>
</compile_context>

<pallas_src>
import numpy as np

import jax
import jax.numpy as jnp
from jax import lax
from jax.experimental import pallas as pl
from jax.experimental.pallas import tpu as pltpu

NB = 8      # batch rows per grid block (f32 sublane tile = 8)
IMG = 28    # input spatial size implied by fc1's 3*3*2F input dimension


def _build_dup_matrix():
    """One-hot (324, 169) matrix mapping conv1's 13x13 output grid onto the
    kernel's (conv2-tap, pool-quadrant, pooled-position) row ordering.

    Row p = (t*4 + quad)*9 + s picks conv1 position (i1, j1) with
      t = kh2*3 + kw2, quad = si*2 + sj, s = pi*3 + pj,
      i1 = 2*(2*pi + si) + kh2, j1 = 2*(2*pj + sj) + kw2.
    """
    sel = np.zeros((324, 13 * 13), dtype=np.float32)
    p = 0
    for t in range(9):
        kh2, kw2 = divmod(t, 3)
        for quad in range(4):
            si, sj = divmod(quad, 2)
            for s in range(9):
                pi, pj = divmod(s, 3)
                i1 = 2 * (2 * pi + si) + kh2
                j1 = 2 * (2 * pj + sj) + kw2
                sel[p, i1 * 13 + j1] = 1.0
                p += 1
    return sel


_DUP = _build_dup_matrix()


# ---------------------------------------------------------------------------
# The fused forward kernel
# ---------------------------------------------------------------------------
def _net_fwd_kernel(p1_ref, w1_ref, w2_ref, wfc1_ref, wfc2_ref,
                    b1_ref, b2_ref, bfc1_ref, bfc2_ref, o_ref):
    f = w1_ref.shape[1]                   # feature_factor
    rows_all = p1_ref.shape[1]            # 9 conv2-taps * 4 quads * 9 pos * NB
    rows = rows_all // 9                  # conv2-output rows per tap
    quad = rows // 4                      # rows per pooling quadrant
    nb = quad // 9                        # batch rows in this block

    p1 = p1_ref[0]                        # (rows_all, 9)   bf16 patches
    w1 = w1_ref[...]                      # (9, f)          bf16
    w2 = w2_ref[...]                      # (9, f, 2f)      bf16
    wfc1 = wfc1_ref[...]                  # (9, 2f, 4f)     bf16

    # conv1 (+bias, ReLU): all (conv2-tap x conv2-position) patches in one dot.
    z1 = jnp.dot(p1, w1, preferred_element_type=jnp.float32)
    z1 = jnp.maximum(z1 + b1_ref[...], 0.0).astype(jnp.bfloat16)   # (rows_all, f)

    # conv2 (+bias, ReLU): accumulate its 9 taps from aligned row blocks of z1.
    acc2 = jnp.broadcast_to(b2_ref[...], (rows, 2 * f))
    for t in range(9):
        acc2 = acc2 + jnp.dot(z1[t * rows:(t + 1) * rows], w2[t],
                              preferred_element_type=jnp.float32)
    z2 = jnp.maximum(acc2, 0.0)                                    # (rows, 2f)

    # 2x2 max-pool folded into the epilogue: rows are ordered
    # (quadrant, pooled position, batch), so pooling is a max of 4 row blocks.
    pooled = jnp.maximum(jnp.maximum(z2[:quad], z2[quad:2 * quad]),
                         jnp.maximum(z2[2 * quad:3 * quad], z2[3 * quad:]))

    # fc1 (+bias, ReLU).  Dropout(p=0.25) is identity at inference.  fc1
    # weights were pre-permuted per pooled spatial position, so the NCHW
    # flatten transpose is gone.
    h = jnp.broadcast_to(bfc1_ref[...], (nb, 4 * f))
    for s in range(9):
        blk = pooled[s * nb:(s + 1) * nb].astype(jnp.bfloat16)     # (nb, 2f)
        h = h + jnp.dot(blk, wfc1[s], preferred_element_type=jnp.float32)
    h = jnp.maximum(h, 0.0).astype(jnp.bfloat16)                   # (nb, 4f)

    # fc2 (+bias) fused with log_softmax.  Dropout(p=0.5) identity at inference.
    logits = jnp.dot(h, wfc2_ref[...], preferred_element_type=jnp.float32)
    logits = logits + bfc2_ref[...]                                # (nb, 10)
    m = jnp.max(logits, axis=-1, keepdims=True)
    z = logits - m
    lse = jnp.log(jnp.sum(jnp.exp(z), axis=-1, keepdims=True))
    o_ref[...] = z - lse


# ---------------------------------------------------------------------------
# Parameter preparation (init-time, outside jit) and wrapper
# ---------------------------------------------------------------------------
def prepare_params(p):
    """Permute PyTorch-layout parameters into the kernel's matmul layouts."""
    f = p["conv1_w"].shape[0]
    return {
        # conv1: (F,1,3,3) -> (9, F), row = kh1*3+kw1
        "w1": p["conv1_w"].reshape(f, 9).T.astype(jnp.bfloat16),
        # conv2: (2F,F,3,3) -> (9, F, 2F), leading = kh2*3+kw2
        "w2": p["conv2_w"].transpose(2, 3, 1, 0).reshape(9, f, 2 * f)
                           .astype(jnp.bfloat16),
        # fc1: (4F, 2F*9) -> (9, 2F, 4F), leading = pooled spatial position
        "wfc1": p["fc1_w"].reshape(4 * f, 2 * f, 9).transpose(2, 1, 0)
                           .astype(jnp.bfloat16),
        # fc2: (10, 4F) -> (4F, 10)
        "wfc2": p["fc2_w"].T.astype(jnp.bfloat16),
        "b1": p["conv1_b"].reshape(1, -1).astype(jnp.float32),
        "b2": p["conv2_b"].reshape(1, -1).astype(jnp.float32),
        "bfc1": p["fc1_b"].reshape(1, -1).astype(jnp.float32),
        "bfc2": p["fc2_b"].reshape(1, -1).astype(jnp.float32),
    }


def net_forward(kp, x_nchw):
    """Forward pass of Net. x_nchw: (N, 1, 28, 28) float32 (PyTorch layout)."""
    n = x_nchw.shape[0]
    f = kp["w1"].shape[1]
    b8 = -(-n // NB)                      # number of batch blocks (grid size)
    npad = b8 * NB
    rows_all = 324 * NB                   # 9 taps * 4 quads * 9 pos * NB

    # ---- XLA front-end: fused im2col for conv1/conv2/pool (all vectorized,
    # no gathers).  TODO(synk): move into the kernel once in-kernel stride-2
    # spatial slicing is cheap in Mosaic.
    x = x_nchw.reshape(n, IMG, IMG)
    x = jnp.pad(x, ((0, npad - n), (0, 0), (0, 0)))
    taps = [x[:, kh:kh + 26:2, kw:kw + 26:2]
            for kh in range(3) for kw in range(3)]
    cols1 = jnp.stack(taps, axis=-1).reshape(npad, 13 * 13, 9)     # (npad,169,9)
    dup = jnp.tensordot(jnp.asarray(_DUP), cols1, axes=[[1], [1]])  # (324,npad,9)
    p1 = dup.reshape(324, b8, NB, 9).transpose(1, 0, 2, 3)
    p1 = p1.reshape(b8, rows_all, 9).astype(jnp.bfloat16)

    out = pl.pallas_call(
        _net_fwd_kernel,
        out_shape=jax.ShapeDtypeStruct((npad, 10), jnp.float32),
        grid=(b8,),
        in_specs=[
            pl.BlockSpec((1, rows_all, 9), lambda b: (b, 0, 0)),
            pl.BlockSpec((9, f), lambda b: (0, 0)),
            pl.BlockSpec((9, f, 2 * f), lambda b: (0, 0, 0)),
            pl.BlockSpec((9, 2 * f, 4 * f), lambda b: (0, 0, 0)),
            pl.BlockSpec((4 * f, 10), lambda b: (0, 0)),
            pl.BlockSpec((1, f), lambda b: (0, 0)),
            pl.BlockSpec((1, 2 * f), lambda b: (0, 0)),
            pl.BlockSpec((1, 4 * f), lambda b: (0, 0)),
            pl.BlockSpec((1, 10), lambda b: (0, 0)),
        ],
        out_specs=pl.BlockSpec((NB, 10), lambda b: (b, 0)),
        compiler_params=pltpu.CompilerParams(
            dimension_semantics=("parallel",)),   # batch blocks -> v7x 2 TCs
    )(p1, kp["w1"], kp["w2"], kp["wfc1"], kp["wfc2"],
      kp["b1"], kp["b2"], kp["bfc1"], kp["bfc2"])
    return out[:n]


# ---------------------------------------------------------------------------
# Pure-XLA f32 reference (for a correctness cross-check)
# ---------------------------------------------------------------------------
def _reference_forward(p, x):
    dn = ("NCHW", "OIHW", "NCHW")
    y = lax.conv_general_dilated(x, p["conv1_w"], (2, 2), "VALID",
                                 dimension_numbers=dn)
    y = jax.nn.relu(y + p["conv1_b"][None, :, None, None])
    y = lax.conv_general_dilated(y, p["conv2_w"], (2, 2), "VALID",
                                 dimension_numbers=dn)
    y = jax.nn.relu(y + p["conv2_b"][None, :, None, None])
    n, c, h, w = y.shape
    y = y.reshape(n, c, h // 2, 2, w // 2, 2).max(axis=(3, 5))
    y = y.reshape(n, -1)
    y = jax.nn.relu(y @ p["fc1_w"].T + p["fc1_b"])
    y = y @ p["fc2_w"].T + p["fc2_b"]
    return jax.nn.log_softmax(y, axis=-1)


# ---------------------------------------------------------------------------
if __name__ == "__main__":
    feature_factor = 4
    F = feature_factor

    key = jax.random.PRNGKey(0)
    keys = jax.random.split(key, 9)

    def u(k, shape, fan_in):
        bound = 1.0 / (fan_in ** 0.5)
        return jax.random.uniform(k, shape, jnp.float32, -bound, bound)

    # Parameters in PyTorch layouts (as nn.Conv2d / nn.Linear store them).
    params = {
        "conv1_w": u(keys[0], (F, 1, 3, 3), 9),
        "conv1_b": u(keys[1], (F,), 9),
        "conv2_w": u(keys[2], (2 * F, F, 3, 3), 9 * F),
        "conv2_b": u(keys[3], (2 * F,), 9 * F),
        "fc1_w": u(keys[4], (4 * F, 3 * 3 * 2 * F), 3 * 3 * 2 * F),
        "fc1_b": u(keys[5], (4 * F,), 3 * 3 * 2 * F),
        "fc2_w": u(keys[6], (10, 4 * F), 4 * F),
        "fc2_b": u(keys[7], (10,), 4 * F),
    }
    # 28x28 input is required so that fc1's 3*3*2F input dimension matches.
    x = jax.random.normal(keys[8], (2, 1, 28, 28), jnp.float32)

    kparams = prepare_params(params)          # init-time weight permutation
    out = jax.jit(net_forward)(kparams, x)
    out = jax.block_until_ready(out)

    assert out.shape == (2, 10), out.shape
    assert out.dtype == jnp.float32
    # log_softmax rows exponentiate-sum to 1 (exact, independent of bf16)
    assert jnp.allclose(jnp.exp(out).sum(axis=1), 1.0, atol=1e-4)

    # Cross-check against the pure-XLA f32 reference (bf16 MXU -> loose tol).
    ref = _reference_forward(params, x)
    max_err = float(jnp.max(jnp.abs(out - ref)))
    assert max_err < 5e-2, max_err

    print("KERNEL_OK")
</pallas_src>

<mosaic_0001>
module attributes {stable_mosaic.version = 11 : i64} {
  func.func @_net_fwd_kernel(%arg0: i32, %arg1: memref<1x2592x9xbf16, #tpu.memory_space<vmem>>, %arg2: memref<9x4xbf16, #tpu.memory_space<vmem>>, %arg3: memref<9x4x8xbf16, #tpu.memory_space<vmem>>, %arg4: memref<9x8x16xbf16, #tpu.memory_space<vmem>>, %arg5: memref<16x10xbf16, #tpu.memory_space<vmem>>, %arg6: memref<1x4xf32, #tpu.memory_space<vmem>>, %arg7: memref<1x8xf32, #tpu.memory_space<vmem>>, %arg8: memref<1x16xf32, #tpu.memory_space<vmem>>, %arg9: memref<1x10xf32, #tpu.memory_space<vmem>>, %arg10: memref<8x10xf32, #tpu.memory_space<vmem>>) attributes {dimension_semantics = [#tpu.dimension_semantics<parallel>], iteration_bounds = array<i64: 1>, scalar_prefetch = 0 : i64, scratch_operands = 0 : i64, tpu.core_type = #tpu.core_type<tc>, window_params = [{transform_indices = @transform_0, window_bounds = array<i64: 1, 2592, 9>}, {pipeline_mode = #tpu.pipeline_mode<synchronous>, transform_indices = @transform_1, window_bounds = array<i64: 9, 4>}, {pipeline_mode = #tpu.pipeline_mode<synchronous>, transform_indices = @transform_2, window_bounds = array<i64: 9, 4, 8>}, {pipeline_mode = #tpu.pipeline_mode<synchronous>, transform_indices = @transform_3, window_bounds = array<i64: 9, 8, 16>}, {pipeline_mode = #tpu.pipeline_mode<synchronous>, transform_indices = @transform_4, window_bounds = array<i64: 16, 10>}, {pipeline_mode = #tpu.pipeline_mode<synchronous>, transform_indices = @transform_5, window_bounds = array<i64: 1, 4>}, {pipeline_mode = #tpu.pipeline_mode<synchronous>, transform_indices = @transform_6, window_bounds = array<i64: 1, 8>}, {pipeline_mode = #tpu.pipeline_mode<synchronous>, transform_indices = @transform_7, window_bounds = array<i64: 1, 16>}, {pipeline_mode = #tpu.pipeline_mode<synchronous>, transform_indices = @transform_8, window_bounds = array<i64: 1, 10>}, {transform_indices = @transform_9, window_bounds = array<i64: 8, 10>}]} {
    %c0 = arith.constant 0 : index
    %c0_0 = arith.constant 0 : index
    %c0_1 = arith.constant 0 : index
    %0 = vector.load %arg1[%c0, %c0_0, %c0_1] : memref<1x2592x9xbf16, #tpu.memory_space<vmem>>, vector<1x2592x9xbf16>
    %1 = vector.shape_cast %0 : vector<1x2592x9xbf16> to vector<2592x9xbf16>
    %c0_2 = arith.constant 0 : index
    %c0_3 = arith.constant 0 : index
    %2 = vector.load %arg2[%c0_2, %c0_3] : memref<9x4xbf16, #tpu.memory_space<vmem>>, vector<9x4xbf16>
    %c0_4 = arith.constant 0 : index
    %c0_5 = arith.constant 0 : index
    %c0_6 = arith.constant 0 : index
    %3 = vector.load %arg3[%c0_4, %c0_5, %c0_6] : memref<9x4x8xbf16, #tpu.memory_space<vmem>>, vector<9x4x8xbf16>
    %c0_7 = arith.constant 0 : index
    %c0_8 = arith.constant 0 : index
    %c0_9 = arith.constant 0 : index
    %4 = vector.load %arg4[%c0_7, %c0_8, %c0_9] : memref<9x8x16xbf16, #tpu.memory_space<vmem>>, vector<9x8x16xbf16>
    %cst = arith.constant dense<0.000000e+00> : vector<2592x4xf32>
    %5 = tpu.matmul %1, %2, %cst {dimension_numbers = #tpu.dot_dimension_numbers<[1], [0], [0], [1], [0, 0, 1, 1], [], []>} : vector<2592x9xbf16>, vector<9x4xbf16>, vector<2592x4xf32> -> vector<2592x4xf32>
    %c0_10 = arith.constant 0 : index
    %c0_11 = arith.constant 0 : index
    %6 = vector.load %arg6[%c0_10, %c0_11] : memref<1x4xf32, #tpu.memory_space<vmem>>, vector<1x4xf32>
    %7 = vector.broadcast %6 : vector<1x4xf32> to vector<2592x4xf32>
    %8 = arith.addf %5, %7 : vector<2592x4xf32>
    %cst_12 = arith.constant 0.000000e+00 : f32
    %9 = vector.broadcast %cst_12 : f32 to vector<2592x4xf32>
    %10 = arith.maximumf %8, %9 : vector<2592x4xf32>
    %11 = arith.truncf %10 : vector<2592x4xf32> to vector<2592x4xbf16>
    %c0_13 = arith.constant 0 : index
    %c0_14 = arith.constant 0 : index
    %12 = vector.load %arg7[%c0_13, %c0_14] : memref<1x8xf32, #tpu.memory_space<vmem>>, vector<1x8xf32>
    %13 = vector.shape_cast %12 : vector<1x8xf32> to vector<1x8xf32>
    %14 = vector.broadcast %13 : vector<1x8xf32> to vector<288x8xf32>
    %15 = vector.extract_strided_slice %11 {offsets = [0, 0], sizes = [288, 4], strides = [1, 1]} : vector<2592x4xbf16> to vector<288x4xbf16>
    %16 = vector.extract_strided_slice %3 {offsets = [0, 0, 0], sizes = [1, 4, 8], strides = [1, 1, 1]} : vector<9x4x8xbf16> to vector<1x4x8xbf16>
    %17 = vector.shape_cast %16 : vector<1x4x8xbf16> to vector<4x8xbf16>
    %cst_15 = arith.constant dense<0.000000e+00> : vector<288x8xf32>
    %18 = tpu.matmul %15, %17, %cst_15 {dimension_numbers = #tpu.dot_dimension_numbers<[1], [0], [0], [1], [0, 0, 1, 1], [], []>} : vector<288x4xbf16>, vector<4x8xbf16>, vector<288x8xf32> -> vector<288x8xf32>
    %19 = arith.addf %14, %18 : vector<288x8xf32>
    %20 = vector.extract_strided_slice %11 {offsets = [288, 0], sizes = [288, 4], strides = [1, 1]} : vector<2592x4xbf16> to vector<288x4xbf16>
    %21 = vector.extract_strided_slice %3 {offsets = [1, 0, 0], sizes = [1, 4, 8], strides = [1, 1, 1]} : vector<9x4x8xbf16> to vector<1x4x8xbf16>
    %22 = vector.shape_cast %21 : vector<1x4x8xbf16> to vector<4x8xbf16>
    %cst_16 = arith.constant dense<0.000000e+00> : vector<288x8xf32>
    %23 = tpu.matmul %20, %22, %cst_16 {dimension_numbers = #tpu.dot_dimension_numbers<[1], [0], [0], [1], [0, 0, 1, 1], [], []>} : vector<288x4xbf16>, vector<4x8xbf16>, vector<288x8xf32> -> vector<288x8xf32>
    %24 = arith.addf %19, %23 : vector<288x8xf32>
    %25 = vector.extract_strided_slice %11 {offsets = [576, 0], sizes = [288, 4], strides = [1, 1]} : vector<2592x4xbf16> to vector<288x4xbf16>
    %26 = vector.extract_strided_slice %3 {offsets = [2, 0, 0], sizes = [1, 4, 8], strides = [1, 1, 1]} : vector<9x4x8xbf16> to vector<1x4x8xbf16>
    %27 = vector.shape_cast %26 : vector<1x4x8xbf16> to vector<4x8xbf16>
    %cst_17 = arith.constant dense<0.000000e+00> : vector<288x8xf32>
    %28 = tpu.matmul %25, %27, %cst_17 {dimension_numbers = #tpu.dot_dimension_numbers<[1], [0], [0], [1], [0, 0, 1, 1], [], []>} : vector<288x4xbf16>, vector<4x8xbf16>, vector<288x8xf32> -> vector<288x8xf32>
    %29 = arith.addf %24, %28 : vector<288x8xf32>
    %30 = vector.extract_strided_slice %11 {offsets = [864, 0], sizes = [288, 4], strides = [1, 1]} : vector<2592x4xbf16> to vector<288x4xbf16>
    %31 = vector.extract_strided_slice %3 {offsets = [3, 0, 0], sizes = [1, 4, 8], strides = [1, 1, 1]} : vector<9x4x8xbf16> to vector<1x4x8xbf16>
    %32 = vector.shape_cast %31 : vector<1x4x8xbf16> to vector<4x8xbf16>
    %cst_18 = arith.constant dense<0.000000e+00> : vector<288x8xf32>
    %33 = tpu.matmul %30, %32, %cst_18 {dimension_numbers = #tpu.dot_dimension_numbers<[1], [0], [0], [1], [0, 0, 1, 1], [], []>} : vector<288x4xbf16>, vector<4x8xbf16>, vector<288x8xf32> -> vector<288x8xf32>
    %34 = arith.addf %29, %33 : vector<288x8xf32>
    %35 = vector.extract_strided_slice %11 {offsets = [1152, 0], sizes = [288, 4], strides = [1, 1]} : vector<2592x4xbf16> to vector<288x4xbf16>
    %36 = vector.extract_strided_slice %3 {offsets = [4, 0, 0], sizes = [1, 4, 8], strides = [1, 1, 1]} : vector<9x4x8xbf16> to vector<1x4x8xbf16>
    %37 = vector.shape_cast %36 : vector<1x4x8xbf16> to vector<4x8xbf16>
    %cst_19 = arith.constant dense<0.000000e+00> : vector<288x8xf32>
    %38 = tpu.matmul %35, %37, %cst_19 {dimension_numbers = #tpu.dot_dimension_numbers<[1], [0], [0], [1], [0, 0, 1, 1], [], []>} : vector<288x4xbf16>, vector<4x8xbf16>, vector<288x8xf32> -> vector<288x8xf32>
    %39 = arith.addf %34, %38 : vector<288x8xf32>
    %40 = vector.extract_strided_slice %11 {offsets = [1440, 0], sizes = [288, 4], strides = [1, 1]} : vector<2592x4xbf16> to vector<288x4xbf16>
    %41 = vector.extract_strided_slice %3 {offsets = [5, 0, 0], sizes = [1, 4, 8], strides = [1, 1, 1]} : vector<9x4x8xbf16> to vector<1x4x8xbf16>
    %42 = vector.shape_cast %41 : vector<1x4x8xbf16> to vector<4x8xbf16>
    %cst_20 = arith.constant dense<0.000000e+00> : vector<288x8xf32>
    %43 = tpu.matmul %40, %42, %cst_20 {dimension_numbers = #tpu.dot_dimension_numbers<[1], [0], [0], [1], [0, 0, 1, 1], [], []>} : vector<288x4xbf16>, vector<4x8xbf16>, vector<288x8xf32> -> vector<288x8xf32>
    %44 = arith.addf %39, %43 : vector<288x8xf32>
    %45 = vector.extract_strided_slice %11 {offsets = [1728, 0], sizes = [288, 4], strides = [1, 1]} : vector<2592x4xbf16> to vector<288x4xbf16>
    %46 = vector.extract_strided_slice %3 {offsets = [6, 0, 0], sizes = [1, 4, 8], strides = [1, 1, 1]} : vector<9x4x8xbf16> to vector<1x4x8xbf16>
    %47 = vector.shape_cast %46 : vector<1x4x8xbf16> to vector<4x8xbf16>
    %cst_21 = arith.constant dense<0.000000e+00> : vector<288x8xf32>
    %48 = tpu.matmul %45, %47, %cst_21 {dimension_numbers = #tpu.dot_dimension_numbers<[1], [0], [0], [1], [0, 0, 1, 1], [], []>} : vector<288x4xbf16>, vector<4x8xbf16>, vector<288x8xf32> -> vector<288x8xf32>
    %49 = arith.addf %44, %48 : vector<288x8xf32>
    %50 = vector.extract_strided_slice %11 {offsets = [2016, 0], sizes = [288, 4], strides = [1, 1]} : vector<2592x4xbf16> to vector<288x4xbf16>
    %51 = vector.extract_strided_slice %3 {offsets = [7, 0, 0], sizes = [1, 4, 8], strides = [1, 1, 1]} : vector<9x4x8xbf16> to vector<1x4x8xbf16>
    %52 = vector.shape_cast %51 : vector<1x4x8xbf16> to vector<4x8xbf16>
    %cst_22 = arith.constant dense<0.000000e+00> : vector<288x8xf32>
    %53 = tpu.matmul %50, %52, %cst_22 {dimension_numbers = #tpu.dot_dimension_numbers<[1], [0], [0], [1], [0, 0, 1, 1], [], []>} : vector<288x4xbf16>, vector<4x8xbf16>, vector<288x8xf32> -> vector<288x8xf32>
    %54 = arith.addf %49, %53 : vector<288x8xf32>
    %55 = vector.extract_strided_slice %11 {offsets = [2304, 0], sizes = [288, 4], strides = [1, 1]} : vector<2592x4xbf16> to vector<288x4xbf16>
    %56 = vector.extract_strided_slice %3 {offsets = [8, 0, 0], sizes = [1, 4, 8], strides = [1, 1, 1]} : vector<9x4x8xbf16> to vector<1x4x8xbf16>
    %57 = vector.shape_cast %56 : vector<1x4x8xbf16> to vector<4x8xbf16>
    %cst_23 = arith.constant dense<0.000000e+00> : vector<288x8xf32>
    %58 = tpu.matmul %55, %57, %cst_23 {dimension_numbers = #tpu.dot_dimension_numbers<[1], [0], [0], [1], [0, 0, 1, 1], [], []>} : vector<288x4xbf16>, vector<4x8xbf16>, vector<288x8xf32> -> vector<288x8xf32>
    %59 = arith.addf %54, %58 : vector<288x8xf32>
    %cst_24 = arith.constant 0.000000e+00 : f32
    %60 = vector.broadcast %cst_24 : f32 to vector<288x8xf32>
    %61 = arith.maximumf %59, %60 : vector<288x8xf32>
    %62 = vector.extract_strided_slice %61 {offsets = [0, 0], sizes = [72, 8], strides = [1, 1]} : vector<288x8xf32> to vector<72x8xf32>
    %63 = vector.extract_strided_slice %61 {offsets = [72, 0], sizes = [72, 8], strides = [1, 1]} : vector<288x8xf32> to vector<72x8xf32>
    %64 = arith.maximumf %62, %63 : vector<72x8xf32>
    %65 = vector.extract_strided_slice %61 {offsets = [144, 0], sizes = [72, 8], strides = [1, 1]} : vector<288x8xf32> to vector<72x8xf32>
    %66 = vector.extract_strided_slice %61 {offsets = [216, 0], sizes = [72, 8], strides = [1, 1]} : vector<288x8xf32> to vector<72x8xf32>
    %67 = arith.maximumf %65, %66 : vector<72x8xf32>
    %68 = arith.maximumf %64, %67 : vector<72x8xf32>
    %c0_25 = arith.constant 0 : index
    %c0_26 = arith.constant 0 : index
    %69 = vector.load %arg8[%c0_25, %c0_26] : memref<1x16xf32, #tpu.memory_space<vmem>>, vector<1x16xf32>
    %70 = vector.shape_cast %69 : vector<1x16xf32> to vector<1x16xf32>
    %71 = vector.broadcast %70 : vector<1x16xf32> to vector<8x16xf32>
    %72 = vector.extract_strided_slice %68 {offsets = [0, 0], sizes = [8, 8], strides = [1, 1]} : vector<72x8xf32> to vector<8x8xf32>
    %73 = arith.truncf %72 : vector<8x8xf32> to vector<8x8xbf16>
    %74 = vector.extract_strided_slice %4 {offsets = [0, 0, 0], sizes = [1, 8, 16], strides = [1, 1, 1]} : vector<9x8x16xbf16> to vector<1x8x16xbf16>
    %75 = vector.shape_cast %74 : vector<1x8x16xbf16> to vector<8x16xbf16>
    %cst_27 = arith.constant dense<0.000000e+00> : vector<8x16xf32>
    %76 = tpu.matmul %73, %75, %cst_27 {dimension_numbers = #tpu.dot_dimension_numbers<[1], [0], [0], [1], [0, 0, 1, 1], [], []>} : vector<8x8xbf16>, vector<8x16xbf16>, vector<8x16xf32> -> vector<8x16xf32>
    %77 = arith.addf %71, %76 : vector<8x16xf32>
    %78 = vector.extract_strided_slice %68 {offsets = [8, 0], sizes = [8, 8], strides = [1, 1]} : vector<72x8xf32> to vector<8x8xf32>
    %79 = arith.truncf %78 : vector<8x8xf32> to vector<8x8xbf16>
    %80 = vector.extract_strided_slice %4 {offsets = [1, 0, 0], sizes = [1, 8, 16], strides = [1, 1, 1]} : vector<9x8x16xbf16> to vector<1x8x16xbf16>
    %81 = vector.shape_cast %80 : vector<1x8x16xbf16> to vector<8x16xbf16>
    %cst_28 = arith.constant dense<0.000000e+00> : vector<8x16xf32>
    %82 = tpu.matmul %79, %81, %cst_28 {dimension_numbers = #tpu.dot_dimension_numbers<[1], [0], [0], [1], [0, 0, 1, 1], [], []>} : vector<8x8xbf16>, vector<8x16xbf16>, vector<8x16xf32> -> vector<8x16xf32>
    %83 = arith.addf %77, %82 : vector<8x16xf32>
    %84 = vector.extract_strided_slice %68 {offsets = [16, 0], sizes = [8, 8], strides = [1, 1]} : vector<72x8xf32> to vector<8x8xf32>
    %85 = arith.truncf %84 : vector<8x8xf32> to vector<8x8xbf16>
    %86 = vector.extract_strided_slice %4 {offsets = [2, 0, 0], sizes = [1, 8, 16], strides = [1, 1, 1]} : vector<9x8x16xbf16> to vector<1x8x16xbf16>
    %87 = vector.shape_cast %86 : vector<1x8x16xbf16> to vector<8x16xbf16>
    %cst_29 = arith.constant dense<0.000000e+00> : vector<8x16xf32>
    %88 = tpu.matmul %85, %87, %cst_29 {dimension_numbers = #tpu.dot_dimension_numbers<[1], [0], [0], [1], [0, 0, 1, 1], [], []>} : vector<8x8xbf16>, vector<8x16xbf16>, vector<8x16xf32> -> vector<8x16xf32>
    %89 = arith.addf %83, %88 : vector<8x16xf32>
    %90 = vector.extract_strided_slice %68 {offsets = [24, 0], sizes = [8, 8], strides = [1, 1]} : vector<72x8xf32> to vector<8x8xf32>
    %91 = arith.truncf %90 : vector<8x8xf32> to vector<8x8xbf16>
    %92 = vector.extract_strided_slice %4 {offsets = [3, 0, 0], sizes = [1, 8, 16], strides = [1, 1, 1]} : vector<9x8x16xbf16> to vector<1x8x16xbf16>
    %93 = vector.shape_cast %92 : vector<1x8x16xbf16> to vector<8x16xbf16>
    %cst_30 = arith.constant dense<0.000000e+00> : vector<8x16xf32>
    %94 = tpu.matmul %91, %93, %cst_30 {dimension_numbers = #tpu.dot_dimension_numbers<[1], [0], [0], [1], [0, 0, 1, 1], [], []>} : vector<8x8xbf16>, vector<8x16xbf16>, vector<8x16xf32> -> vector<8x16xf32>
    %95 = arith.addf %89, %94 : vector<8x16xf32>
    %96 = vector.extract_strided_slice %68 {offsets = [32, 0], sizes = [8, 8], strides = [1, 1]} : vector<72x8xf32> to vector<8x8xf32>
    %97 = arith.truncf %96 : vector<8x8xf32> to vector<8x8xbf16>
    %98 = vector.extract_strided_slice %4 {offsets = [4, 0, 0], sizes = [1, 8, 16], strides = [1, 1, 1]} : vector<9x8x16xbf16> to vector<1x8x16xbf16>
    %99 = vector.shape_cast %98 : vector<1x8x16xbf16> to vector<8x16xbf16>
    %cst_31 = arith.constant dense<0.000000e+00> : vector<8x16xf32>
    %100 = tpu.matmul %97, %99, %cst_31 {dimension_numbers = #tpu.dot_dimension_numbers<[1], [0], [0], [1], [0, 0, 1, 1], [], []>} : vector<8x8xbf16>, vector<8x16xbf16>, vector<8x16xf32> -> vector<8x16xf32>
    %101 = arith.addf %95, %100 : vector<8x16xf32>
    %102 = vector.extract_strided_slice %68 {offsets = [40, 0], sizes = [8, 8], strides = [1, 1]} : vector<72x8xf32> to vector<8x8xf32>
    %103 = arith.truncf %102 : vector<8x8xf32> to vector<8x8xbf16>
    %104 = vector.extract_strided_slice %4 {offsets = [5, 0, 0], sizes = [1, 8, 16], strides = [1, 1, 1]} : vector<9x8x16xbf16> to vector<1x8x16xbf16>
    %105 = vector.shape_cast %104 : vector<1x8x16xbf16> to vector<8x16xbf16>
    %cst_32 = arith.constant dense<0.000000e+00> : vector<8x16xf32>
    %106 = tpu.matmul %103, %105, %cst_32 {dimension_numbers = #tpu.dot_dimension_numbers<[1], [0], [0], [1], [0, 0, 1, 1], [], []>} : vector<8x8xbf16>, vector<8x16xbf16>, vector<8x16xf32> -> vector<8x16xf32>
    %107 = arith.addf %101, %106 : vector<8x16xf32>
    %108 = vector.extract_strided_slice %68 {offsets = [48, 0], sizes = [8, 8], strides = [1, 1]} : vector<72x8xf32> to vector<8x8xf32>
    %109 = arith.truncf %108 : vector<8x8xf32> to vector<8x8xbf16>
    %110 = vector.extract_strided_slice %4 {offsets = [6, 0, 0], sizes = [1, 8, 16], strides = [1, 1, 1]} : vector<9x8x16xbf16> to vector<1x8x16xbf16>
    %111 = vector.shape_cast %110 : vector<1x8x16xbf16> to vector<8x16xbf16>
    %cst_33 = arith.constant dense<0.000000e+00> : vector<8x16xf32>
    %112 = tpu.matmul %109, %111, %cst_33 {dimension_numbers = #tpu.dot_dimension_numbers<[1], [0], [0], [1], [0, 0, 1, 1], [], []>} : vector<8x8xbf16>, vector<8x16xbf16>, vector<8x16xf32> -> vector<8x16xf32>
    %113 = arith.addf %107, %112 : vector<8x16xf32>
    %114 = vector.extract_strided_slice %68 {offsets = [56, 0], sizes = [8, 8], strides = [1, 1]} : vector<72x8xf32> to vector<8x8xf32>
    %115 = arith.truncf %114 : vector<8x8xf32> to vector<8x8xbf16>
    %116 = vector.extract_strided_slice %4 {offsets = [7, 0, 0], sizes = [1, 8, 16], strides = [1, 1, 1]} : vector<9x8x16xbf16> to vector<1x8x16xbf16>
    %117 = vector.shape_cast %116 : vector<1x8x16xbf16> to vector<8x16xbf16>
    %cst_34 = arith.constant dense<0.000000e+00> : vector<8x16xf32>
    %118 = tpu.matmul %115, %117, %cst_34 {dimension_numbers = #tpu.dot_dimension_numbers<[1], [0], [0], [1], [0, 0, 1, 1], [], []>} : vector<8x8xbf16>, vector<8x16xbf16>, vector<8x16xf32> -> vector<8x16xf32>
    %119 = arith.addf %113, %118 : vector<8x16xf32>
    %120 = vector.extract_strided_slice %68 {offsets = [64, 0], sizes = [8, 8], strides = [1, 1]} : vector<72x8xf32> to vector<8x8xf32>
    %121 = arith.truncf %120 : vector<8x8xf32> to vector<8x8xbf16>
    %122 = vector.extract_strided_slice %4 {offsets = [8, 0, 0], sizes = [1, 8, 16], strides = [1, 1, 1]} : vector<9x8x16xbf16> to vector<1x8x16xbf16>
    %123 = vector.shape_cast %122 : vector<1x8x16xbf16> to vector<8x16xbf16>
    %cst_35 = arith.constant dense<0.000000e+00> : vector<8x16xf32>
    %124 = tpu.matmul %121, %123, %cst_35 {dimension_numbers = #tpu.dot_dimension_numbers<[1], [0], [0], [1], [0, 0, 1, 1], [], []>} : vector<8x8xbf16>, vector<8x16xbf16>, vector<8x16xf32> -> vector<8x16xf32>
    %125 = arith.addf %119, %124 : vector<8x16xf32>
    %cst_36 = arith.constant 0.000000e+00 : f32
    %126 = vector.broadcast %cst_36 : f32 to vector<8x16xf32>
    %127 = arith.maximumf %125, %126 : vector<8x16xf32>
    %128 = arith.truncf %127 : vector<8x16xf32> to vector<8x16xbf16>
    %c0_37 = arith.constant 0 : index
    %c0_38 = arith.constant 0 : index
    %129 = vector.load %arg5[%c0_37, %c0_38] : memref<16x10xbf16, #tpu.memory_space<vmem>>, vector<16x10xbf16>
    %cst_39 = arith.constant dense<0.000000e+00> : vector<8x10xf32>
    %130 = tpu.matmul %128, %129, %cst_39 {dimension_numbers = #tpu.dot_dimension_numbers<[1], [0], [0], [1], [0, 0, 1, 1], [], []>} : vector<8x16xbf16>, vector<16x10xbf16>, vector<8x10xf32> -> vector<8x10xf32>
    %c0_40 = arith.constant 0 : index
    %c0_41 = arith.constant 0 : index
    %131 = vector.load %arg9[%c0_40, %c0_41] : memref<1x10xf32, #tpu.memory_space<vmem>>, vector<1x10xf32>
    %132 = vector.broadcast %131 : vector<1x10xf32> to vector<8x10xf32>
    %133 = arith.addf %130, %132 : vector<8x10xf32>
    %cst_42 = arith.constant dense<0xFF800000> : vector<8xf32>
    %134 = vector.multi_reduction <maximumf>, %133, %cst_42 [1] : vector<8x10xf32> to vector<8xf32>
    %135 = vector.shape_cast %134 : vector<8xf32> to vector<8x1xf32>
    %136 = vector.broadcast %135 : vector<8x1xf32> to vector<8x10xf32>
    %137 = arith.subf %133, %136 : vector<8x10xf32>
    %138 = math.exp %137 : vector<8x10xf32>
    %cst_43 = arith.constant dense<0.000000e+00> : vector<8xf32>
    %139 = vector.multi_reduction <add>, %138, %cst_43 [1] : vector<8x10xf32> to vector<8xf32>
    %140 = vector.shape_cast %139 : vector<8xf32> to vector<8x1xf32>
    %141 = math.log %140 : vector<8x1xf32>
    %142 = vector.broadcast %141 : vector<8x1xf32> to vector<8x10xf32>
    %143 = arith.subf %137, %142 : vector<8x10xf32>
    %c0_44 = arith.constant 0 : index
    %c0_45 = arith.constant 0 : index
    %144 = vector.load %arg10[%c0_44, %c0_45] : memref<8x10xf32, #tpu.memory_space<vmem>>, vector<8x10xf32>
    tpu.vector_store %arg10[%c0_44, %c0_45], %143 {strides = array<i32>} : memref<8x10xf32, #tpu.memory_space<vmem>>, vector<8x10xf32>,
    return
  }
  func.func @transform_0(%arg0: i32) -> (i32, i32, i32) {
    %c0_i32 = arith.constant 0 : i32
    %c0_i32_0 = arith.constant 0 : i32
    %c0_i32_1 = arith.constant 0 : i32
    return %arg0, %c0_i32, %c0_i32_0 : i32, i32, i32
  }
  func.func @transform_1(%arg0: i32) -> (i32, i32) {
    %c0_i32 = arith.constant 0 : i32
    %c0_i32_0 = arith.constant 0 : i32
    %c0_i32_1 = arith.constant 0 : i32
    return %c0_i32, %c0_i32_0 : i32, i32
  }
  func.func @transform_2(%arg0: i32) -> (i32, i32, i32) {
    %c0_i32 = arith.constant 0 : i32
    %c0_i32_0 = arith.constant 0 : i32
    %c0_i32_1 = arith.constant 0 : i32
    %c0_i32_2 = arith.constant 0 : i32
    return %c0_i32, %c0_i32_0, %c0_i32_1 : i32, i32, i32
  }
  func.func @transform_3(%arg0: i32) -> (i32, i32, i32) {
    %c0_i32 = arith.constant 0 : i32
    %c0_i32_0 = arith.constant 0 : i32
    %c0_i32_1 = arith.constant 0 : i32
    %c0_i32_2 = arith.constant 0 : i32
    return %c0_i32, %c0_i32_0, %c0_i32_1 : i32, i32, i32
  }
  func.func @transform_4(%arg0: i32) -> (i32, i32) {
    %c0_i32 = arith.constant 0 : i32
    %c0_i32_0 = arith.constant 0 : i32
    %c0_i32_1 = arith.constant 0 : i32
    return %c0_i32, %c0_i32_0 : i32, i32
  }
  func.func @transform_5(%arg0: i32) -> (i32, i32) {
    %c0_i32 = arith.constant 0 : i32
    %c0_i32_0 = arith.constant 0 : i32
    %c0_i32_1 = arith.constant 0 : i32
    return %c0_i32, %c0_i32_0 : i32, i32
  }
  func.func @transform_6(%arg0: i32) -> (i32, i32) {
    %c0_i32 = arith.constant 0 : i32
    %c0_i32_0 = arith.constant 0 : i32
    %c0_i32_1 = arith.constant 0 : i32
    return %c0_i32, %c0_i32_0 : i32, i32
  }
  func.func @transform_7(%arg0: i32) -> (i32, i32) {
    %c0_i32 = arith.constant 0 : i32
    %c0_i32_0 = arith.constant 0 : i32
    %c0_i32_1 = arith.constant 0 : i32
    return %c0_i32, %c0_i32_0 : i32, i32
  }
  func.func @transform_8(%arg0: i32) -> (i32, i32) {
    %c0_i32 = arith.constant 0 : i32
    %c0_i32_0 = arith.constant 0 : i32
    %c0_i32_1 = arith.constant 0 : i32
    return %c0_i32, %c0_i32_0 : i32, i32
  }
  func.func @transform_9(%arg0: i32) -> (i32, i32) {
    %c0_i32 = arith.constant 0 : i32
    %c0_i32_0 = arith.constant 0 : i32
    return %arg0, %c0_i32 : i32, i32
  }
}

</mosaic_0001>

<bundles_post_ra>
// kernel: net_forward.1
= control target key start
LH: loop header
LB: loop body
LE: loop exit
PB: predicated region body
PF: predicated region fallthrough
CT: control target
= control target key end

     0   :  { %vm1686_vm0 = vcmask 1043456   ;;  %vm1687_vm1 = vcmask 1044480   ;;  %vm1199_vm2 = vcmask 72704   ;;  %v8296_v1 = vmov 65535   ;;  %s10600_s1 = inlined_call_operand.vmem [shape: bf16[9,4], index: 1, kind: input, shape index: {}]   ;;  %s10601_s0 = inlined_call_operand.vmem [shape: bf16[1,2592,9], index: 0, kind: input, shape index: {}]   ;;  %s10602_s2 = inlined_call_operand.vmem [shape: bf16[9,4,8], index: 2, kind: input, shape index: {}]   ;;  %s10603_s5 = inlined_call_operand.vmem [shape: f32[1,4], index: 5, kind: input, shape index: {}]   ;;  %s10604_s3 = inlined_call_operand.vmem [shape: bf16[9,8,16], index: 3, kind: input, shape index: {}]   ;;  %s10605_s6 = inlined_call_operand.vmem [shape: f32[1,8], index: 6, kind: input, shape index: {}]   ;;  %s10606_s4 = inlined_call_operand.vmem [shape: bf16[16,10], index: 4, kind: input, shape index: {}]   ;;  %s10607_s7 = inlined_call_operand.vmem [shape: f32[1,16], index: 7, kind: input, shape index: {}]   ;;  %s10608_s8 = inlined_call_operand.vmem [shape: f32[1,10], index: 8, kind: input, shape index: {}]   ;;  %s10609_s9 = inlined_call_operand.vmem [shape: f32[8,10], index: 9, kind: output, shape index: {}]  }
   0x1   :  { %v8125_v0 = vld [vmem:[%s10600_s1] sm:$0x1f]   ;;  %v1688_v2 = vsel %vm1686_vm0, 4294967295, %v8296_v1  ;;  %v8127_v6 = vld [vmem:[%s10601_s0 + $0x8] sm:$0xff]   ;;  %v8128_v7 = vld [vmem:[%s10601_s0 + $0x10] sm:$0xff]   ;;  %vm3570_vm3 = vcmask 1041408  }
   0x2   :  { %v8126_v3 = vld [vmem:[%s10601_s0] sm:$0xff]   ;;  %v1689_v4 = vsel %vm1687_vm1, %v1688_v2, 0  ;;  %v8129_v8 = vld [vmem:[%s10601_s0 + $0x18] sm:$0xff]   ;;  %v8131_v10 = vld [vmem:[%s10601_s0 + $0x28] sm:$0xff]   ;;  %vm3515_vm4 = vcmask 31744   ;;  %vm8298_vm5 = vmmov 0  }
   0x3   :  { %v1691_v5 = vand.u32 %v8125_v0, %v1689_v4  ;;  %7387 = vmatprep.mubr.msk.bf16.mxu0 %vm1199_vm2, %v8126_v3  ;;  %v8130_v9 = vld [vmem:[%s10601_s0 + $0x20] sm:$0xff]   ;;  %v8132_v11 = vld [vmem:[%s10601_s0 + $0x30] sm:$0xff]   ;;  %v8133_v12 = vld [vmem:[%s10601_s0 + $0x38] sm:$0xff]   ;;  %vm6018_vm6 = vcmask 64512   ;;  %vm6467_vm7 = vcmask 130048   ;;  %vm6511_vm8 = vcmask 80896  }
   0x4   :  { %v8134_v13 = vld [vmem:[%s10601_s0 + $0x40] sm:$0xff]   ;;  %v8135_v14 = vld [vmem:[%s10601_s0 + $0x48] sm:$0xff]   ;;  %v8136_v15 = vld [vmem:[%s10601_s0 + $0x50] sm:$0xff]  }
   0x5   :  { %7385 = vmatprep.subr.bf16.mxu0 %v1691_v5  ;;  %v8137_v16 = vld [vmem:[%s10601_s0 + $0x58] sm:$0xff]   ;;  %v8138_v17 = vld [vmem:[%s10601_s0 + $0x60] sm:$0xff]   ;;  %v8139_v18 = vld [vmem:[%s10601_s0 + $0x68] sm:$0xff]  }
   0x6   :  { %7386 = vmatpush3.bf16.msra.mxu0 %v1691_v5  ;;  %v8140_v19 = vld [vmem:[%s10601_s0 + $0x70] sm:$0xff]   ;;  %v8141_v20 = vld [vmem:[%s10601_s0 + $0x78] sm:$0xff]   ;;  %v8142_v21 = vld [vmem:[%s10601_s0 + $0x80] sm:$0xff]  }
   0x7   :  { %v8143_v22 = vld [vmem:[%s10601_s0 + $0x88] sm:$0xff]   ;;  %v8144_v23 = vld [vmem:[%s10601_s0 + $0x90] sm:$0xff]   ;;  %v8145_v24 = vld [vmem:[%s10601_s0 + $0x98] sm:$0xff]  }
   0x8   :  { %v8146_v25 = vld [vmem:[%s10601_s0 + $0xa0] sm:$0xff]   ;;  %v8147_v28 = vld [vmem:[%s10601_s0 + $0xa8] sm:$0xff]   ;;  %v8148_v29 = vld [vmem:[%s10601_s0 + $0xb0] sm:$0xff]  }
   0x9   :  { %7388 = vmatmul.mubr.msk.bf16.vlgmr.msra.gmra.mxu0 %vm1199_vm2, %v8127_v6  ;;  %v359_v26 = vld [vmem:[%s10602_s2] sm:$0x3]  ;;  %v8453_v30 = vld [vmem:[%s10602_s2 + $0x2] sm:$0x3]  ;;  %v8149_v31 = vld [vmem:[%s10601_s0 + $0xb8] sm:$0xff]  }
   0xa   :  { %7391 = vmatprep.mubr.msk.bf16.mxu0 %vm1199_vm2, %v8128_v7  ;;  %8113 = vmatprep.subr.msk.bf16.mxu1 %vm3570_vm3, %v359_v26  ;;  %v3572_v27 = vsel %vm3570_vm3, %v359_v26, 0  ;;  %v8150_v32 = vld [vmem:[%s10601_s0 + $0xc0] sm:$0xff]   ;;  %v8151_v33 = vld [vmem:[%s10601_s0 + $0xc8] sm:$0xff]   ;;  %v8152_v34 = vld [vmem:[%s10601_s0 + $0xd0] sm:$0xff]  }
   0xb   :  { %7712 = vmatpush3.bf16.msra.mxu1 %v3572_v27  ;;  %v8153_v35 = vld [vmem:[%s10601_s0 + $0xd8] sm:$0xff]   ;;  %v8154_v36 = vld [vmem:[%s10601_s0 + $0xe0] sm:$0xff]   ;;  %v8155_v37 = vld [vmem:[%s10601_s0 + $0xe8] sm:$0xff]  }
   0xc   :  { %8114 = vmatprep.subr.msk.bf16.mxu1 %vm3570_vm3, %v8453_v30  ;;  %v8156_v38 = vld [vmem:[%s10601_s0 + $0xf0] sm:$0xff]   ;;  %v8157_v39 = vld [vmem:[%s10601_s0 + $0xf8] sm:$0xff]   ;;  %v8158_v40 = vld [vmem:[%s10601_s0 + $0x100] sm:$0xff]  }
   0xd   :  { %v8159_v41 = vld [vmem:[%s10601_s0 + $0x108] sm:$0xff]   ;;  %v8160_v42 = vld [vmem:[%s10601_s0 + $0x110] sm:$0xff]   ;;  %v8161_v43 = vld [vmem:[%s10601_s0 + $0x118] sm:$0xff]  }
   0xe   :  { %v8162_v44 = vld [vmem:[%s10601_s0 + $0x120] sm:$0xff]   ;;  %v8163_v45 = vld [vmem:[%s10601_s0 + $0x128] sm:$0xff]   ;;  %v8164_v46 = vld [vmem:[%s10601_s0 + $0x130] sm:$0xff]  }
   0xf   :  { %v8165_v47 = vld [vmem:[%s10601_s0 + $0x138] sm:$0xff]   ;;  %v8166_v48 = vld [vmem:[%s10601_s0 + $0x140] sm:$0xff]   ;;  %v8167_v49 = vld [vmem:[%s10601_s0 + $0x148] sm:$0xff]  }
  0x10   :  { %v8168_v50 = vld [vmem:[%s10601_s0 + $0x150] sm:$0xff]   ;;  %v8169_v51 = vld [vmem:[%s10601_s0 + $0x158] sm:$0xff]   ;;  %v8170_v52 = vld [vmem:[%s10601_s0 + $0x160] sm:$0xff]  }
  0x11   :  { %7392 = vmatmul.mubr.msk.bf16.gmra.mxu0 %vm1199_vm2, %v8129_v8  ;;  %v8171_v53 = vld [vmem:[%s10601_s0 + $0x168] sm:$0xff]   ;;  %v8172_v54 = vld [vmem:[%s10601_s0 + $0x170] sm:$0xff]   ;;  %v8173_v55 = vld [vmem:[%s10601_s0 + $0x178] sm:$0xff]  }
  0x12   :  { %7395 = vmatprep.mubr.msk.bf16.mxu0 %vm1199_vm2, %v8130_v9  ;;  %v8174_v56 = vld [vmem:[%s10601_s0 + $0x180] sm:$0xff]   ;;  %v8175_v57 = vld [vmem:[%s10601_s0 + $0x188] sm:$0xff]   ;;  %v8176_v58 = vld [vmem:[%s10601_s0 + $0x190] sm:$0xff]  }
  0x13   :  { %v8572_v61 = vld [vmem:[%s10603_s5] ss:$0 sm:$0xff]  ;;  %v8177_v63 = vld [vmem:[%s10601_s0 + $0x198] sm:$0xff]  }
  0x14   :  { %v8178_v2 = vld [vmem:[%s10601_s0 + $0x1a0] sm:$0xff]  }
  0x19   :  { %7396 = vmatmul.mubr.msk.bf16.gmra.mxu0 %vm1199_vm2, %v8131_v10 }
  0x1a   :  { %7399 = vmatprep.mubr.msk.bf16.mxu0 %vm1199_vm2, %v8132_v11 }
  0x21   :  { %7400 = vmatmul.mubr.msk.bf16.gmra.mxu0 %vm1199_vm2, %v8133_v12 }
  0x22   :  { %7403 = vmatprep.mubr.msk.bf16.mxu0 %vm1199_vm2, %v8134_v13 }
  0x29   :  { %7404 = vmatmul.mubr.msk.bf16.gmra.mxu0 %vm1199_vm2, %v8135_v14 }
  0x2a   :  { %7407 = vmatprep.mubr.msk.bf16.mxu0 %vm1199_vm2, %v8136_v15  ;;  %v3842_v15 = vsel %vm3570_vm3, %v8453_v30, 0 }
  0x31   :  { %7408 = vmatmul.mubr.msk.bf16.gmra.mxu0 %vm1199_vm2, %v8137_v16  ;;  %v8179_v16 = vld [vmem:[%s10601_s0 + $0x1a8] sm:$0xff]  }
  0x32   :  { %7411 = vmatprep.mubr.msk.bf16.mxu0 %vm1199_vm2, %v8138_v17 }
  0x39   :  { %7412 = vmatmul.mubr.msk.bf16.gmra.mxu0 %vm1199_vm2, %v8139_v18 }
  0x3a   :  { %7415 = vmatprep.mubr.msk.bf16.mxu0 %vm1199_vm2, %v8140_v19  ;;  %v8180_v19 = vld [vmem:[%s10601_s0 + $0x1b0] sm:$0xff]  }
  0x41   :  { %7416 = vmatmul.mubr.msk.bf16.gmra.mxu0 %vm1199_vm2, %v8141_v20  ;;  %v8600_v20 = vld [vmem:[%s10602_s2 + $0x4] sm:$0x3] }
  0x42   :  { %7419 = vmatprep.mubr.msk.bf16.mxu0 %vm1199_vm2, %v8142_v21 }
  0x49   :  { %7420 = vmatmul.mubr.msk.bf16.gmra.mxu0 %vm1199_vm2, %v8143_v22 }
  0x4a   :  { %7423 = vmatprep.mubr.msk.bf16.mxu0 %vm1199_vm2, %v8144_v23 }
  0x51   :  { %7424 = vmatmul.mubr.msk.bf16.gmra.mxu0 %vm1199_vm2, %v8145_v24 }
  0x52   :  { %7427 = vmatprep.mubr.msk.bf16.mxu0 %vm1199_vm2, %v8146_v25 }
  0x59   :  { %7428 = vmatmul.mubr.msk.bf16.gmra.mxu0 %vm1199_vm2, %v8147_v28 }
  0x5a   :  { %7431 = vmatprep.mubr.msk.bf16.mxu0 %vm1199_vm2, %v8148_v29 }
  0x61   :  { %7432 = vmatmul.mubr.msk.bf16.gmra.mxu0 %vm1199_vm2, %v8149_v31 }
  0x62   :  { %7435 = vmatprep.mubr.msk.bf16.mxu0 %vm1199_vm2, %v8150_v32 }
  0x69   :  { %7436 = vmatmul.mubr.msk.bf16.gmra.mxu0 %vm1199_vm2, %v8151_v33  ;;  %v8181_v33 = vld [vmem:[%s10601_s0 + $0x1b8] sm:$0xff]  }
  0x6a   :  { %7439 = vmatprep.mubr.msk.bf16.mxu0 %vm1199_vm2, %v8152_v34 }
  0x71   :  { %7440 = vmatmul.mubr.msk.bf16.gmra.mxu0 %vm1199_vm2, %v8153_v35 }
  0x72   :  { %7443 = vmatprep.mubr.msk.bf16.mxu0 %vm1199_vm2, %v8154_v36  ;;  %v8182_v36 = vld [vmem:[%s10601_s0 + $0x1c0] sm:$0xff]  }
  0x79   :  { %7444 = vmatmul.mubr.msk.bf16.gmra.mxu0 %vm1199_vm2, %v8155_v37 }
  0x7a   :  { %7447 = vmatprep.mubr.msk.bf16.mxu0 %vm1199_vm2, %v8156_v38 }
  0x81   :  { %7448 = vmatmul.mubr.msk.bf16.gmra.mxu0 %vm1199_vm2, %v8157_v39 }
  0x82   :  { %7451 = vmatprep.mubr.msk.bf16.mxu0 %vm1199_vm2, %v8158_v40 }
  0x89   :  { %7452 = vmatmul.mubr.msk.bf16.gmra.mxu0 %vm1199_vm2, %v8159_v41 }
  0x8a   :  { %7455 = vmatprep.mubr.msk.bf16.mxu0 %vm1199_vm2, %v8160_v42 }
  0x91   :  { %7456 = vmatmul.mubr.msk.bf16.gmra.mxu0 %vm1199_vm2, %v8161_v43 }
  0x92   :  { %7459 = vmatprep.mubr.msk.bf16.mxu0 %vm1199_vm2, %v8162_v44 }
  0x99   :  { %7460 = vmatmul.mubr.msk.bf16.gmra.mxu0 %vm1199_vm2, %v8163_v45 }
  0x9a   :  { %7463 = vmatprep.mubr.msk.bf16.mxu0 %vm1199_vm2, %v8164_v46 }
  0xa1   :  { %7464 = vmatmul.mubr.msk.bf16.gmra.mxu0 %vm1199_vm2, %v8165_v47 }
  0xa2   :  { %7467 = vmatprep.mubr.msk.bf16.mxu0 %vm1199_vm2, %v8166_v48 }
  0xa9   :  { %7468 = vmatmul.mubr.msk.bf16.gmra.mxu0 %vm1199_vm2, %v8167_v49  ;;  %v8183_v49 = vld [vmem:[%s10601_s0 + $0x1c8] sm:$0xff]  }
  0xaa   :  { %7471 = vmatprep.mubr.msk.bf16.mxu0 %vm1199_vm2, %v8168_v50 }
  0xb1   :  { %7472 = vmatmul.mubr.msk.bf16.gmra.mxu0 %vm1199_vm2, %v8169_v51 }
  0xb2   :  { %7475 = vmatprep.mubr.msk.bf16.mxu0 %vm1199_vm2, %v8170_v52  ;;  %v8184_v52 = vld [vmem:[%s10601_s0 + $0x1d0] sm:$0xff]  }
  0xb9   :  { %7476 = vmatmul.mubr.msk.bf16.gmra.mxu0 %vm1199_vm2, %v8171_v53 }
  0xba   :  { %7479 = vmatprep.mubr.msk.bf16.mxu0 %vm1199_vm2, %v8172_v54 }
  0xc1   :  { %7480 = vmatmul.mubr.msk.bf16.gmra.mxu0 %vm1199_vm2, %v8173_v55 }
  0xc2   :  { %7483 = vmatprep.mubr.msk.bf16.mxu0 %vm1199_vm2, %v8174_v56 }
  0xc9   :  { %v7389_v59 = vpop.f32.mrf.mxu0  ;;  %7484 = vmatmul.mubr.msk.bf16.gmra.mxu0 %vm1199_vm2, %v8175_v57 }
  0xca   :  { %7487 = vmatprep.mubr.msk.bf16.mxu0 %vm1199_vm2, %v8176_v58  ;;  %v1736_v3 = vadd.f32 %v7389_v59, %v8572_v61 }
  0xcb   :  { %v1727_v60 = vpop.f32.mrf.mxu0 }
  0xcc   :  { %v1728_v0 = vadd.f32 %v8572_v61, %v1727_v60  ;;  %v3024_v10 = vmax.f32 %v1736_v3, 0.0 }
  0xcd   :  { %v7390_v62 = vpop.f32.mrf.mxu0 }
  0xce   :  { %v1739_v1 = vadd.f32 %v7390_v62, %v8572_v61  ;;  %v3022_v8 = vmax.f32 %v1728_v0, 0.0 }
  0xcf   :  { %v1730_v4 = vpop.f32.mrf.mxu0 }
  0xd0   :  { %v1731_v5 = vadd.f32 %v8572_v61, %v1730_v4  ;;  %v3025_v6 = vmax.f32 %v1739_v1, 0.0 }
  0xd1   :  { %v7393_v7 = vpop.f32.mrf.mxu0  ;;  %7488 = vmatmul.mubr.msk.bf16.gmra.mxu0 %vm1199_vm2, %v8177_v63 }
  0xd2   :  { %v3023_v9 = vmax.f32 %v1731_v5, 0.0  ;;  %7491 = vmatprep.mubr.msk.bf16.mxu0 %vm1199_vm2, %v8178_v2  ;;  %v3347_v13 = vpack.c.bf16 %v3025_v6, %v3024_v10  ;;  %v1752_v21 = vadd.f32 %v7393_v7, %v8572_v61  ;;  %v8185_v2 = vld [vmem:[%s10601_s0 + $0x1d8] sm:$0xff]   ;;  %v8186_v5 = vld [vmem:[%s10601_s0 + $0x1e0] sm:$0xff]  }
  0xd3   :  { %v1743_v11 = vpop.f32.mrf.mxu0 }
  0xd4   :  { %v3346_v12 = vpack.c.bf16 %v3023_v9, %v3022_v8  ;;  %v1744_v17 = vadd.f32 %v8572_v61, %v1743_v11  ;;  %v3028_v28 = vmax.f32 %v1752_v21, 0.0 }
  0xd5   :  { %v7394_v14 = vpop.f32.mrf.mxu0 }
  0xd6   :  { %v1755_v18 = vadd.f32 %v7394_v14, %v8572_v61  ;;  %7713 = vmatprep.mubr.msk.bf16.mxu1 %vm3515_vm4, %v3346_v12  ;;  %v3026_v26 = vmax.f32 %v1744_v17, 0.0 }
  0xd7   :  { %v1746_v22 = vpop.f32.mrf.mxu0  ;;  %7714 = vmatmul.mubr.msk.bf16.vlgmr.msra.gmra.mxu1 %vm3515_vm4, %v3347_v13 }
  0xd8   :  { %v1747_v23 = vadd.f32 %v8572_v61, %v1746_v22  ;;  %7750 = vmatpush3.bf16.msra.mxu1 %v3842_v15  ;;  %v3029_v24 = vmax.f32 %v1755_v18, 0.0  ;;  %v8187_v18 = vld [vmem:[%s10601_s0 + $0x1e8] sm:$0xff]   ;;  %v8188_v22 = vld [vmem:[%s10601_s0 + $0x1f0] sm:$0xff]  }
  0xd9   :  { %v7397_v25 = vpop.f32.mrf.mxu0  ;;  %7492 = vmatmul.mubr.msk.bf16.gmra.mxu0 %vm1199_vm2, %v8179_v16  ;;  %8115 = vmatprep.subr.msk.bf16.mxu1 %vm3570_vm3, %v8600_v20 }
  0xda   :  { %v3027_v27 = vmax.f32 %v1747_v23, 0.0  ;;  %7495 = vmatprep.mubr.msk.bf16.mxu0 %vm1199_vm2, %v8180_v19  ;;  %v3349_v31 = vpack.c.bf16 %v3029_v24, %v3028_v28  ;;  %v1768_v37 = vadd.f32 %v7397_v25, %v8572_v61 }
  0xdb   :  { %v1759_v29 = vpop.f32.mrf.mxu0 }
  0xdc   :  { %v3348_v30 = vpack.c.bf16 %v3027_v27, %v3026_v26  ;;  %v1760_v34 = vadd.f32 %v8572_v61, %v1759_v29  ;;  %v3032_v44 = vmax.f32 %v1768_v37, 0.0 }
  0xdd   :  { %v7398_v32 = vpop.f32.mrf.mxu0 }
  0xde   :  { %v1771_v35 = vadd.f32 %v7398_v32, %v8572_v61  ;;  %7717 = vmatprep.mubr.msk.bf16.mxu1 %vm3515_vm4, %v3348_v30  ;;  %v3030_v42 = vmax.f32 %v1760_v34, 0.0 }
  0xdf   :  { %v1762_v38 = vpop.f32.mrf.mxu0  ;;  %7718 = vmatmul.mubr.msk.bf16.gmra.mxu1 %vm3515_vm4, %v3349_v31 }
  0xe0   :  { %v1763_v39 = vadd.f32 %v8572_v61, %v1762_v38  ;;  %v3033_v40 = vmax.f32 %v1771_v35, 0.0  ;;  %v8189_v35 = vld [vmem:[%s10601_s0 + $0x1f8] sm:$0xff]   ;;  %v8190_v38 = vld [vmem:[%s10601_s0 + $0x200] sm:$0xff]  }
  0xe1   :  { %v7401_v41 = vpop.f32.mrf.mxu0  ;;  %7496 = vmatmul.mubr.msk.bf16.gmra.mxu0 %vm1199_vm2, %v8181_v33 }
  0xe2   :  { %v3031_v43 = vmax.f32 %v1763_v39, 0.0  ;;  %7499 = vmatprep.mubr.msk.bf16.mxu0 %vm1199_vm2, %v8182_v36  ;;  %v3351_v47 = vpack.c.bf16 %v3033_v40, %v3032_v44  ;;  %v1784_v53 = vadd.f32 %v7401_v41, %v8572_v61 }
  0xe3   :  { %v1775_v45 = vpop.f32.mrf.mxu0 }
  0xe4   :  { %v3350_v46 = vpack.c.bf16 %v3031_v43, %v3030_v42  ;;  %v1776_v50 = vadd.f32 %v8572_v61, %v1775_v45  ;;  %v3036_v60 = vmax.f32 %v1784_v53, 0.0 }
  0xe5   :  { %v7402_v48 = vpop.f32.mrf.mxu0 }
  0xe6   :  { %v1787_v51 = vadd.f32 %v7402_v48, %v8572_v61  ;;  %7721 = vmatprep.mubr.msk.bf16.mxu1 %vm3515_vm4, %v3350_v46  ;;  %v3034_v58 = vmax.f32 %v1776_v50, 0.0 }
  0xe7   :  { %v1778_v54 = vpop.f32.mrf.mxu0  ;;  %7722 = vmatmul.mubr.msk.bf16.gmra.mxu1 %vm3515_vm4, %v3351_v47 }
  0xe8   :  { %v1779_v55 = vadd.f32 %v8572_v61, %v1778_v54  ;;  %v3037_v56 = vmax.f32 %v1787_v51, 0.0  ;;  %v8191_v51 = vld [vmem:[%s10601_s0 + $0x208] sm:$0xff]   ;;  %v8192_v54 = vld [vmem:[%s10601_s0 + $0x210] sm:$0xff]  }
  0xe9   :  { %v7405_v57 = vpop.f32.mrf.mxu0  ;;  %7500 = vmatmul.mubr.msk.bf16.gmra.mxu0 %vm1199_vm2, %v8183_v49 }
  0xea   :  { %v3035_v59 = vmax.f32 %v1779_v55, 0.0  ;;  %7503 = vmatprep.mubr.msk.bf16.mxu0 %vm1199_vm2, %v8184_v52  ;;  %v3353_v0 = vpack.c.bf16 %v3037_v56, %v3036_v60  ;;  %v1800_v6 = vadd.f32 %v7405_v57, %v8572_v61 }
  0xeb   :  { %v1791_v62 = vpop.f32.mrf.mxu0 }
  0xec   :  { %v3352_v63 = vpack.c.bf16 %v3035_v59, %v3034_v58  ;;  %v1792_v3 = vadd.f32 %v8572_v61, %v1791_v62  ;;  %v3040_v13 = vmax.f32 %v1800_v6, 0.0 }
  0xed   :  { %v7406_v1 = vpop.f32.mrf.mxu0 }
  0xee   :  { %v1803_v4 = vadd.f32 %v7406_v1, %v8572_v61  ;;  %7725 = vmatprep.mubr.msk.bf16.mxu1 %vm3515_vm4, %v3352_v63  ;;  %v3038_v11 = vmax.f32 %v1792_v3, 0.0 }
  0xef   :  { %v1794_v7 = vpop.f32.mrf.mxu0  ;;  %7726 = vmatmul.mubr.msk.bf16.gmra.mxu1 %vm3515_vm4, %v3353_v0 }
  0xf0   :  { %v1795_v8 = vadd.f32 %v8572_v61, %v1794_v7  ;;  %v3041_v9 = vmax.f32 %v1803_v4, 0.0  ;;  %v8193_v4 = vld [vmem:[%s10601_s0 + $0x218] sm:$0xff]   ;;  %v8194_v7 = vld [vmem:[%s10601_s0 + $0x220] sm:$0xff]  }
  0xf1   :  { %v7409_v10 = vpop.f32.mrf.mxu0  ;;  %7504 = vmatmul.mubr.msk.bf16.gmra.mxu0 %vm1199_vm2, %v8185_v2 }
  0xf2   :  { %v3039_v12 = vmax.f32 %v1795_v8, 0.0  ;;  %7507 = vmatprep.mubr.msk.bf16.mxu0 %vm1199_vm2, %v8186_v5  ;;  %v3355_v16 = vpack.c.bf16 %v3041_v9, %v3040_v13  ;;  %v1816_v23 = vadd.f32 %v7409_v10, %v8572_v61 }
  0xf3   :  { %v1807_v14 = vpop.f32.mrf.mxu0 }
  0xf4   :  { %v3354_v15 = vpack.c.bf16 %v3039_v12, %v3038_v11  ;;  %v1808_v19 = vadd.f32 %v8572_v61, %v1807_v14  ;;  %v3044_v30 = vmax.f32 %v1816_v23, 0.0  ;;  %v368_v23 = vld [vmem:[%s10604_s3] sm:$0xf] }
  0xf5   :  { %v7410_v17 = vpop.f32.mrf.mxu0 }
  0xf6   :  { %v1819_v21 = vadd.f32 %v7410_v17, %v8572_v61  ;;  %7729 = vmatprep.mubr.msk.bf16.mxu1 %vm3515_vm4, %v3354_v15  ;;  %v3042_v28 = vmax.f32 %v1808_v19, 0.0 }
  0xf7   :  { %v1810_v24 = vpop.f32.mrf.mxu0  ;;  %7730 = vmatmul.mubr.msk.bf16.gmra.mxu1 %vm3515_vm4, %v3355_v16 }
  0xf8   :  { %v1811_v25 = vadd.f32 %v8572_v61, %v1810_v24  ;;  %v3045_v26 = vmax.f32 %v1819_v21, 0.0  ;;  %v8195_v21 = vld [vmem:[%s10601_s0 + $0x228] sm:$0xff]  }
  0xf9   :  { %v7413_v27 = vpop.f32.mrf.mxu0  ;;  %7508 = vmatmul.mubr.msk.bf16.gmra.mxu0 %vm1199_vm2, %v8187_v18 }
  0xfa   :  { %v3043_v29 = vmax.f32 %v1811_v25, 0.0  ;;  %7511 = vmatprep.mubr.msk.bf16.mxu0 %vm1199_vm2, %v8188_v22  ;;  %v3357_v33 = vpack.c.bf16 %v3045_v26, %v3044_v30  ;;  %v1832_v39 = vadd.f32 %v7413_v27, %v8572_v61  ;;  %v8297_v22 = vmov 0.0   ;;  %v8196_v26 = vld [vmem:[%s10601_s0 + $0x230] sm:$0xff]  }
  0xfb   :  { %v1823_v31 = vpop.f32.mrf.mxu0  ;;  %8053 = vmatprep.subr.bf16.mxu0 %v8297_v22  ;;  %v6023_v27 = vsel %vm1686_vm0, %v368_v23, 0 }
  0xfc   :  { %v3356_v32 = vpack.c.bf16 %v3043_v29, %v3042_v28  ;;  %v1824_v36 = vadd.f32 %v8572_v61, %v1823_v31  ;;  %v3048_v46 = vmax.f32 %v1832_v39, 0.0  ;;  %8054 = vmatpush3.bf16.msra.mxu0 %v6023_v27 }
  0xfd   :  { %v7414_v34 = vpop.f32.mrf.mxu0  ;;  %8065 = vmatprep.subr.bf16.mxu0 %v8297_v22 }
  0xfe   :  { %v1835_v37 = vadd.f32 %v7414_v34, %v8572_v61  ;;  %7733 = vmatprep.mubr.msk.bf16.mxu1 %vm3515_vm4, %v3356_v32  ;;  %v3046_v44 = vmax.f32 %v1824_v36, 0.0 }
  0xff   :  { %v1826_v40 = vpop.f32.mrf.mxu0  ;;  %7734 = vmatmul.mubr.msk.bf16.gmra.mxu1 %vm3515_vm4, %v3357_v33 }
 0x100   :  { %v1827_v41 = vadd.f32 %v8572_v61, %v1826_v40  ;;  %v3049_v42 = vmax.f32 %v1835_v37, 0.0  ;;  %v4112_v40 = vsel %vm3570_vm3, %v8600_v20, 0 }
 0x101   :  { %v7417_v43 = vpop.f32.mrf.mxu0  ;;  %7512 = vmatmul.mubr.msk.bf16.gmra.mxu0 %vm1199_vm2, %v8189_v35 }
 0x102   :  { %v3047_v45 = vmax.f32 %v1827_v41, 0.0  ;;  %7515 = vmatprep.mubr.msk.bf16.mxu0 %vm1199_vm2, %v8190_v38  ;;  %v3359_v49 = vpack.c.bf16 %v3049_v42, %v3048_v46  ;;  %v1848_v55 = vadd.f32 %v7417_v43, %v8572_v61  ;;  %v8197_v41 = vld [vmem:[%s10601_s0 + $0x238] sm:$0xff]  }
 0x103   :  { %v1839_v47 = vpop.f32.mrf.mxu0 }
 0x104   :  { %v3358_v48 = vpack.c.bf16 %v3047_v45, %v3046_v44  ;;  %v1840_v52 = vadd.f32 %v8572_v61, %v1839_v47  ;;  %v3052_v63 = vmax.f32 %v1848_v55, 0.0  ;;  %v8198_v44 = vld [vmem:[%s10601_s0 + $0x240] sm:$0xff]  }
 0x105   :  { %v7418_v50 = vpop.f32.mrf.mxu0  ;;  %v8741_v45 = vld [vmem:[%s10602_s2 + $0x6] sm:$0x3] }
 0x106   :  { %v1851_v53 = vadd.f32 %v7418_v50, %v8572_v61  ;;  %7737 = vmatprep.mubr.msk.bf16.mxu1 %vm3515_vm4, %v3358_v48  ;;  %v3050_v60 = vmax.f32 %v1840_v52, 0.0 }
 0x107   :  { %v1842_v56 = vpop.f32.mrf.mxu0  ;;  %7738 = vmatmul.mubr.msk.bf16.gmra.mxu1 %vm3515_vm4, %v3359_v49 }
 0x108   :  { %v1843_v57 = vadd.f32 %v8572_v61, %v1842_v56  ;;  %v3053_v58 = vmax.f32 %v1851_v53, 0.0 }
 0x109   :  { %v7421_v59 = vpop.f32.mrf.mxu0  ;;  %7516 = vmatmul.mubr.msk.bf16.gmra.mxu0 %vm1199_vm2, %v8191_v51 }
 0x10a   :  { %v3051_v62 = vmax.f32 %v1843_v57, 0.0  ;;  %7519 = vmatprep.mubr.msk.bf16.mxu0 %vm1199_vm2, %v8192_v54  ;;  %v3361_v2 = vpack.c.bf16 %v3053_v58, %v3052_v63  ;;  %v1864_v8 = vadd.f32 %v7421_v59, %v8572_v61  ;;  %v8199_v57 = vld [vmem:[%s10601_s0 + $0x248] sm:$0xff]  }
 0x10b   :  { %v1855_v0 = vpop.f32.mrf.mxu0 }
 0x10c   :  { %v3360_v1 = vpack.c.bf16 %v3051_v62, %v3050_v60  ;;  %v1856_v5 = vadd.f32 %v8572_v61, %v1855_v0  ;;  %v3056_v15 = vmax.f32 %v1864_v8, 0.0  ;;  %v8200_v60 = vld [vmem:[%s10601_s0 + $0x250] sm:$0xff]  }
 0x10d   :  { %v7422_v3 = vpop.f32.mrf.mxu0 }
 0x10e   :  { %v1867_v6 = vadd.f32 %v7422_v3, %v8572_v61  ;;  %7741 = vmatprep.mubr.msk.bf16.mxu1 %vm3515_vm4, %v3360_v1  ;;  %v3054_v13 = vmax.f32 %v1856_v5, 0.0 }
 0x10f   :  { %v1858_v9 = vpop.f32.mrf.mxu0  ;;  %7742 = vmatmul.mubr.msk.bf16.gmra.mxu1 %vm3515_vm4, %v3361_v2 }
 0x110   :  { %v1859_v10 = vadd.f32 %v8572_v61, %v1858_v9  ;;  %v3057_v11 = vmax.f32 %v1867_v6, 0.0 }
 0x111   :  { %v7425_v12 = vpop.f32.mrf.mxu0  ;;  %7520 = vmatmul.mubr.msk.bf16.gmra.mxu0 %vm1199_vm2, %v8193_v4 }
 0x112   :  { %v3055_v14 = vmax.f32 %v1859_v10, 0.0  ;;  %7523 = vmatprep.mubr.msk.bf16.mxu0 %vm1199_vm2, %v8194_v7  ;;  %v3363_v18 = vpack.c.bf16 %v3057_v11, %v3056_v15  ;;  %v1880_v28 = vadd.f32 %v7425_v12, %v8572_v61  ;;  %v8201_v10 = vld [vmem:[%s10601_s0 + $0x258] sm:$0xff]  }
 0x113   :  { %v1871_v16 = vpop.f32.mrf.mxu0 }
 0x114   :  { %v3362_v17 = vpack.c.bf16 %v3055_v14, %v3054_v13  ;;  %v1872_v24 = vadd.f32 %v8572_v61, %v1871_v16  ;;  %v3060_v35 = vmax.f32 %v1880_v28, 0.0  ;;  %v8202_v13 = vld [vmem:[%s10601_s0 + $0x260] sm:$0xff]   ;;  %v8203_v28 = vld [vmem:[%s10601_s0 + $0x268] sm:$0xff]  }
 0x115   :  { %v7426_v19 = vpop.f32.mrf.mxu0 }
 0x116   :  { %v1883_v25 = vadd.f32 %v7426_v19, %v8572_v61  ;;  %7745 = vmatprep.mubr.msk.bf16.mxu1 %vm3515_vm4, %v3362_v17  ;;  %v3058_v33 = vmax.f32 %v1872_v24, 0.0 }
 0x117   :  { %v1874_v29 = vpop.f32.mrf.mxu0  ;;  %7746 = vmatmul.mubr.msk.bf16.gmra.mxu1 %vm3515_vm4, %v3363_v18 }
 0x118   :  { %v1875_v30 = vadd.f32 %v8572_v61, %v1874_v29  ;;  %v3061_v31 = vmax.f32 %v1883_v25, 0.0 }
 0x119   :  { %v7429_v32 = vpop.f32.mrf.mxu0  ;;  %7524 = vmatmul.mubr.msk.bf16.gmra.mxu0 %vm1199_vm2, %v8195_v21 }
 0x11a   :  { %v3059_v34 = vmax.f32 %v1875_v30, 0.0  ;;  %7527 = vmatprep.mubr.msk.bf16.mxu0 %vm1199_vm2, %v8196_v26  ;;  %v3365_v38 = vpack.c.bf16 %v3061_v31, %v3060_v35  ;;  %v1896_v20 = vadd.f32 %v7429_v32, %v8572_v61  ;;  %v8204_v31 = vld [vmem:[%s10601_s0 + $0x270] sm:$0xff]  }
 0x11b   :  { %v1887_v36 = vpop.f32.mrf.mxu0 }
 0x11c   :  { %v3364_v37 = vpack.c.bf16 %v3059_v34, %v3058_v33  ;;  %v1888_v42 = vadd.f32 %v8572_v61, %v1887_v36  ;;  %v3064_v52 = vmax.f32 %v1896_v20, 0.0 }
 0x11d   :  { %v7430_v39 = vpop.f32.mrf.mxu0 }
 0x11e   :  { %v1899_v43 = vadd.f32 %v7430_v39, %v8572_v61  ;;  %7751 = vmatprep.mubr.msk.bf16.mxu1 %vm3515_vm4, %v3364_v37  ;;  %v3062_v50 = vmax.f32 %v1888_v42, 0.0 }
 0x11f   :  { %v1890_v46 = vpop.f32.mrf.mxu0  ;;  %7752 = vmatmul.mubr.msk.bf16.vlgmr.msra.gmra.mxu1 %vm3515_vm4, %v3365_v38 }
 0x120   :  { %v1891_v47 = vadd.f32 %v8572_v61, %v1890_v46  ;;  %7788 = vmatpush3.bf16.msra.mxu1 %v4112_v40  ;;  %v3065_v48 = vmax.f32 %v1899_v43, 0.0 }
 0x121   :  { %v7433_v49 = vpop.f32.mrf.mxu0  ;;  %7528 = vmatmul.mubr.msk.bf16.gmra.mxu0 %vm1199_vm2, %v8197_v41  ;;  %8116 = vmatprep.subr.msk.bf16.mxu1 %vm3570_vm3, %v8741_v45 }
 0x122   :  { %v3063_v51 = vmax.f32 %v1891_v47, 0.0  ;;  %7531 = vmatprep.mubr.msk.bf16.mxu0 %vm1199_vm2, %v8198_v44  ;;  %v3367_v55 = vpack.c.bf16 %v3065_v48, %v3064_v52  ;;  %v1912_v62 = vadd.f32 %v7433_v49, %v8572_v61  ;;  %v8205_v44 = vld [vmem:[%s10601_s0 + $0x278] sm:$0xff]   ;;  %v8206_v47 = vld [vmem:[%s10601_s0 + $0x280] sm:$0xff]  }
 0x123   :  { %v1903_v53 = vpop.f32.mrf.mxu0 }
 0x124   :  { %v3366_v54 = vpack.c.bf16 %v3063_v51, %v3062_v50  ;;  %v1904_v58 = vadd.f32 %v8572_v61, %v1903_v53  ;;  %v3068_v5 = vmax.f32 %v1912_v62, 0.0 }
 0x125   :  { %v7434_v56 = vpop.f32.mrf.mxu0 }
 0x126   :  { %v1915_v59 = vadd.f32 %v7434_v56, %v8572_v61  ;;  %7755 = vmatprep.mubr.msk.bf16.mxu1 %vm3515_vm4, %v3366_v54  ;;  %v3066_v3 = vmax.f32 %v1904_v58, 0.0 }
 0x127   :  { %v1906_v63 = vpop.f32.mrf.mxu0  ;;  %7756 = vmatmul.mubr.msk.bf16.gmra.mxu1 %vm3515_vm4, %v3367_v55 }
 0x128   :  { %v1907_v0 = vadd.f32 %v8572_v61, %v1906_v63  ;;  %v3069_v1 = vmax.f32 %v1915_v59, 0.0 }
 0x129   :  { %v7437_v2 = vpop.f32.mrf.mxu0  ;;  %7532 = vmatmul.mubr.msk.bf16.gmra.mxu0 %vm1199_vm2, %v8199_v57 }
 0x12a   :  { %v3067_v4 = vmax.f32 %v1907_v0, 0.0  ;;  %7535 = vmatprep.mubr.msk.bf16.mxu0 %vm1199_vm2, %v8200_v60  ;;  %v3369_v8 = vpack.c.bf16 %v3069_v1, %v3068_v5  ;;  %v1928_v14 = vadd.f32 %v7437_v2, %v8572_v61  ;;  %v8207_v60 = vld [vmem:[%s10601_s0 + $0x288] sm:$0xff]   ;;  %v8208_v0 = vld [vmem:[%s10601_s0 + $0x290] sm:$0xff]  }
 0x12b   :  { %v1919_v6 = vpop.f32.mrf.mxu0 }
 0x12c   :  { %v3368_v7 = vpack.c.bf16 %v3067_v4, %v3066_v3  ;;  %v1920_v11 = vadd.f32 %v8572_v61, %v1919_v6  ;;  %v3072_v23 = vmax.f32 %v1928_v14, 0.0 }
 0x12d   :  { %v7438_v9 = vpop.f32.mrf.mxu0 }
 0x12e   :  { %v1931_v12 = vadd.f32 %v7438_v9, %v8572_v61  ;;  %7759 = vmatprep.mubr.msk.bf16.mxu1 %vm3515_vm4, %v3368_v7  ;;  %v3070_v19 = vmax.f32 %v1920_v11, 0.0 }
 0x12f   :  { %v1922_v15 = vpop.f32.mrf.mxu0  ;;  %7760 = vmatmul.mubr.msk.bf16.gmra.mxu1 %vm3515_vm4, %v3369_v8 }
 0x130   :  { %v1923_v16 = vadd.f32 %v8572_v61, %v1922_v15  ;;  %v3073_v17 = vmax.f32 %v1931_v12, 0.0 }
 0x131   :  { %v7441_v18 = vpop.f32.mrf.mxu0  ;;  %7536 = vmatmul.mubr.msk.bf16.gmra.mxu0 %vm1199_vm2, %v8201_v10 }
 0x132   :  { %v3071_v21 = vmax.f32 %v1923_v16, 0.0  ;;  %7539 = vmatprep.mubr.msk.bf16.mxu0 %vm1199_vm2, %v8202_v13  ;;  %v3371_v26 = vpack.c.bf16 %v3073_v17, %v3072_v23  ;;  %v1944_v32 = vadd.f32 %v7441_v18, %v8572_v61  ;;  %v8209_v13 = vld [vmem:[%s10601_s0 + $0x298] sm:$0xff]   ;;  %v8210_v16 = vld [vmem:[%s10601_s0 + $0x2a0] sm:$0xff]  }
 0x133   :  { %v1935_v24 = vpop.f32.mrf.mxu0 }
 0x134   :  { %v3370_v25 = vpack.c.bf16 %v3071_v21, %v3070_v19  ;;  %v1936_v29 = vadd.f32 %v8572_v61, %v1935_v24  ;;  %v3076_v39 = vmax.f32 %v1944_v32, 0.0 }
 0x135   :  { %v7442_v27 = vpop.f32.mrf.mxu0 }
 0x136   :  { %v1947_v30 = vadd.f32 %v7442_v27, %v8572_v61  ;;  %7763 = vmatprep.mubr.msk.bf16.mxu1 %vm3515_vm4, %v3370_v25  ;;  %v3074_v37 = vmax.f32 %v1936_v29, 0.0 }
 0x137   :  { %v1938_v33 = vpop.f32.mrf.mxu0  ;;  %7764 = vmatmul.mubr.msk.bf16.gmra.mxu1 %vm3515_vm4, %v3371_v26 }
 0x138   :  { %v1939_v34 = vadd.f32 %v8572_v61, %v1938_v33  ;;  %v3077_v35 = vmax.f32 %v1947_v30, 0.0 }
 0x139   :  { %v7445_v36 = vpop.f32.mrf.mxu0  ;;  %7540 = vmatmul.mubr.msk.bf16.gmra.mxu0 %vm1199_vm2, %v8203_v28 }
 0x13a   :  { %v3075_v38 = vmax.f32 %v1939_v34, 0.0  ;;  %7543 = vmatprep.mubr.msk.bf16.mxu0 %vm1199_vm2, %v8204_v31  ;;  %v3373_v42 = vpack.c.bf16 %v3077_v35, %v3076_v39  ;;  %v1960_v48 = vadd.f32 %v7445_v36, %v8572_v61  ;;  %v8211_v31 = vld [vmem:[%s10601_s0 + $0x2a8] sm:$0xff]   ;;  %v8212_v34 = vld [vmem:[%s10601_s0 + $0x2b0] sm:$0xff]  }
 0x13b   :  { %v1951_v40 = vpop.f32.mrf.mxu0 }
 0x13c   :  { %v3372_v41 = vpack.c.bf16 %v3075_v38, %v3074_v37  ;;  %v1952_v20 = vadd.f32 %v8572_v61, %v1951_v40  ;;  %v3080_v55 = vmax.f32 %v1960_v48, 0.0 }
 0x13d   :  { %v7446_v43 = vpop.f32.mrf.mxu0 }
 0x13e   :  { %v1963_v46 = vadd.f32 %v7446_v43, %v8572_v61  ;;  %7767 = vmatprep.mubr.msk.bf16.mxu1 %vm3515_vm4, %v3372_v41  ;;  %v3078_v53 = vmax.f32 %v1952_v20, 0.0 }
 0x13f   :  { %v1954_v49 = vpop.f32.mrf.mxu0  ;;  %7768 = vmatmul.mubr.msk.bf16.gmra.mxu1 %vm3515_vm4, %v3373_v42 }
 0x140   :  { %v1955_v50 = vadd.f32 %v8572_v61, %v1954_v49  ;;  %v3081_v51 = vmax.f32 %v1963_v46, 0.0 }
 0x141   :  { %v7449_v52 = vpop.f32.mrf.mxu0  ;;  %7544 = vmatmul.mubr.msk.bf16.gmra.mxu0 %vm1199_vm2, %v8205_v44 }
 0x142   :  { %v3079_v54 = vmax.f32 %v1955_v50, 0.0  ;;  %7547 = vmatprep.mubr.msk.bf16.mxu0 %vm1199_vm2, %v8206_v47  ;;  %v3375_v58 = vpack.c.bf16 %v3081_v51, %v3080_v55  ;;  %v1976_v1 = vadd.f32 %v7449_v52, %v8572_v61  ;;  %v8213_v47 = vld [vmem:[%s10601_s0 + $0x2b8] sm:$0xff]   ;;  %v8214_v50 = vld [vmem:[%s10601_s0 + $0x2c0] sm:$0xff]  }
 0x143   :  { %v1967_v56 = vpop.f32.mrf.mxu0 }
 0x144   :  { %v3374_v57 = vpack.c.bf16 %v3079_v54, %v3078_v53  ;;  %v1968_v62 = vadd.f32 %v8572_v61, %v1967_v56  ;;  %v3084_v8 = vmax.f32 %v1976_v1, 0.0  ;;  %v8215_v1 = vld [vmem:[%s10601_s0 + $0x2c8] sm:$0xff]  }
 0x145   :  { %v7450_v59 = vpop.f32.mrf.mxu0 }
 0x146   :  { %v1979_v63 = vadd.f32 %v7450_v59, %v8572_v61  ;;  %7771 = vmatprep.mubr.msk.bf16.mxu1 %vm3515_vm4, %v3374_v57  ;;  %v3082_v6 = vmax.f32 %v1968_v62, 0.0 }
 0x147   :  { %v1970_v2 = vpop.f32.mrf.mxu0  ;;  %7772 = vmatmul.mubr.msk.bf16.gmra.mxu1 %vm3515_vm4, %v3375_v58 }
 0x148   :  { %v1971_v3 = vadd.f32 %v8572_v61, %v1970_v2  ;;  %v3085_v4 = vmax.f32 %v1979_v63, 0.0 }
 0x149   :  { %v7453_v5 = vpop.f32.mrf.mxu0  ;;  %7548 = vmatmul.mubr.msk.bf16.gmra.mxu0 %vm1199_vm2, %v8207_v60 }
 0x14a   :  { %v3083_v7 = vmax.f32 %v1971_v3, 0.0  ;;  %7551 = vmatprep.mubr.msk.bf16.mxu0 %vm1199_vm2, %v8208_v0  ;;  %v3377_v11 = vpack.c.bf16 %v3085_v4, %v3084_v8  ;;  %v1992_v17 = vadd.f32 %v7453_v5, %v8572_v61  ;;  %v4382_v0 = vsel %vm3570_vm3, %v8741_v45, 0  ;;  %v8216_v4 = vld [vmem:[%s10601_s0 + $0x2d0] sm:$0xff]   ;;  %v8876_v5 = vld [vmem:[%s10602_s2 + $0x8] sm:$0x3] }
 0x14b   :  { %v1983_v9 = vpop.f32.mrf.mxu0 }
 0x14c   :  { %v3376_v10 = vpack.c.bf16 %v3083_v7, %v3082_v6  ;;  %v1984_v14 = vadd.f32 %v8572_v61, %v1983_v9  ;;  %v3088_v26 = vmax.f32 %v1992_v17, 0.0  ;;  %v8217_v17 = vld [vmem:[%s10601_s0 + $0x2d8] sm:$0xff]  }
 0x14d   :  { %v7454_v12 = vpop.f32.mrf.mxu0 }
 0x14e   :  { %v1995_v15 = vadd.f32 %v7454_v12, %v8572_v61  ;;  %7775 = vmatprep.mubr.msk.bf16.mxu1 %vm3515_vm4, %v3376_v10  ;;  %v3086_v24 = vmax.f32 %v1984_v14, 0.0 }
 0x14f   :  { %v1986_v18 = vpop.f32.mrf.mxu0  ;;  %7776 = vmatmul.mubr.msk.bf16.gmra.mxu1 %vm3515_vm4, %v3377_v11 }
 0x150   :  { %v1987_v19 = vadd.f32 %v8572_v61, %v1986_v18  ;;  %v3089_v21 = vmax.f32 %v1995_v15, 0.0 }
 0x151   :  { %v7457_v23 = vpop.f32.mrf.mxu0  ;;  %7552 = vmatmul.mubr.msk.bf16.gmra.mxu0 %vm1199_vm2, %v8209_v13 }
 0x152   :  { %v3087_v25 = vmax.f32 %v1987_v19, 0.0  ;;  %7555 = vmatprep.mubr.msk.bf16.mxu0 %vm1199_vm2, %v8210_v16  ;;  %v3379_v29 = vpack.c.bf16 %v3089_v21, %v3088_v26  ;;  %v2008_v35 = vadd.f32 %v7457_v23, %v8572_v61  ;;  %v8218_v21 = vld [vmem:[%s10601_s0 + $0x2e0] sm:$0xff]  }
 0x153   :  { %v1999_v27 = vpop.f32.mrf.mxu0 }
 0x154   :  { %v3378_v28 = vpack.c.bf16 %v3087_v25, %v3086_v24  ;;  %v2000_v32 = vadd.f32 %v8572_v61, %v1999_v27  ;;  %v3092_v42 = vmax.f32 %v2008_v35, 0.0  ;;  %v8219_v35 = vld [vmem:[%s10601_s0 + $0x2e8] sm:$0xff]  }
 0x155   :  { %v7458_v30 = vpop.f32.mrf.mxu0 }
 0x156   :  { %v2011_v33 = vadd.f32 %v7458_v30, %v8572_v61  ;;  %7779 = vmatprep.mubr.msk.bf16.mxu1 %vm3515_vm4, %v3378_v28  ;;  %v3090_v40 = vmax.f32 %v2000_v32, 0.0 }
 0x157   :  { %v2002_v36 = vpop.f32.mrf.mxu0  ;;  %7780 = vmatmul.mubr.msk.bf16.gmra.mxu1 %vm3515_vm4, %v3379_v29 }
 0x158   :  { %v2003_v37 = vadd.f32 %v8572_v61, %v2002_v36  ;;  %v3093_v38 = vmax.f32 %v2011_v33, 0.0 }
 0x159   :  { %v7461_v39 = vpop.f32.mrf.mxu0  ;;  %7556 = vmatmul.mubr.msk.bf16.gmra.mxu0 %vm1199_vm2, %v8211_v31 }
 0x15a   :  { %v3091_v41 = vmax.f32 %v2003_v37, 0.0  ;;  %7559 = vmatprep.mubr.msk.bf16.mxu0 %vm1199_vm2, %v8212_v34  ;;  %v3381_v20 = vpack.c.bf16 %v3093_v38, %v3092_v42  ;;  %v2024_v51 = vadd.f32 %v7461_v39, %v8572_v61  ;;  %v8220_v38 = vld [vmem:[%s10601_s0 + $0x2f0] sm:$0xff]  }
 0x15b   :  { %v2015_v43 = vpop.f32.mrf.mxu0 }
 0x15c   :  { %v3380_v44 = vpack.c.bf16 %v3091_v41, %v3090_v40  ;;  %v2016_v48 = vadd.f32 %v8572_v61, %v2015_v43  ;;  %v3096_v58 = vmax.f32 %v2024_v51, 0.0  ;;  %v8221_v51 = vld [vmem:[%s10601_s0 + $0x2f8] sm:$0xff]  }
 0x15d   :  { %v7462_v46 = vpop.f32.mrf.mxu0 }
 0x15e   :  { %v2027_v49 = vadd.f32 %v7462_v46, %v8572_v61  ;;  %7783 = vmatprep.mubr.msk.bf16.mxu1 %vm3515_vm4, %v3380_v44  ;;  %v3094_v56 = vmax.f32 %v2016_v48, 0.0 }
 0x15f   :  { %v2018_v52 = vpop.f32.mrf.mxu0  ;;  %7784 = vmatmul.mubr.msk.bf16.gmra.mxu1 %vm3515_vm4, %v3381_v20 }
 0x160   :  { %v2019_v53 = vadd.f32 %v8572_v61, %v2018_v52  ;;  %v3097_v54 = vmax.f32 %v2027_v49, 0.0 }
 0x161   :  { %v7465_v55 = vpop.f32.mrf.mxu0  ;;  %7560 = vmatmul.mubr.msk.bf16.gmra.mxu0 %vm1199_vm2, %v8213_v47 }
 0x162   :  { %v3095_v57 = vmax.f32 %v2019_v53, 0.0  ;;  %7563 = vmatprep.mubr.msk.bf16.mxu0 %vm1199_vm2, %v8214_v50  ;;  %v3383_v62 = vpack.c.bf16 %v3097_v54, %v3096_v58  ;;  %v2040_v45 = vadd.f32 %v7465_v55, %v8572_v61  ;;  %v8222_v54 = vld [vmem:[%s10601_s0 + $0x300] sm:$0xff]  }
 0x163   :  { %v2031_v59 = vpop.f32.mrf.mxu0 }
 0x164   :  { %v3382_v60 = vpack.c.bf16 %v3095_v57, %v3094_v56  ;;  %v2032_v2 = vadd.f32 %v8572_v61, %v2031_v59  ;;  %v3100_v12 = vmax.f32 %v2040_v45, 0.0 }
 0x165   :  { %v7466_v63 = vpop.f32.mrf.mxu0 }
 0x166   :  { %v2043_v3 = vadd.f32 %v7466_v63, %v8572_v61  ;;  %7789 = vmatprep.mubr.msk.bf16.mxu1 %vm3515_vm4, %v3382_v60  ;;  %v3098_v10 = vmax.f32 %v2032_v2, 0.0 }
 0x167   :  { %v2034_v6 = vpop.f32.mrf.mxu0  ;;  %7790 = vmatmul.mubr.msk.bf16.vlgmr.msra.gmra.mxu1 %vm3515_vm4, %v3383_v62 }
 0x168   :  { %v2035_v7 = vadd.f32 %v8572_v61, %v2034_v6  ;;  %7826 = vmatpush3.bf16.msra.mxu1 %v4382_v0  ;;  %v3101_v8 = vmax.f32 %v2043_v3, 0.0 }
 0x169   :  { %v7469_v9 = vpop.f32.mrf.mxu0  ;;  %7564 = vmatmul.mubr.msk.bf16.gmra.mxu0 %vm1199_vm2, %v8215_v1  ;;  %8117 = vmatprep.subr.msk.bf16.mxu1 %vm3570_vm3, %v8876_v5 }
 0x16a   :  { %v3099_v11 = vmax.f32 %v2035_v7, 0.0  ;;  %7567 = vmatprep.mubr.msk.bf16.mxu0 %vm1199_vm2, %v8216_v4  ;;  %v3385_v15 = vpack.c.bf16 %v3101_v8, %v3100_v12  ;;  %v2056_v23 = vadd.f32 %v7469_v9, %v8572_v61  ;;  %v8223_v4 = vld [vmem:[%s10601_s0 + $0x308] sm:$0xff]   ;;  %v8224_v7 = vld [vmem:[%s10601_s0 + $0x310] sm:$0xff]  }
 0x16b   :  { %v2047_v13 = vpop.f32.mrf.mxu0 }
 0x16c   :  { %v3384_v14 = vpack.c.bf16 %v3099_v11, %v3098_v10  ;;  %v2048_v18 = vadd.f32 %v8572_v61, %v2047_v13  ;;  %v3104_v30 = vmax.f32 %v2056_v23, 0.0 }
 0x16d   :  { %v7470_v16 = vpop.f32.mrf.mxu0 }
 0x16e   :  { %v2059_v19 = vadd.f32 %v7470_v16, %v8572_v61  ;;  %7793 = vmatprep.mubr.msk.bf16.mxu1 %vm3515_vm4, %v3384_v14  ;;  %v3102_v28 = vmax.f32 %v2048_v18, 0.0 }
 0x16f   :  { %v2050_v24 = vpop.f32.mrf.mxu0  ;;  %7794 = vmatmul.mubr.msk.bf16.gmra.mxu1 %vm3515_vm4, %v3385_v15 }
 0x170   :  { %v2051_v25 = vadd.f32 %v8572_v61, %v2050_v24  ;;  %v3105_v26 = vmax.f32 %v2059_v19, 0.0 }
 0x171   :  { %v7473_v27 = vpop.f32.mrf.mxu0  ;;  %7568 = vmatmul.mubr.msk.bf16.gmra.mxu0 %vm1199_vm2, %v8217_v17 }
 0x172   :  { %v3103_v29 = vmax.f32 %v2051_v25, 0.0  ;;  %7571 = vmatprep.mubr.msk.bf16.mxu0 %vm1199_vm2, %v8218_v21  ;;  %v3387_v33 = vpack.c.bf16 %v3105_v26, %v3104_v30  ;;  %v2072_v39 = vadd.f32 %v7473_v27, %v8572_v61  ;;  %v8225_v21 = vld [vmem:[%s10601_s0 + $0x318] sm:$0xff]   ;;  %v8226_v25 = vld [vmem:[%s10601_s0 + $0x320] sm:$0xff]  }
 0x173   :  { %v2063_v31 = vpop.f32.mrf.mxu0 }
 0x174   :  { %v3386_v32 = vpack.c.bf16 %v3103_v29, %v3102_v28  ;;  %v2064_v36 = vadd.f32 %v8572_v61, %v2063_v31  ;;  %v3108_v46 = vmax.f32 %v2072_v39, 0.0 }
 0x175   :  { %v7474_v34 = vpop.f32.mrf.mxu0 }
 0x176   :  { %v2075_v37 = vadd.f32 %v7474_v34, %v8572_v61  ;;  %7797 = vmatprep.mubr.msk.bf16.mxu1 %vm3515_vm4, %v3386_v32  ;;  %v3106_v44 = vmax.f32 %v2064_v36, 0.0 }
 0x177   :  { %v2066_v40 = vpop.f32.mrf.mxu0  ;;  %7798 = vmatmul.mubr.msk.bf16.gmra.mxu1 %vm3515_vm4, %v3387_v33 }
 0x178   :  { %v2067_v41 = vadd.f32 %v8572_v61, %v2066_v40  ;;  %v3109_v42 = vmax.f32 %v2075_v37, 0.0 }
 0x179   :  { %v7477_v43 = vpop.f32.mrf.mxu0  ;;  %7572 = vmatmul.mubr.msk.bf16.gmra.mxu0 %vm1199_vm2, %v8219_v35 }
 0x17a   :  { %v3107_v20 = vmax.f32 %v2067_v41, 0.0  ;;  %7575 = vmatprep.mubr.msk.bf16.mxu0 %vm1199_vm2, %v8220_v38  ;;  %v3389_v49 = vpack.c.bf16 %v3109_v42, %v3108_v46  ;;  %v2088_v55 = vadd.f32 %v7477_v43, %v8572_v61  ;;  %v8227_v38 = vld [vmem:[%s10601_s0 + $0x328] sm:$0xff]   ;;  %v8228_v41 = vld [vmem:[%s10601_s0 + $0x330] sm:$0xff]  }
 0x17b   :  { %v2079_v47 = vpop.f32.mrf.mxu0 }
 0x17c   :  { %v3388_v48 = vpack.c.bf16 %v3107_v20, %v3106_v44  ;;  %v2080_v52 = vadd.f32 %v8572_v61, %v2079_v47  ;;  %v3112_v63 = vmax.f32 %v2088_v55, 0.0 }
 0x17d   :  { %v7478_v50 = vpop.f32.mrf.mxu0 }
 0x17e   :  { %v2091_v53 = vadd.f32 %v7478_v50, %v8572_v61  ;;  %7801 = vmatprep.mubr.msk.bf16.mxu1 %vm3515_vm4, %v3388_v48  ;;  %v3110_v60 = vmax.f32 %v2080_v52, 0.0 }
 0x17f   :  { %v2082_v56 = vpop.f32.mrf.mxu0  ;;  %7802 = vmatmul.mubr.msk.bf16.gmra.mxu1 %vm3515_vm4, %v3389_v49 }
 0x180   :  { %v2083_v57 = vadd.f32 %v8572_v61, %v2082_v56  ;;  %v3113_v58 = vmax.f32 %v2091_v53, 0.0 }
 0x181   :  { %v7481_v59 = vpop.f32.mrf.mxu0  ;;  %7576 = vmatmul.mubr.msk.bf16.gmra.mxu0 %vm1199_vm2, %v8221_v51 }
 0x182   :  { %v3111_v62 = vmax.f32 %v2083_v57, 0.0  ;;  %7579 = vmatprep.mubr.msk.bf16.mxu0 %vm1199_vm2, %v8222_v54  ;;  %v3391_v2 = vpack.c.bf16 %v3113_v58, %v3112_v63  ;;  %v2104_v8 = vadd.f32 %v7481_v59, %v8572_v61  ;;  %v8229_v58 = vld [vmem:[%s10601_s0 + $0x338] sm:$0xff]  }
 0x183   :  { %v2095_v0 = vpop.f32.mrf.mxu0 }
 0x184   :  { %v3390_v1 = vpack.c.bf16 %v3111_v62, %v3110_v60  ;;  %v2096_v45 = vadd.f32 %v8572_v61, %v2095_v0  ;;  %v3116_v15 = vmax.f32 %v2104_v8, 0.0  ;;  %v8230_v62 = vld [vmem:[%s10601_s0 + $0x340] sm:$0xff]  }
 0x185   :  { %v7482_v3 = vpop.f32.mrf.mxu0 }
 0x186   :  { %v2107_v6 = vadd.f32 %v7482_v3, %v8572_v61  ;;  %7805 = vmatprep.mubr.msk.bf16.mxu1 %vm3515_vm4, %v3390_v1  ;;  %v3114_v13 = vmax.f32 %v2096_v45, 0.0 }
 0x187   :  { %v2098_v9 = vpop.f32.mrf.mxu0  ;;  %7806 = vmatmul.mubr.msk.bf16.gmra.mxu1 %vm3515_vm4, %v3391_v2 }
 0x188   :  { %v2099_v10 = vadd.f32 %v8572_v61, %v2098_v9  ;;  %v3117_v11 = vmax.f32 %v2107_v6, 0.0 }
 0x189   :  { %v7485_v12 = vpop.f32.mrf.mxu0  ;;  %7580 = vmatmul.mubr.msk.bf16.gmra.mxu0 %vm1199_vm2, %v8223_v4 }
 0x18a   :  { %v3115_v14 = vmax.f32 %v2099_v10, 0.0  ;;  %7583 = vmatprep.mubr.msk.bf16.mxu0 %vm1199_vm2, %v8224_v7  ;;  %v3393_v18 = vpack.c.bf16 %v3117_v11, %v3116_v15  ;;  %v2120_v26 = vadd.f32 %v7485_v12, %v8572_v61  ;;  %v8231_v15 = vld [vmem:[%s10601_s0 + $0x348] sm:$0xff]  }
 0x18b   :  { %v2111_v16 = vpop.f32.mrf.mxu0 }
 0x18c   :  { %v3392_v17 = vpack.c.bf16 %v3115_v14, %v3114_v13  ;;  %v2112_v23 = vadd.f32 %v8572_v61, %v2111_v16  ;;  %v3120_v33 = vmax.f32 %v2120_v26, 0.0 }
 0x18d   :  { %v7486_v19 = vpop.f32.mrf.mxu0 }
 0x18e   :  { %v2123_v24 = vadd.f32 %v7486_v19, %v8572_v61  ;;  %7809 = vmatprep.mubr.msk.bf16.mxu1 %vm3515_vm4, %v3392_v17  ;;  %v3118_v31 = vmax.f32 %v2112_v23, 0.0 }
 0x18f   :  { %v2114_v27 = vpop.f32.mrf.mxu0  ;;  %7810 = vmatmul.mubr.msk.bf16.gmra.mxu1 %vm3515_vm4, %v3393_v18  ;;  %v8232_v18 = vld [vmem:[%s10601_s0 + $0x350] sm:$0xff]  }
 0x190   :  { %v2115_v28 = vadd.f32 %v8572_v61, %v2114_v27  ;;  %v3121_v29 = vmax.f32 %v2123_v24, 0.0  ;;  %v8961_v61 = vld [vmem:[%s10603_s5] ss:$0 sm:$0xff] }
 0x191   :  { %v7489_v30 = vpop.f32.mrf.mxu0  ;;  %7584 = vmatmul.mubr.msk.bf16.gmra.mxu0 %vm1199_vm2, %v8225_v21 }
 0x192   :  { %v3119_v32 = vmax.f32 %v2115_v28, 0.0  ;;  %7587 = vmatprep.mubr.msk.bf16.mxu0 %vm1199_vm2, %v8226_v25  ;;  %v3395_v36 = vpack.c.bf16 %v3121_v29, %v3120_v33  ;;  %v2136_v42 = vadd.f32 %v8961_v61, %v7489_v30 }
 0x193   :  { %v2127_v34 = vpop.f32.mrf.mxu0 }
 0x194   :  { %v3394_v35 = vpack.c.bf16 %v3119_v32, %v3118_v31  ;;  %v2128_v39 = vadd.f32 %v8961_v61, %v2127_v34  ;;  %v3124_v51 = vmax.f32 %v2136_v42, 0.0  ;;  %v9040_v42 = vld [vmem:[%s10602_s2 + $0xa] sm:$0x3] }
 0x195   :  { %v7490_v37 = vpop.f32.mrf.mxu0 }
 0x196   :  { %v2139_v40 = vadd.f32 %v8961_v61, %v7490_v37  ;;  %7813 = vmatprep.mubr.msk.bf16.mxu1 %vm3515_vm4, %v3394_v35  ;;  %v3122_v49 = vmax.f32 %v2128_v39, 0.0  ;;  %v4652_v37 = vsel %vm3570_vm3, %v8876_v5, 0 }
 0x197   :  { %v2130_v43 = vpop.f32.mrf.mxu0  ;;  %v8970_v44 = vpop.f32.mrf.mxu1  ;;  %7814 = vmatmul.mubr.msk.bf16.gmra.mxu1 %vm3515_vm4, %v3395_v36 }
 0x198   :  { %v2131_v20 = vadd.f32 %v8961_v61, %v2130_v43  ;;  %v3125_v46 = vmax.f32 %v2139_v40, 0.0 }
 0x199   :  { %v7493_v47 = vpop.f32.mrf.mxu0  ;;  %7588 = vmatmul.mubr.msk.bf16.gmra.mxu0 %vm1199_vm2, %v8227_v38  ;;  %v8975_v48 = vpop.f32.mrf.mxu1  ;;  %v8233_v38 = vld [vmem:[%s10601_s0 + $0x358] sm:$0xff]  }
 0x19a   :  { %v3123_v50 = vmax.f32 %v2131_v20, 0.0  ;;  %7591 = vmatprep.mubr.msk.bf16.mxu0 %vm1199_vm2, %v8228_v41  ;;  %v3397_v55 = vpack.c.bf16 %v3125_v46, %v3124_v51  ;;  %v2152_v63 = vadd.f32 %v8961_v61, %v7493_v47  ;;  %v8234_v41 = vld [vmem:[%s10601_s0 + $0x360] sm:$0xff]  }
 0x19b   :  { %v2143_v52 = vpop.f32.mrf.mxu0  ;;  %v8978_v53 = vpop.f32.mrf.mxu1 }
 0x19c   :  { %v3396_v54 = vpack.c.bf16 %v3123_v50, %v3122_v49  ;;  %v2144_v59 = vadd.f32 %v8961_v61, %v2143_v52  ;;  %v3128_v8 = vmax.f32 %v2152_v63, 0.0  ;;  %v8235_v63 = vld [vmem:[%s10601_s0 + $0x368] sm:$0xff]  }
 0x19d   :  { %v7494_v56 = vpop.f32.mrf.mxu0  ;;  %v8980_v57 = vpop.f32.mrf.mxu1 }
 0x19e   :  { %v2155_v60 = vadd.f32 %v8961_v61, %v7494_v56  ;;  %7817 = vmatprep.mubr.msk.bf16.mxu1 %vm3515_vm4, %v3396_v54  ;;  %v3126_v6 = vmax.f32 %v2144_v59, 0.0 }
 0x19f   :  { %v2146_v0 = vpop.f32.mrf.mxu0  ;;  %v8992_v1 = vpop.f32.mrf.mxu1  ;;  %7818 = vmatmul.mubr.msk.bf16.gmra.mxu1 %vm3515_vm4, %v3397_v55 }
 0x1a0   :  { %v2147_v2 = vadd.f32 %v8961_v61, %v2146_v0  ;;  %v3129_v3 = vmax.f32 %v2155_v60, 0.0 }
 0x1a1   :  { %v7497_v4 = vpop.f32.mrf.mxu0  ;;  %7592 = vmatmul.mubr.msk.bf16.gmra.mxu0 %vm1199_vm2, %v8229_v58  ;;  %v8997_v45 = vpop.f32.mrf.mxu1 }
 0x1a2   :  { %v3127_v7 = vmax.f32 %v2147_v2, 0.0  ;;  %7595 = vmatprep.mubr.msk.bf16.mxu0 %vm1199_vm2, %v8230_v62  ;;  %v3399_v12 = vpack.c.bf16 %v3129_v3, %v3128_v8  ;;  %v2168_v19 = vadd.f32 %v8961_v61, %v7497_v4  ;;  %v8236_v3 = vld [vmem:[%s10601_s0 + $0x370] sm:$0xff]  }
 0x1a3   :  { %v2159_v9 = vpop.f32.mrf.mxu0  ;;  %v9000_v10 = vpop.f32.mrf.mxu1 }
 0x1a4   :  { %v3398_v11 = vpack.c.bf16 %v3127_v7, %v3126_v6  ;;  %v2160_v16 = vadd.f32 %v8961_v61, %v2159_v9  ;;  %v3132_v30 = vmax.f32 %v2168_v19, 0.0 }
 0x1a5   :  { %v7498_v13 = vpop.f32.mrf.mxu0  ;;  %v9002_v14 = vpop.f32.mrf.mxu1 }
 0x1a6   :  { %v2171_v17 = vadd.f32 %v8961_v61, %v7498_v13  ;;  %7821 = vmatprep.mubr.msk.bf16.mxu1 %vm3515_vm4, %v3398_v11  ;;  %v3130_v28 = vmax.f32 %v2160_v16, 0.0 }
 0x1a7   :  { %v2162_v21 = vpop.f32.mrf.mxu0  ;;  %v9014_v23 = vpop.f32.mrf.mxu1  ;;  %7822 = vmatmul.mubr.msk.bf16.gmra.mxu1 %vm3515_vm4, %v3399_v12 }
 0x1a8   :  { %v2163_v24 = vadd.f32 %v8961_v61, %v2162_v21  ;;  %v3133_v25 = vmax.f32 %v2171_v17, 0.0 }
 0x1a9   :  { %v7501_v26 = vpop.f32.mrf.mxu0  ;;  %7596 = vmatmul.mubr.msk.bf16.gmra.mxu0 %vm1199_vm2, %v8231_v15  ;;  %v9019_v27 = vpop.f32.mrf.mxu1 }
 0x1aa   :  { %v3131_v29 = vmax.f32 %v2163_v24, 0.0  ;;  %7599 = vmatprep.mubr.msk.bf16.mxu0 %vm1199_vm2, %v8232_v18  ;;  %v3401_v34 = vpack.c.bf16 %v3133_v25, %v3132_v30  ;;  %v2184_v5 = vadd.f32 %v8961_v61, %v7501_v26  ;;  %v8237_v26 = vld [vmem:[%s10601_s0 + $0x378] sm:$0xff]   ;;  %v8238_v30 = vld [vmem:[%s10601_s0 + $0x380] sm:$0xff]  }
 0x1ab   :  { %v2175_v31 = vpop.f32.mrf.mxu0  ;;  %v9022_v32 = vpop.f32.mrf.mxu1 }
 0x1ac   :  { %v3400_v33 = vpack.c.bf16 %v3131_v29, %v3130_v28  ;;  %v2176_v39 = vadd.f32 %v8961_v61, %v2175_v31  ;;  %v3136_v54 = vmax.f32 %v2184_v5, 0.0 }
 0x1ad   :  { %v7502_v35 = vpop.f32.mrf.mxu0  ;;  %v9024_v36 = vpop.f32.mrf.mxu1 }
 0x1ae   :  { %v2187_v40 = vadd.f32 %v8961_v61, %v7502_v35  ;;  %7827 = vmatprep.mubr.msk.bf16.mxu1 %vm3515_vm4, %v3400_v33  ;;  %v3134_v51 = vmax.f32 %v2176_v39, 0.0 }
 0x1af   :  { %v2178_v43 = vpop.f32.mrf.mxu0  ;;  %v9043_v20 = vpop.f32.mrf.mxu1  ;;  %7828 = vmatmul.mubr.msk.bf16.vlgmr.msra.gmra.mxu1 %vm3515_vm4, %v3401_v34 }
 0x1b0   :  { %v2179_v46 = vadd.f32 %v8961_v61, %v2178_v43  ;;  %7864 = vmatpush3.bf16.msra.mxu1 %v4652_v37  ;;  %v3137_v47 = vmax.f32 %v2187_v40, 0.0 }
 0x1b1   :  { %v7505_v49 = vpop.f32.mrf.mxu0  ;;  %7600 = vmatmul.mubr.msk.bf16.gmra.mxu0 %vm1199_vm2, %v8233_v38  ;;  %v9048_v50 = vpop.f32.mrf.mxu1  ;;  %8118 = vmatprep.subr.msk.bf16.mxu1 %vm3570_vm3, %v9040_v42 }
 0x1b2   :  { %v3135_v52 = vmax.f32 %v2179_v46, 0.0  ;;  %7603 = vmatprep.mubr.msk.bf16.mxu0 %vm1199_vm2, %v8234_v41  ;;  %v3403_v59 = vpack.c.bf16 %v3137_v47, %v3136_v54  ;;  %v2200_v4 = vadd.f32 %v8961_v61, %v7505_v49  ;;  %v8239_v54 = vld [vmem:[%s10601_s0 + $0x388] sm:$0xff]  }
 0x1b3   :  { %v2191_v55 = vpop.f32.mrf.mxu0  ;;  %v9053_v56 = vpop.f32.mrf.mxu1 }
 0x1b4   :  { %v3402_v58 = vpack.c.bf16 %v3135_v52, %v3134_v51  ;;  %v2192_v0 = vadd.f32 %v8961_v61, %v2191_v55  ;;  %v3140_v16 = vmax.f32 %v2200_v4, 0.0 }
 0x1b5   :  { %v7506_v60 = vpop.f32.mrf.mxu0  ;;  %v9055_v62 = vpop.f32.mrf.mxu1 }
 0x1b6   :  { %v2203_v2 = vadd.f32 %v8961_v61, %v7506_v60  ;;  %7831 = vmatprep.mubr.msk.bf16.mxu1 %vm3515_vm4, %v3402_v58  ;;  %v3138_v13 = vmax.f32 %v2192_v0, 0.0 }
 0x1b7   :  { %v2194_v6 = vpop.f32.mrf.mxu0  ;;  %v9067_v7 = vpop.f32.mrf.mxu1  ;;  %7832 = vmatmul.mubr.msk.bf16.gmra.mxu1 %vm3515_vm4, %v3403_v59  ;;  %v8240_v59 = vld [vmem:[%s10601_s0 + $0x390] sm:$0xff]  }
 0x1b8   :  { %v2195_v8 = vadd.f32 %v8961_v61, %v2194_v6  ;;  %v3141_v9 = vmax.f32 %v2203_v2, 0.0 }
 0x1b9   :  { %v7509_v11 = vpop.f32.mrf.mxu0  ;;  %7604 = vmatmul.mubr.msk.bf16.gmra.mxu0 %vm1199_vm2, %v8235_v63  ;;  %v9072_v12 = vpop.f32.mrf.mxu1 }
 0x1ba   :  { %v3139_v15 = vmax.f32 %v2195_v8, 0.0  ;;  %7607 = vmatprep.mubr.msk.bf16.mxu0 %vm1199_vm2, %v8236_v3  ;;  %v3405_v21 = vpack.c.bf16 %v3141_v9, %v3140_v16  ;;  %v2216_v31 = vadd.f32 %v8961_v61, %v7509_v11 }
 0x1bb   :  { %v2207_v17 = vpop.f32.mrf.mxu0  ;;  %v9075_v18 = vpop.f32.mrf.mxu1 }
 0x1bc   :  { %v3404_v19 = vpack.c.bf16 %v3139_v15, %v3138_v13  ;;  %v2208_v28 = vadd.f32 %v8961_v61, %v2207_v17  ;;  %v3144_v5 = vmax.f32 %v2216_v31, 0.0 }
 0x1bd   :  { %v7510_v24 = vpop.f32.mrf.mxu0  ;;  %v9077_v25 = vpop.f32.mrf.mxu1 }
 0x1be   :  { %v2219_v29 = vadd.f32 %v8961_v61, %v7510_v24  ;;  %7835 = vmatprep.mubr.msk.bf16.mxu1 %vm3515_vm4, %v3404_v19  ;;  %v3142_v40 = vmax.f32 %v2208_v28, 0.0  ;;  %v8241_v24 = vld [vmem:[%s10601_s0 + $0x398] sm:$0xff]  }
 0x1bf   :  { %v2210_v33 = vpop.f32.mrf.mxu0  ;;  %v9089_v34 = vpop.f32.mrf.mxu1  ;;  %7836 = vmatmul.mubr.msk.bf16.gmra.mxu1 %vm3515_vm4, %v3405_v21 }
 0x1c0   :  { %v2211_v35 = vadd.f32 %v8961_v61, %v2210_v33  ;;  %v3145_v37 = vmax.f32 %v2219_v29, 0.0  ;;  %v8242_v29 = vld [vmem:[%s10601_s0 + $0x3a0] sm:$0xff]  }
 0x1c1   :  { %v7513_v38 = vpop.f32.mrf.mxu0  ;;  %7608 = vmatmul.mubr.msk.bf16.gmra.mxu0 %vm1199_vm2, %v8237_v26  ;;  %v9094_v39 = vpop.f32.mrf.mxu1 }
 0x1c2   :  { %v3143_v41 = vmax.f32 %v2211_v35, 0.0  ;;  %7611 = vmatprep.mubr.msk.bf16.mxu0 %vm1199_vm2, %v8238_v30  ;;  %v3407_v49 = vpack.c.bf16 %v3145_v37, %v3144_v5  ;;  %v2232_v60 = vadd.f32 %v8961_v61, %v7513_v38 }
 0x1c3   :  { %v2223_v43 = vpop.f32.mrf.mxu0  ;;  %v9097_v46 = vpop.f32.mrf.mxu1 }
 0x1c4   :  { %v3406_v47 = vpack.c.bf16 %v3143_v41, %v3142_v40  ;;  %v2224_v55 = vadd.f32 %v8961_v61, %v2223_v43  ;;  %v3148_v11 = vmax.f32 %v2232_v60, 0.0 }
 0x1c5   :  { %v7514_v51 = vpop.f32.mrf.mxu0  ;;  %v9099_v52 = vpop.f32.mrf.mxu1 }
 0x1c6   :  { %v2235_v58 = vadd.f32 %v8961_v61, %v7514_v51  ;;  %7839 = vmatprep.mubr.msk.bf16.mxu1 %vm3515_vm4, %v3406_v47  ;;  %v3146_v8 = vmax.f32 %v2224_v55, 0.0 }
 0x1c7   :  { %v2226_v63 = vpop.f32.mrf.mxu0  ;;  %v9111_v0 = vpop.f32.mrf.mxu1  ;;  %7840 = vmatmul.mubr.msk.bf16.gmra.mxu1 %vm3515_vm4, %v3407_v49 }
 0x1c8   :  { %v2227_v2 = vadd.f32 %v8961_v61, %v2226_v63  ;;  %v3149_v3 = vmax.f32 %v2235_v58, 0.0 }
 0x1c9   :  { %v7517_v4 = vpop.f32.mrf.mxu0  ;;  %7612 = vmatmul.mubr.msk.bf16.gmra.mxu0 %vm1199_vm2, %v8239_v54  ;;  %v9116_v6 = vpop.f32.mrf.mxu1 }
 0x1ca   :  { %v3147_v9 = vmax.f32 %v2227_v2, 0.0  ;;  %7615 = vmatprep.mubr.msk.bf16.mxu0 %vm1199_vm2, %v8240_v59  ;;  %v3409_v17 = vpack.c.bf16 %v3149_v3, %v3148_v11  ;;  %v2248_v30 = vadd.f32 %v8961_v61, %v7517_v4  ;;  %v8243_v59 = vld [vmem:[%s10601_s0 + $0x3a8] sm:$0xff]   ;;  %v8244_v2 = vld [vmem:[%s10601_s0 + $0x3b0] sm:$0xff]  }
 0x1cb   :  { %v2239_v13 = vpop.f32.mrf.mxu0  ;;  %v9119_v15 = vpop.f32.mrf.mxu1 }
 0x1cc   :  { %v3408_v16 = vpack.c.bf16 %v3147_v9, %v3146_v8  ;;  %v2240_v26 = vadd.f32 %v8961_v61, %v2239_v13  ;;  %v3152_v43 = vmax.f32 %v2248_v30, 0.0 }
 0x1cd   :  { %v7518_v19 = vpop.f32.mrf.mxu0  ;;  %v9121_v21 = vpop.f32.mrf.mxu1 }
 0x1ce   :  { %v2251_v28 = vadd.f32 %v8961_v61, %v7518_v19  ;;  %7843 = vmatprep.mubr.msk.bf16.mxu1 %vm3515_vm4, %v3408_v16  ;;  %v3150_v41 = vmax.f32 %v2240_v26, 0.0 }
 0x1cf   :  { %v2242_v31 = vpop.f32.mrf.mxu0  ;;  %v9133_v33 = vpop.f32.mrf.mxu1  ;;  %7844 = vmatmul.mubr.msk.bf16.gmra.mxu1 %vm3515_vm4, %v3409_v17 }
 0x1d0   :  { %v2243_v35 = vadd.f32 %v8961_v61, %v2242_v31  ;;  %v3153_v37 = vmax.f32 %v2251_v28, 0.0 }
 0x1d1   :  { %v7521_v38 = vpop.f32.mrf.mxu0  ;;  %7616 = vmatmul.mubr.msk.bf16.gmra.mxu0 %vm1199_vm2, %v8241_v24  ;;  %v9138_v40 = vpop.f32.mrf.mxu1  ;;  %v9166_v24 = vld [vmem:[%s10605_s6] ss:$0 sm:$0xff] }
 0x1d2   :  { %v3151_v5 = vmax.f32 %v2243_v35, 0.0  ;;  %7619 = vmatprep.mubr.msk.bf16.mxu0 %vm1199_vm2, %v8242_v29  ;;  %v3411_v54 = vpack.c.bf16 %v3153_v37, %v3152_v43  ;;  %v2264_v3 = vadd.f32 %v8961_v61, %v7521_v38  ;;  %v8245_v38 = vld [vmem:[%s10601_s0 + $0x3b8] sm:$0xff]  }
 0x1d3   :  { %v2255_v47 = vpop.f32.mrf.mxu0  ;;  %v9141_v49 = vpop.f32.mrf.mxu1 }
 0x1d4   :  { %v3410_v51 = vpack.c.bf16 %v3151_v5, %v3150_v41  ;;  %v2256_v60 = vadd.f32 %v8961_v61, %v2255_v47  ;;  %v3156_v26 = vmax.f32 %v2264_v3, 0.0  ;;  %v3753_v41 = vadd.f32 %v8970_v44, %v9166_v24  ;;  %v8246_v47 = vld [vmem:[%s10601_s0 + $0x3c0] sm:$0xff]  }
 0x1d5   :  { %v7522_v55 = vpop.f32.mrf.mxu0  ;;  %v9143_v58 = vpop.f32.mrf.mxu1 }
 0x1d6   :  { %v2267_v63 = vadd.f32 %v8961_v61, %v7522_v55  ;;  %7847 = vmatprep.mubr.msk.bf16.mxu1 %vm3515_vm4, %v3410_v51  ;;  %v3154_v17 = vmax.f32 %v2256_v60, 0.0 }
 0x1d7   :  { %v2258_v4 = vpop.f32.mrf.mxu0  ;;  %v9155_v8 = vpop.f32.mrf.mxu1  ;;  %7848 = vmatmul.mubr.msk.bf16.gmra.mxu1 %vm3515_vm4, %v3411_v54 }
 0x1d8   :  { %v2259_v9 = vadd.f32 %v8961_v61, %v2258_v4  ;;  %v3157_v11 = vmax.f32 %v2267_v63, 0.0  ;;  %v3754_v4 = vadd.f32 %v8978_v53, %v9166_v24  ;;  %v8247_v53 = vld [vmem:[%s10601_s0 + $0x3c8] sm:$0xff]  }
 0x1d9   :  { %v7525_v13 = vpop.f32.mrf.mxu0  ;;  %7620 = vmatmul.mubr.msk.bf16.gmra.mxu0 %vm1199_vm2, %v8243_v59  ;;  %v9160_v16 = vpop.f32.mrf.mxu1  ;;  %v3751_v59 = vadd.f32 %v9166_v24, %v8975_v48 }
 0x1da   :  { %v3155_v19 = vmax.f32 %v2259_v9, 0.0  ;;  %7623 = vmatprep.mubr.msk.bf16.mxu0 %vm1199_vm2, %v8244_v2  ;;  %v3413_v31 = vpack.c.bf16 %v3157_v11, %v3156_v26  ;;  %v2280_v51 = vadd.f32 %v8961_v61, %v7525_v13  ;;  %v3752_v26 = vadd.f32 %v9166_v24, %v8980_v57  ;;  %v8248_v57 = vld [vmem:[%s10601_s0 + $0x3d0] sm:$0xff]  }
 0x1db   :  { %v2271_v28 = vpop.f32.mrf.mxu0  ;;  %v9168_v29 = vpop.f32.mrf.mxu1 }
 0x1dc   :  { %v3412_v30 = vpack.c.bf16 %v3155_v19, %v3154_v17  ;;  %v2272_v5 = vadd.f32 %v8961_v61, %v2271_v28  ;;  %v3160_v17 = vmax.f32 %v2280_v51, 0.0 }
 0x1dd   :  { %v7526_v35 = vpop.f32.mrf.mxu0  ;;  %v9170_v37 = vpop.f32.mrf.mxu1 }
 0x1de   :  { %v2283_v43 = vadd.f32 %v8961_v61, %v7526_v35  ;;  %7851 = vmatprep.mubr.msk.bf16.mxu1 %vm3515_vm4, %v3412_v30  ;;  %v3158_v9 = vmax.f32 %v2272_v5, 0.0 }
 0x1df   :  { %v2274_v54 = vpop.f32.mrf.mxu0  ;;  %v7753_v55 = vpop.f32.mrf.mxu1  ;;  %7852 = vmatmul.mubr.msk.bf16.gmra.mxu1 %vm3515_vm4, %v3413_v31 }
 0x1e0   :  { %v2275_v44 = vadd.f32 %v8961_v61, %v2274_v54  ;;  %v9188_v60 = vadd.f32 %v7753_v55, %v3753_v41  ;;  %v3161_v63 = vmax.f32 %v2283_v43, 0.0  ;;  %v3757_v41 = vadd.f32 %v8992_v1, %v9166_v24 }
 0x1e1   :  { %v7529_v2 = vpop.f32.mrf.mxu0  ;;  %7624 = vmatmul.mubr.msk.bf16.gmra.mxu0 %vm1199_vm2, %v8245_v38  ;;  %v3878_v3 = vpop.f32.mrf.mxu1  ;;  %v3755_v1 = vadd.f32 %v9166_v24, %v8997_v45 }
 0x1e2   :  { %v3159_v11 = vmax.f32 %v2275_v44, 0.0  ;;  %v9193_v13 = vadd.f32 %v3878_v3, %v3751_v59  ;;  %7627 = vmatprep.mubr.msk.bf16.mxu0 %vm1199_vm2, %v8246_v47  ;;  %v3415_v31 = vpack.c.bf16 %v3161_v63, %v3160_v17  ;;  %v2296_v51 = vadd.f32 %v8961_v61, %v7529_v2 }
 0x1e3   :  { %v2287_v48 = vpop.f32.mrf.mxu0  ;;  %v7754_v19 = vpop.f32.mrf.mxu1 }
 0x1e4   :  { %v3414_v28 = vpack.c.bf16 %v3159_v11, %v3158_v9  ;;  %v9198_v30 = vadd.f32 %v7754_v19, %v3754_v4  ;;  %v2288_v5 = vadd.f32 %v8961_v61, %v2287_v48  ;;  %v3758_v9 = vadd.f32 %v9000_v10, %v9166_v24  ;;  %v8249_v10 = vld [vmem:[%s10601_s0 + $0x3d8] sm:$0xff]  }
 0x1e5   :  { %v7530_v35 = vpop.f32.mrf.mxu0  ;;  %v3881_v38 = vpop.f32.mrf.mxu1  ;;  %v3164_v48 = vmax.f32 %v2296_v51, 0.0 }
 0x1e6   :  { %v2299_v43 = vadd.f32 %v8961_v61, %v7530_v35  ;;  %v9207_v47 = vadd.f32 %v3881_v38, %v3752_v26  ;;  %7855 = vmatprep.mubr.msk.bf16.mxu1 %vm3515_vm4, %v3414_v28  ;;  %v3162_v2 = vmax.f32 %v2288_v5, 0.0  ;;  %v3756_v26 = vadd.f32 %v9166_v24, %v9002_v14  ;;  %v8250_v14 = vld [vmem:[%s10601_s0 + $0x3e0] sm:$0xff]  }
 0x1e7   :  { %v2290_v54 = vpop.f32.mrf.mxu0  ;;  %v7757_v55 = vpop.f32.mrf.mxu1  ;;  %7856 = vmatmul.mubr.msk.bf16.gmra.mxu1 %vm3515_vm4, %v3415_v31 }
 0x1e8   :  { %v2291_v59 = vadd.f32 %v8961_v61, %v2290_v54  ;;  %v9218_v44 = vadd.f32 %v7757_v55, %v3757_v41  ;;  %v3165_v63 = vmax.f32 %v2299_v43, 0.0  ;;  %v3761_v41 = vadd.f32 %v9014_v23, %v9166_v24 }
 0x1e9   :  { %v7533_v3 = vpop.f32.mrf.mxu0  ;;  %7628 = vmatmul.mubr.msk.bf16.gmra.mxu0 %vm1199_vm2, %v8247_v53  ;;  %v3894_v4 = vpop.f32.mrf.mxu1  ;;  %v3759_v23 = vadd.f32 %v9166_v24, %v9019_v27 }
 0x1ea   :  { %v3163_v11 = vmax.f32 %v2291_v59, 0.0  ;;  %v9223_v17 = vadd.f32 %v3894_v4, %v3755_v1  ;;  %7631 = vmatprep.mubr.msk.bf16.mxu0 %vm1199_vm2, %v8248_v57  ;;  %v3417_v35 = vpack.c.bf16 %v3165_v63, %v3164_v48  ;;  %v2312_v51 = vadd.f32 %v8961_v61, %v7533_v3 }
 0x1eb   :  { %v2303_v45 = vpop.f32.mrf.mxu0  ;;  %v7758_v19 = vpop.f32.mrf.mxu1 }
 0x1ec   :  { %v3416_v28 = vpack.c.bf16 %v3163_v11, %v3162_v2  ;;  %v9228_v31 = vadd.f32 %v7758_v19, %v3758_v9  ;;  %v2304_v5 = vadd.f32 %v8961_v61, %v2303_v45  ;;  %v3762_v2 = vadd.f32 %v9022_v32, %v9166_v24 }
 0x1ed   :  { %v7534_v38 = vpop.f32.mrf.mxu0  ;;  %v3897_v53 = vpop.f32.mrf.mxu1  ;;  %v3168_v45 = vmax.f32 %v2312_v51, 0.0  ;;  %v4922_v32 = vsel %vm3570_vm3, %v9040_v42, 0  ;;  %v8252_v51 = vld [vmem:[%s10601_s0 + $0x3f0] sm:$0xff]   ;;  %v9278_v42 = vld [vmem:[%s10602_s2 + $0xc] sm:$0x3] }
 0x1ee   :  { %v2315_v43 = vadd.f32 %v8961_v61, %v7534_v38  ;;  %v9237_v57 = vadd.f32 %v3897_v53, %v3756_v26  ;;  %7859 = vmatprep.mubr.msk.bf16.mxu1 %vm3515_vm4, %v3416_v28  ;;  %v3166_v3 = vmax.f32 %v2304_v5, 0.0  ;;  %v3760_v26 = vadd.f32 %v9166_v24, %v9024_v36 }
 0x1ef   :  { %v2306_v54 = vpop.f32.mrf.mxu0  ;;  %v7761_v55 = vpop.f32.mrf.mxu1  ;;  %7860 = vmatmul.mubr.msk.bf16.gmra.mxu1 %vm3515_vm4, %v3417_v35  ;;  %v3765_v5 = vadd.f32 %v9043_v20, %v9166_v24 }
 0x1f0   :  { %v2307_v1 = vadd.f32 %v8961_v61, %v2306_v54  ;;  %v9248_v59 = vadd.f32 %v7761_v55, %v3761_v41  ;;  %v3169_v63 = vmax.f32 %v2315_v43, 0.0  ;;  %v8251_v41 = vld [vmem:[%s10601_s0 + $0x3e8] sm:$0xff]  }
 0x1f1   :  { %v7537_v4 = vpop.f32.mrf.mxu0  ;;  %7632 = vmatmul.mubr.msk.bf16.gmra.mxu0 %vm1199_vm2, %v8249_v10  ;;  %v3910_v9 = vpop.f32.mrf.mxu1 }
 0x1f2   :  { %v3167_v11 = vmax.f32 %v2307_v1, 0.0  ;;  %v9253_v48 = vadd.f32 %v3910_v9, %v3759_v23  ;;  %7635 = vmatprep.mubr.msk.bf16.mxu0 %vm1199_vm2, %v8250_v14  ;;  %v3419_v38 = vpack.c.bf16 %v3169_v63, %v3168_v45  ;;  %v2328_v54 = vadd.f32 %v8961_v61, %v7537_v4 }
 0x1f3   :  { %v2319_v27 = vpop.f32.mrf.mxu0  ;;  %v7762_v19 = vpop.f32.mrf.mxu1  ;;  %v3763_v23 = vadd.f32 %v9166_v24, %v9048_v50  ;;  %v3766_v4 = vadd.f32 %v9053_v56, %v9166_v24  ;;  %v8253_v56 = vld [vmem:[%s10601_s0 + $0x3f8] sm:$0xff]  }
 0x1f4   :  { %v3418_v28 = vpack.c.bf16 %v3167_v11, %v3166_v3  ;;  %v9258_v35 = vadd.f32 %v7762_v19, %v3762_v2  ;;  %v2320_v43 = vadd.f32 %v8961_v61, %v2319_v27  ;;  %v3172_v50 = vmax.f32 %v2328_v54, 0.0 }
 0x1f5   :  { %v7538_v53 = vpop.f32.mrf.mxu0  ;;  %v3913_v10 = vpop.f32.mrf.mxu1 }
 0x1f6   :  { %v2331_v36 = vadd.f32 %v8961_v61, %v7538_v53  ;;  %v9269_v14 = vadd.f32 %v3913_v10, %v3760_v26  ;;  %7865 = vmatprep.mubr.msk.bf16.mxu1 %vm3515_vm4, %v3418_v28  ;;  %v3170_v11 = vmax.f32 %v2320_v43, 0.0  ;;  %v3764_v28 = vadd.f32 %v9166_v24, %v9055_v62  ;;  %v8254_v62 = vld [vmem:[%s10601_s0 + $0x400] sm:$0xff]  }
 0x1f7   :  { %v2322_v20 = vpop.f32.mrf.mxu0  ;;  %v7765_v55 = vpop.f32.mrf.mxu1  ;;  %7866 = vmatmul.mubr.msk.bf16.vlgmr.msra.gmra.mxu1 %vm3515_vm4, %v3419_v38 }
 0x1f8   :  { %v2323_v1 = vadd.f32 %v8961_v61, %v2322_v20  ;;  %v9285_v63 = vadd.f32 %v7765_v55, %v3765_v5  ;;  %7902 = vmatpush3.bf16.msra.mxu1 %v4922_v32  ;;  %v3173_v9 = vmax.f32 %v2331_v36, 0.0  ;;  %v3769_v5 = vadd.f32 %v9067_v7, %v9166_v24 }
 0x1f9   :  { %v7541_v2 = vpop.f32.mrf.mxu0  ;;  %7636 = vmatmul.mubr.msk.bf16.gmra.mxu0 %vm1199_vm2, %v8251_v41  ;;  %v3926_v3 = vpop.f32.mrf.mxu1  ;;  %8119 = vmatprep.subr.msk.bf16.mxu1 %vm3570_vm3, %v9278_v42  ;;  %v3767_v7 = vadd.f32 %v9166_v24, %v9072_v12 }
 0x1fa   :  { %v3171_v45 = vmax.f32 %v2323_v1, 0.0  ;;  %v9292_v27 = vadd.f32 %v3926_v3, %v3763_v23  ;;  %7639 = vmatprep.mubr.msk.bf16.mxu0 %vm1199_vm2, %v8252_v51  ;;  %v3421_v10 = vpack.c.bf16 %v3173_v9, %v3172_v50  ;;  %v2344_v54 = vadd.f32 %v8961_v61, %v7541_v2 }
 0x1fb   :  { %v2335_v19 = vpop.f32.mrf.mxu0  ;;  %v7766_v26 = vpop.f32.mrf.mxu1 }
 0x1fc   :  { %v3420_v38 = vpack.c.bf16 %v3171_v45, %v3170_v11  ;;  %v9297_v53 = vadd.f32 %v7766_v26, %v3766_v4  ;;  %v2336_v43 = vadd.f32 %v8961_v61, %v2335_v19  ;;  %v3770_v11 = vadd.f32 %v9075_v18, %v9166_v24  ;;  %v8255_v18 = vld [vmem:[%s10601_s0 + $0x408] sm:$0xff]  }
 0x1fd   :  { %v7542_v32 = vpop.f32.mrf.mxu0  ;;  %v3929_v41 = vpop.f32.mrf.mxu1  ;;  %v3176_v19 = vmax.f32 %v2344_v54, 0.0 }
 0x1fe   :  { %v2347_v36 = vadd.f32 %v8961_v61, %v7542_v32  ;;  %v9306_v51 = vadd.f32 %v3929_v41, %v3764_v28  ;;  %7869 = vmatprep.mubr.msk.bf16.mxu1 %vm3515_vm4, %v3420_v38  ;;  %v3174_v2 = vmax.f32 %v2336_v43, 0.0  ;;  %v3768_v28 = vadd.f32 %v9166_v24, %v9077_v25  ;;  %v8256_v25 = vld [vmem:[%s10601_s0 + $0x410] sm:$0xff]  }
 0x1ff   :  { %v2338_v20 = vpop.f32.mrf.mxu0  ;;  %v7769_v55 = vpop.f32.mrf.mxu1  ;;  %7870 = vmatmul.mubr.msk.bf16.gmra.mxu1 %vm3515_vm4, %v3421_v10 }
 0x200   :  { %v2339_v23 = vadd.f32 %v8961_v61, %v2338_v20  ;;  %v9317_v1 = vadd.f32 %v7769_v55, %v3769_v5  ;;  %v3177_v9 = vmax.f32 %v2347_v36, 0.0  ;;  %v3773_v5 = vadd.f32 %v9089_v34, %v9166_v24 }
 0x201   :  { %v7545_v3 = vpop.f32.mrf.mxu0  ;;  %7640 = vmatmul.mubr.msk.bf16.gmra.mxu0 %vm1199_vm2, %v8253_v56  ;;  %v3942_v4 = vpop.f32.mrf.mxu1  ;;  %v3771_v34 = vadd.f32 %v9166_v24, %v9094_v39 }
 0x202   :  { %v3175_v45 = vmax.f32 %v2339_v23, 0.0  ;;  %v9322_v50 = vadd.f32 %v3942_v4, %v3767_v7  ;;  %7643 = vmatprep.mubr.msk.bf16.mxu0 %vm1199_vm2, %v8254_v62  ;;  %v3423_v32 = vpack.c.bf16 %v3177_v9, %v3176_v19  ;;  %v2360_v54 = vadd.f32 %v8961_v61, %v7545_v3 }
 0x203   :  { %v2351_v12 = vpop.f32.mrf.mxu0  ;;  %v7770_v26 = vpop.f32.mrf.mxu1 }
 0x204   :  { %v3422_v38 = vpack.c.bf16 %v3175_v45, %v3174_v2  ;;  %v9327_v10 = vadd.f32 %v7770_v26, %v3770_v11  ;;  %v2352_v43 = vadd.f32 %v8961_v61, %v2351_v12  ;;  %v3774_v2 = vadd.f32 %v9097_v46, %v9166_v24  ;;  %v8257_v46 = vld [vmem:[%s10601_s0 + $0x418] sm:$0xff]  }
 0x205   :  { %v7546_v41 = vpop.f32.mrf.mxu0  ;;  %v3945_v56 = vpop.f32.mrf.mxu1  ;;  %v3180_v12 = vmax.f32 %v2360_v54, 0.0 }
 0x206   :  { %v2363_v36 = vadd.f32 %v8961_v61, %v7546_v41  ;;  %v9336_v62 = vadd.f32 %v3945_v56, %v3768_v28  ;;  %7873 = vmatprep.mubr.msk.bf16.mxu1 %vm3515_vm4, %v3422_v38  ;;  %v3178_v3 = vmax.f32 %v2352_v43, 0.0  ;;  %v3772_v28 = vadd.f32 %v9166_v24, %v9099_v52  ;;  %v8258_v52 = vld [vmem:[%s10601_s0 + $0x420] sm:$0xff]  }
 0x207   :  { %v2354_v20 = vpop.f32.mrf.mxu0  ;;  %v7773_v55 = vpop.f32.mrf.mxu1  ;;  %7874 = vmatmul.mubr.msk.bf16.gmra.mxu1 %vm3515_vm4, %v3423_v32 }
 0x208   :  { %v2355_v7 = vadd.f32 %v8961_v61, %v2354_v20  ;;  %v9347_v23 = vadd.f32 %v7773_v55, %v3773_v5  ;;  %v3181_v9 = vmax.f32 %v2363_v36, 0.0  ;;  %v3777_v5 = vadd.f32 %v9111_v0, %v9166_v24 }
 0x209   :  { %v7549_v4 = vpop.f32.mrf.mxu0  ;;  %7644 = vmatmul.mubr.msk.bf16.gmra.mxu0 %vm1199_vm2, %v8255_v18  ;;  %v3958_v11 = vpop.f32.mrf.mxu1  ;;  %v3775_v0 = vadd.f32 %v9166_v24, %v9116_v6 }
 0x20a   :  { %v3179_v45 = vmax.f32 %v2355_v7, 0.0  ;;  %v9352_v19 = vadd.f32 %v3958_v11, %v3771_v34  ;;  %7647 = vmatprep.mubr.msk.bf16.mxu0 %vm1199_vm2, %v8256_v25  ;;  %v3425_v41 = vpack.c.bf16 %v3181_v9, %v3180_v12  ;;  %v2376_v54 = vadd.f32 %v8961_v61, %v7549_v4 }
 0x20b   :  { %v2367_v39 = vpop.f32.mrf.mxu0  ;;  %v7774_v26 = vpop.f32.mrf.mxu1 }
 0x20c   :  { %v3424_v38 = vpack.c.bf16 %v3179_v45, %v3178_v3  ;;  %v9357_v32 = vadd.f32 %v7774_v26, %v3774_v2  ;;  %v2368_v43 = vadd.f32 %v8961_v61, %v2367_v39  ;;  %v3778_v3 = vadd.f32 %v9119_v15, %v9166_v24  ;;  %v8259_v15 = vld [vmem:[%s10601_s0 + $0x428] sm:$0xff]  }
 0x20d   :  { %v7550_v56 = vpop.f32.mrf.mxu0  ;;  %v3961_v18 = vpop.f32.mrf.mxu1  ;;  %v3184_v39 = vmax.f32 %v2376_v54, 0.0 }
 0x20e   :  { %v2379_v36 = vadd.f32 %v8961_v61, %v7550_v56  ;;  %v9366_v25 = vadd.f32 %v3961_v18, %v3772_v28  ;;  %7877 = vmatprep.mubr.msk.bf16.mxu1 %vm3515_vm4, %v3424_v38  ;;  %v3182_v4 = vmax.f32 %v2368_v43, 0.0  ;;  %v3776_v28 = vadd.f32 %v9166_v24, %v9121_v21  ;;  %v8260_v21 = vld [vmem:[%s10601_s0 + $0x430] sm:$0xff]  }
 0x20f   :  { %v2370_v20 = vpop.f32.mrf.mxu0  ;;  %v7777_v55 = vpop.f32.mrf.mxu1  ;;  %7878 = vmatmul.mubr.msk.bf16.gmra.mxu1 %vm3515_vm4, %v3425_v41 }
 0x210   :  { %v2371_v34 = vadd.f32 %v8961_v61, %v2370_v20  ;;  %v9377_v7 = vadd.f32 %v7777_v55, %v3777_v5  ;;  %v3185_v9 = vmax.f32 %v2379_v36, 0.0  ;;  %v3781_v5 = vadd.f32 %v9133_v33, %v9166_v24 }
 0x211   :  { %v7553_v11 = vpop.f32.mrf.mxu0  ;;  %7648 = vmatmul.mubr.msk.bf16.gmra.mxu0 %vm1199_vm2, %v8257_v46  ;;  %v3974_v2 = vpop.f32.mrf.mxu1  ;;  %v3779_v33 = vadd.f32 %v9166_v24, %v9138_v40 }
 0x212   :  { %v3183_v45 = vmax.f32 %v2371_v34, 0.0  ;;  %v9382_v12 = vadd.f32 %v3974_v2, %v3775_v0  ;;  %7651 = vmatprep.mubr.msk.bf16.mxu0 %vm1199_vm2, %v8258_v52  ;;  %v3427_v56 = vpack.c.bf16 %v3185_v9, %v3184_v39  ;;  %v2392_v54 = vadd.f32 %v8961_v61, %v7553_v11 }
 0x213   :  { %v2383_v6 = vpop.f32.mrf.mxu0  ;;  %v7778_v26 = vpop.f32.mrf.mxu1 }
 0x214   :  { %v3426_v38 = vpack.c.bf16 %v3183_v45, %v3182_v4  ;;  %v9387_v41 = vadd.f32 %v7778_v26, %v3778_v3  ;;  %v2384_v43 = vadd.f32 %v8961_v61, %v2383_v6  ;;  %v3782_v4 = vadd.f32 %v9141_v49, %v9166_v24  ;;  %v8261_v49 = vld [vmem:[%s10601_s0 + $0x438] sm:$0xff]  }
 0x215   :  { %v7554_v18 = vpop.f32.mrf.mxu0  ;;  %v3977_v46 = vpop.f32.mrf.mxu1  ;;  %v3188_v6 = vmax.f32 %v2392_v54, 0.0 }
 0x216   :  { %v2395_v36 = vadd.f32 %v8961_v61, %v7554_v18  ;;  %v9396_v52 = vadd.f32 %v3977_v46, %v3776_v28  ;;  %7881 = vmatprep.mubr.msk.bf16.mxu1 %vm3515_vm4, %v3426_v38  ;;  %v3186_v11 = vmax.f32 %v2384_v43, 0.0  ;;  %v3780_v28 = vadd.f32 %v9166_v24, %v9143_v58  ;;  %v8262_v58 = vld [vmem:[%s10601_s0 + $0x440] sm:$0xff]  }
 0x217   :  { %v2386_v20 = vpop.f32.mrf.mxu0  ;;  %v7781_v55 = vpop.f32.mrf.mxu1  ;;  %7882 = vmatmul.mubr.msk.bf16.gmra.mxu1 %vm3515_vm4, %v3427_v56 }
 0x218   :  { %v2387_v0 = vadd.f32 %v8961_v61, %v2386_v20  ;;  %v9407_v34 = vadd.f32 %v7781_v55, %v3781_v5  ;;  %v3189_v9 = vmax.f32 %v2395_v36, 0.0  ;;  %v3785_v5 = vadd.f32 %v9155_v8, %v9166_v24 }
 0x219   :  { %v7557_v2 = vpop.f32.mrf.mxu0  ;;  %7652 = vmatmul.mubr.msk.bf16.gmra.mxu0 %vm1199_vm2, %v8259_v15  ;;  %v3990_v3 = vpop.f32.mrf.mxu1  ;;  %v3783_v8 = vadd.f32 %v9166_v24, %v9160_v16 }
 0x21a   :  { %v3187_v45 = vmax.f32 %v2387_v0, 0.0  ;;  %v9412_v39 = vadd.f32 %v3990_v3, %v3779_v33  ;;  %7655 = vmatprep.mubr.msk.bf16.mxu0 %vm1199_vm2, %v8260_v21  ;;  %v3429_v18 = vpack.c.bf16 %v3189_v9, %v3188_v6  ;;  %v2408_v54 = vadd.f32 %v8961_v61, %v7557_v2 }
 0x21b   :  { %v2399_v40 = vpop.f32.mrf.mxu0  ;;  %v7782_v26 = vpop.f32.mrf.mxu1 }
 0x21c   :  { %v3428_v38 = vpack.c.bf16 %v3187_v45, %v3186_v11  ;;  %v9417_v56 = vadd.f32 %v7782_v26, %v3782_v4  ;;  %v2400_v43 = vadd.f32 %v8961_v61, %v2399_v40  ;;  %v3786_v11 = vadd.f32 %v9168_v29, %v9166_v24  ;;  %v8263_v29 = vld [vmem:[%s10601_s0 + $0x448] sm:$0xff]  }
 0x21d   :  { %v7558_v46 = vpop.f32.mrf.mxu0  ;;  %v3993_v15 = vpop.f32.mrf.mxu1  ;;  %v3192_v40 = vmax.f32 %v2408_v54, 0.0 }
 0x21e   :  { %v2411_v36 = vadd.f32 %v8961_v61, %v7558_v46  ;;  %v9426_v21 = vadd.f32 %v3993_v15, %v3780_v28  ;;  %7885 = vmatprep.mubr.msk.bf16.mxu1 %vm3515_vm4, %v3428_v38  ;;  %v3190_v2 = vmax.f32 %v2400_v43, 0.0 }
 0x21f   :  { %v2402_v20 = vpop.f32.mrf.mxu0  ;;  %v7785_v55 = vpop.f32.mrf.mxu1  ;;  %7886 = vmatmul.mubr.msk.bf16.gmra.mxu1 %vm3515_vm4, %v3429_v18 }
 0x220   :  { %v2403_v33 = vadd.f32 %v8961_v61, %v2402_v20  ;;  %v9437_v0 = vadd.f32 %v7785_v55, %v3785_v5  ;;  %v3193_v9 = vmax.f32 %v2411_v36, 0.0  ;;  %v3784_v61 = vadd.f32 %v9166_v24, %v9170_v37  ;;  %v8264_v37 = vld [vmem:[%s10601_s0 + $0x450] sm:$0xff]  }
 0x221   :  { %v7561_v3 = vpop.f32.mrf.mxu0  ;;  %7656 = vmatmul.mubr.msk.bf16.gmra.mxu0 %vm1199_vm2, %v8261_v49  ;;  %v4006_v4 = vpop.f32.mrf.mxu1  ;;  %v9455_v49 = vld [vmem:[%s10603_s5] ss:$0 sm:$0xff] }
 0x222   :  { %v3191_v45 = vmax.f32 %v2403_v33, 0.0  ;;  %v9442_v6 = vadd.f32 %v4006_v4, %v3783_v8  ;;  %7659 = vmatprep.mubr.msk.bf16.mxu0 %vm1199_vm2, %v8262_v58  ;;  %v3431_v18 = vpack.c.bf16 %v3193_v9, %v3192_v40  ;;  %v2424_v36 = vadd.f32 %v9455_v49, %v7561_v3 }
 0x223   :  { %v2415_v16 = vpop.f32.mrf.mxu0  ;;  %v7786_v26 = vpop.f32.mrf.mxu1 }
 0x224   :  { %v3430_v28 = vpack.c.bf16 %v3191_v45, %v3190_v2  ;;  %v9447_v38 = vadd.f32 %v7786_v26, %v3786_v11  ;;  %v2416_v5 = vadd.f32 %v9455_v49, %v2415_v16  ;;  %v3196_v3 = vmax.f32 %v2424_v36, 0.0 }
 0x225   :  { %v7562_v46 = vpop.f32.mrf.mxu0  ;;  %v4009_v15 = vpop.f32.mrf.mxu1 }
 0x226   :  { %v2427_v43 = vadd.f32 %v9455_v49, %v7562_v46  ;;  %v9459_v24 = vadd.f32 %v4009_v15, %v3784_v61  ;;  %7889 = vmatprep.mubr.msk.bf16.mxu1 %vm3515_vm4, %v3430_v28  ;;  %v3194_v4 = vmax.f32 %v2416_v5, 0.0 }
 0x227   :  { %v2418_v58 = vpop.f32.mrf.mxu0  ;;  %v7791_v54 = vpop.f32.mrf.mxu1  ;;  %7890 = vmatmul.mubr.msk.bf16.gmra.mxu1 %vm3515_vm4, %v3431_v18  ;;  %v8265_v18 = vld [vmem:[%s10601_s0 + $0x458] sm:$0xff]  }
 0x228   :  { %v2419_v20 = vadd.f32 %v9455_v49, %v2418_v58  ;;  %v9469_v55 = vadd.f32 %v7791_v54, %v9188_v60  ;;  %v3197_v8 = vmax.f32 %v2427_v43, 0.0 }
 0x229   :  { %v7565_v33 = vpop.f32.mrf.mxu0  ;;  %7660 = vmatmul.mubr.msk.bf16.gmra.mxu0 %vm1199_vm2, %v8263_v29  ;;  %v4148_v9 = vpop.f32.mrf.mxu1 }
 0x22a   :  { %v3195_v11 = vmax.f32 %v2419_v20, 0.0  ;;  %v9473_v2 = vadd.f32 %v4148_v9, %v9193_v13  ;;  %7663 = vmatprep.mubr.msk.bf16.mxu0 %vm1199_vm2, %v8264_v37  ;;  %v3433_v60 = vpack.c.bf16 %v3197_v8, %v3196_v3  ;;  %v2440_v29 = vadd.f32 %v9455_v49, %v7565_v33 }
 0x22b   :  { %v2431_v45 = vpop.f32.mrf.mxu0  ;;  %v7792_v40 = vpop.f32.mrf.mxu1 }
 0x22c   :  { %v3432_v16 = vpack.c.bf16 %v3195_v11, %v3194_v4  ;;  %v9477_v26 = vadd.f32 %v7792_v40, %v9198_v30  ;;  %v2432_v46 = vadd.f32 %v9455_v49, %v2431_v45  ;;  %v8266_v30 = vld [vmem:[%s10601_s0 + $0x460] sm:$0xff]   ;;  %v3200_v33 = vmax.f32 %v2440_v29, 0.0 }
 0x22d   :  { %v7566_v61 = vpop.f32.mrf.mxu0  ;;  %v4151_v28 = vpop.f32.mrf.mxu1 }
 0x22e   :  { %v2443_v13 = vadd.f32 %v9455_v49, %v7566_v61  ;;  %v9485_v15 = vadd.f32 %v4151_v28, %v9207_v47  ;;  %7893 = vmatprep.mubr.msk.bf16.mxu1 %vm3515_vm4, %v3432_v16  ;;  %v3198_v20 = vmax.f32 %v2432_v46, 0.0 }
 0x22f   :  { %v2434_v5 = vpop.f32.mrf.mxu0  ;;  %v7795_v43 = vpop.f32.mrf.mxu1  ;;  %7894 = vmatmul.mubr.msk.bf16.gmra.mxu1 %vm3515_vm4, %v3433_v60  ;;  %v8267_v60 = vld [vmem:[%s10601_s0 + $0x468] sm:$0xff]  }
 0x230   :  { %v2435_v37 = vadd.f32 %v9455_v49, %v2434_v5  ;;  %v9495_v36 = vadd.f32 %v7795_v43, %v9218_v44  ;;  %v3201_v58 = vmax.f32 %v2443_v13, 0.0 }
 0x231   :  { %v7569_v47 = vpop.f32.mrf.mxu0  ;;  %7664 = vmatmul.mubr.msk.bf16.gmra.mxu0 %vm1199_vm2, %v8265_v18  ;;  %v4164_v54 = vpop.f32.mrf.mxu1 }
 0x232   :  { %v3199_v8 = vmax.f32 %v2435_v37, 0.0  ;;  %v9499_v9 = vadd.f32 %v4164_v54, %v9223_v17  ;;  %7667 = vmatprep.mubr.msk.bf16.mxu0 %vm1199_vm2, %v8266_v30  ;;  %v3435_v44 = vpack.c.bf16 %v3201_v58, %v3200_v33  ;;  %v2456_v18 = vadd.f32 %v9455_v49, %v7569_v47 }
 0x233   :  { %v2447_v4 = vpop.f32.mrf.mxu0  ;;  %v7796_v11 = vpop.f32.mrf.mxu1 }
 0x234   :  { %v3434_v3 = vpack.c.bf16 %v3199_v8, %v3198_v20  ;;  %v9503_v45 = vadd.f32 %v7796_v11, %v9228_v31  ;;  %v2448_v61 = vadd.f32 %v9455_v49, %v2447_v4  ;;  %v8268_v31 = vld [vmem:[%s10601_s0 + $0x470] sm:$0xff]   ;;  %v3204_v47 = vmax.f32 %v2456_v18, 0.0 }
 0x235   :  { %v7570_v40 = vpop.f32.mrf.mxu0  ;;  %v4167_v16 = vpop.f32.mrf.mxu1 }
 0x236   :  { %v2459_v17 = vadd.f32 %v9455_v49, %v7570_v40  ;;  %v9511_v28 = vadd.f32 %v4167_v16, %v9237_v57  ;;  %7897 = vmatprep.mubr.msk.bf16.mxu1 %vm3515_vm4, %v3434_v3  ;;  %v3202_v37 = vmax.f32 %v2448_v61, 0.0 }
 0x237   :  { %v2450_v46 = vpop.f32.mrf.mxu0  ;;  %v7799_v13 = vpop.f32.mrf.mxu1  ;;  %7898 = vmatmul.mubr.msk.bf16.gmra.mxu1 %vm3515_vm4, %v3435_v44  ;;  %v5192_v44 = vsel %vm3570_vm3, %v9278_v42, 0  ;;  %v9548_v42 = vld [vmem:[%s10602_s2 + $0xe] sm:$0x3] }
 0x238   :  { %v2451_v30 = vadd.f32 %v9455_v49, %v2450_v46  ;;  %v9521_v29 = vadd.f32 %v7799_v13, %v9248_v59  ;;  %v3205_v5 = vmax.f32 %v2459_v17, 0.0 }
 0x239   :  { %v7573_v57 = vpop.f32.mrf.mxu0  ;;  %7668 = vmatmul.mubr.msk.bf16.gmra.mxu0 %vm1199_vm2, %v8267_v60  ;;  %v4180_v43 = vpop.f32.mrf.mxu1 }
 0x23a   :  { %v3203_v58 = vmax.f32 %v2451_v30, 0.0  ;;  %v9525_v54 = vadd.f32 %v4180_v43, %v9253_v48  ;;  %7671 = vmatprep.mubr.msk.bf16.mxu0 %vm1199_vm2, %v8268_v31  ;;  %v3437_v59 = vpack.c.bf16 %v3205_v5, %v3204_v47  ;;  %v8269_v48 = vld [vmem:[%s10601_s0 + $0x478] sm:$0xff]   ;;  %v2472_v61 = vadd.f32 %v9455_v49, %v7573_v57 }
 0x23b   :  { %v2463_v20 = vpop.f32.mrf.mxu0  ;;  %v7800_v8 = vpop.f32.mrf.mxu1 }
 0x23c   :  { %v3436_v33 = vpack.c.bf16 %v3203_v58, %v3202_v37  ;;  %v9529_v4 = vadd.f32 %v7800_v8, %v9258_v35  ;;  %v2464_v40 = vadd.f32 %v9455_v49, %v2463_v20  ;;  %v8270_v35 = vld [vmem:[%s10601_s0 + $0x480] sm:$0xff]   ;;  %v3208_v37 = vmax.f32 %v2472_v61, 0.0 }
 0x23d   :  { %v7574_v11 = vpop.f32.mrf.mxu0  ;;  %v4183_v3 = vpop.f32.mrf.mxu1 }
 0x23e   :  { %v2475_v16 = vadd.f32 %v9455_v49, %v7574_v11  ;;  %v9539_v60 = vadd.f32 %v4183_v3, %v9269_v14  ;;  %7903 = vmatprep.mubr.msk.bf16.mxu1 %vm3515_vm4, %v3436_v33  ;;  %v3206_v5 = vmax.f32 %v2464_v40, 0.0  ;;  %v8271_v11 = vld [vmem:[%s10601_s0 + $0x488] sm:$0xff]  }
 0x23f   :  { %v2466_v17 = vpop.f32.mrf.mxu0  ;;  %v7803_v31 = vpop.f32.mrf.mxu1  ;;  %7904 = vmatmul.mubr.msk.bf16.vlgmr.msra.gmra.mxu1 %vm3515_vm4, %v3437_v59 }
 0x240   :  { %v2467_v14 = vadd.f32 %v9455_v49, %v2466_v17  ;;  %v9554_v18 = vadd.f32 %v7803_v31, %v9285_v63  ;;  %7940 = vmatpush3.bf16.msra.mxu1 %v5192_v44  ;;  %v3209_v46 = vmax.f32 %v2475_v16, 0.0 }
 0x241   :  { %v7577_v13 = vpop.f32.mrf.mxu0  ;;  %7672 = vmatmul.mubr.msk.bf16.gmra.mxu0 %vm1199_vm2, %v8269_v48  ;;  %v4196_v30 = vpop.f32.mrf.mxu1  ;;  %8120 = vmatprep.subr.msk.bf16.mxu1 %vm3570_vm3, %v9548_v42 }
 0x242   :  { %v3207_v57 = vmax.f32 %v2467_v14, 0.0  ;;  %v9560_v43 = vadd.f32 %v4196_v30, %v9292_v27  ;;  %7675 = vmatprep.mubr.msk.bf16.mxu0 %vm1199_vm2, %v8270_v35  ;;  %v3439_v8 = vpack.c.bf16 %v3209_v46, %v3208_v37  ;;  %v2488_v48 = vadd.f32 %v9455_v49, %v7577_v13 }
 0x243   :  { %v2479_v58 = vpop.f32.mrf.mxu0  ;;  %v7804_v63 = vpop.f32.mrf.mxu1 }
 0x244   :  { %v3438_v47 = vpack.c.bf16 %v3207_v57, %v3206_v5  ;;  %v9564_v20 = vadd.f32 %v7804_v63, %v9297_v53  ;;  %v2480_v3 = vadd.f32 %v9455_v49, %v2479_v58  ;;  %v8272_v53 = vld [vmem:[%s10601_s0 + $0x490] sm:$0xff]   ;;  %v3212_v13 = vmax.f32 %v2488_v48, 0.0 }
 0x245   :  { %v7578_v33 = vpop.f32.mrf.mxu0  ;;  %v4199_v59 = vpop.f32.mrf.mxu1 }
 0x246   :  { %v2491_v27 = vadd.f32 %v9455_v49, %v7578_v33  ;;  %v9572_v44 = vadd.f32 %v4199_v59, %v9306_v51  ;;  %7907 = vmatprep.mubr.msk.bf16.mxu1 %vm3515_vm4, %v3438_v47  ;;  %v3210_v14 = vmax.f32 %v2480_v3, 0.0 }
 0x247   :  { %v2482_v40 = vpop.f32.mrf.mxu0  ;;  %v7807_v16 = vpop.f32.mrf.mxu1  ;;  %7908 = vmatmul.mubr.msk.bf16.gmra.mxu1 %vm3515_vm4, %v3439_v8  ;;  %v8273_v8 = vld [vmem:[%s10601_s0 + $0x498] sm:$0xff]  }
 0x248   :  { %v2483_v35 = vadd.f32 %v9455_v49, %v2482_v40  ;;  %v9582_v61 = vadd.f32 %v7807_v16, %v9317_v1  ;;  %v3213_v17 = vmax.f32 %v2491_v27, 0.0 }
 0x249   :  { %v7581_v51 = vpop.f32.mrf.mxu0  ;;  %7676 = vmatmul.mubr.msk.bf16.gmra.mxu0 %vm1199_vm2, %v8271_v11  ;;  %v4212_v31 = vpop.f32.mrf.mxu1 }
 0x24a   :  { %v3211_v46 = vmax.f32 %v2483_v35, 0.0  ;;  %v9586_v30 = vadd.f32 %v4212_v31, %v9322_v50  ;;  %7679 = vmatprep.mubr.msk.bf16.mxu0 %vm1199_vm2, %v8272_v53  ;;  %v3441_v1 = vpack.c.bf16 %v3213_v17, %v3212_v13  ;;  %v2504_v11 = vadd.f32 %v9455_v49, %v7581_v51 }
 0x24b   :  { %v2495_v5 = vpop.f32.mrf.mxu0  ;;  %v7808_v57 = vpop.f32.mrf.mxu1 }
 0x24c   :  { %v3440_v37 = vpack.c.bf16 %v3211_v46, %v3210_v14  ;;  %v9590_v58 = vadd.f32 %v7808_v57, %v9327_v10  ;;  %v2496_v33 = vadd.f32 %v9455_v49, %v2495_v5  ;;  %v8274_v10 = vld [vmem:[%s10601_s0 + $0x4a0] sm:$0xff]   ;;  %v3216_v51 = vmax.f32 %v2504_v11, 0.0 }
 0x24d   :  { %v7582_v63 = vpop.f32.mrf.mxu0  ;;  %v4215_v47 = vpop.f32.mrf.mxu1 }
 0x24e   :  { %v2507_v50 = vadd.f32 %v9455_v49, %v7582_v63  ;;  %v9598_v59 = vadd.f32 %v4215_v47, %v9336_v62  ;;  %7911 = vmatprep.mubr.msk.bf16.mxu1 %vm3515_vm4, %v3440_v37  ;;  %v3214_v35 = vmax.f32 %v2496_v33, 0.0 }
 0x24f   :  { %v2498_v3 = vpop.f32.mrf.mxu0  ;;  %v7811_v27 = vpop.f32.mrf.mxu1  ;;  %7912 = vmatmul.mubr.msk.bf16.gmra.mxu1 %vm3515_vm4, %v3441_v1  ;;  %v8275_v1 = vld [vmem:[%s10601_s0 + $0x4a8] sm:$0xff]  }
 0x250   :  { %v2499_v53 = vadd.f32 %v9455_v49, %v2498_v3  ;;  %v9608_v48 = vadd.f32 %v7811_v27, %v9347_v23  ;;  %v3217_v40 = vmax.f32 %v2507_v50, 0.0 }
 0x251   :  { %v7585_v62 = vpop.f32.mrf.mxu0  ;;  %7680 = vmatmul.mubr.msk.bf16.gmra.mxu0 %vm1199_vm2, %v8273_v8  ;;  %v4228_v16 = vpop.f32.mrf.mxu1 }
 0x252   :  { %v3215_v17 = vmax.f32 %v2499_v53, 0.0  ;;  %v9612_v31 = vadd.f32 %v4228_v16, %v9352_v19  ;;  %7683 = vmatprep.mubr.msk.bf16.mxu0 %vm1199_vm2, %v8274_v10  ;;  %v3443_v23 = vpack.c.bf16 %v3217_v40, %v3216_v51  ;;  %v2520_v8 = vadd.f32 %v9455_v49, %v7585_v62 }
 0x253   :  { %v2511_v14 = vpop.f32.mrf.mxu0  ;;  %v7812_v46 = vpop.f32.mrf.mxu1 }
 0x254   :  { %v3442_v13 = vpack.c.bf16 %v3215_v17, %v3214_v35  ;;  %v9616_v5 = vadd.f32 %v7812_v46, %v9357_v32  ;;  %v2512_v63 = vadd.f32 %v9455_v49, %v2511_v14  ;;  %v8276_v32 = vld [vmem:[%s10601_s0 + $0x4b0] sm:$0xff]   ;;  %v3220_v62 = vmax.f32 %v2520_v8, 0.0 }
 0x255   :  { %v7586_v57 = vpop.f32.mrf.mxu0  ;;  %v4231_v37 = vpop.f32.mrf.mxu1 }
 0x256   :  { %v2523_v19 = vadd.f32 %v9455_v49, %v7586_v57  ;;  %v9624_v47 = vadd.f32 %v4231_v37, %v9366_v25  ;;  %7915 = vmatprep.mubr.msk.bf16.mxu1 %vm3515_vm4, %v3442_v13  ;;  %v3218_v53 = vmax.f32 %v2512_v63, 0.0 }
 0x257   :  { %v2514_v33 = vpop.f32.mrf.mxu0  ;;  %v7815_v50 = vpop.f32.mrf.mxu1  ;;  %7916 = vmatmul.mubr.msk.bf16.gmra.mxu1 %vm3515_vm4, %v3443_v23  ;;  %v8277_v23 = vld [vmem:[%s10601_s0 + $0x4b8] sm:$0xff]  }
 0x258   :  { %v2515_v10 = vadd.f32 %v9455_v49, %v2514_v33  ;;  %v9634_v11 = vadd.f32 %v7815_v50, %v9377_v7  ;;  %v3221_v3 = vmax.f32 %v2523_v19, 0.0 }
 0x259   :  { %v7589_v25 = vpop.f32.mrf.mxu0  ;;  %7684 = vmatmul.mubr.msk.bf16.gmra.mxu0 %vm1199_vm2, %v8275_v1  ;;  %v4244_v27 = vpop.f32.mrf.mxu1 }
 0x25a   :  { %v3219_v40 = vmax.f32 %v2515_v10, 0.0  ;;  %v9638_v16 = vadd.f32 %v4244_v27, %v9382_v12  ;;  %7687 = vmatprep.mubr.msk.bf16.mxu0 %vm1199_vm2, %v8276_v32  ;;  %v3445_v7 = vpack.c.bf16 %v3221_v3, %v3220_v62  ;;  %v2536_v1 = vadd.f32 %v9455_v49, %v7589_v25 }
 0x25b   :  { %v2527_v35 = vpop.f32.mrf.mxu0  ;;  %v7816_v17 = vpop.f32.mrf.mxu1 }
 0x25c   :  { %v3444_v51 = vpack.c.bf16 %v3219_v40, %v3218_v53  ;;  %v9642_v14 = vadd.f32 %v7816_v17, %v9387_v41  ;;  %v2528_v57 = vadd.f32 %v9455_v49, %v2527_v35  ;;  %v8278_v41 = vld [vmem:[%s10601_s0 + $0x4c0] sm:$0xff]   ;;  %v3224_v25 = vmax.f32 %v2536_v1, 0.0 }
 0x25d   :  { %v7590_v46 = vpop.f32.mrf.mxu0  ;;  %v4247_v13 = vpop.f32.mrf.mxu1 }
 0x25e   :  { %v2539_v12 = vadd.f32 %v9455_v49, %v7590_v46  ;;  %v9650_v37 = vadd.f32 %v4247_v13, %v9396_v52  ;;  %7919 = vmatprep.mubr.msk.bf16.mxu1 %vm3515_vm4, %v3444_v51  ;;  %v3222_v10 = vmax.f32 %v2528_v57, 0.0 }
 0x25f   :  { %v2530_v63 = vpop.f32.mrf.mxu0  ;;  %v7819_v19 = vpop.f32.mrf.mxu1  ;;  %7920 = vmatmul.mubr.msk.bf16.gmra.mxu1 %vm3515_vm4, %v3445_v7  ;;  %v8279_v7 = vld [vmem:[%s10601_s0 + $0x4c8] sm:$0xff]  }
 0x260   :  { %v2531_v32 = vadd.f32 %v9455_v49, %v2530_v63  ;;  %v9660_v8 = vadd.f32 %v7819_v19, %v9407_v34  ;;  %v3225_v33 = vmax.f32 %v2539_v12, 0.0 }
 0x261   :  { %v7593_v52 = vpop.f32.mrf.mxu0  ;;  %7688 = vmatmul.mubr.msk.bf16.gmra.mxu0 %vm1199_vm2, %v8277_v23  ;;  %v4260_v50 = vpop.f32.mrf.mxu1 }
 0x262   :  { %v3223_v3 = vmax.f32 %v2531_v32, 0.0  ;;  %v9664_v27 = vadd.f32 %v4260_v50, %v9412_v39  ;;  %7691 = vmatprep.mubr.msk.bf16.mxu0 %vm1199_vm2, %v8278_v41  ;;  %v3447_v34 = vpack.c.bf16 %v3225_v33, %v3224_v25  ;;  %v2552_v23 = vadd.f32 %v9455_v49, %v7593_v52 }
 0x263   :  { %v2543_v53 = vpop.f32.mrf.mxu0  ;;  %v7820_v40 = vpop.f32.mrf.mxu1 }
 0x264   :  { %v3446_v62 = vpack.c.bf16 %v3223_v3, %v3222_v10  ;;  %v9668_v35 = vadd.f32 %v7820_v40, %v9417_v56  ;;  %v2544_v46 = vadd.f32 %v9455_v49, %v2543_v53  ;;  %v8280_v56 = vld [vmem:[%s10601_s0 + $0x4d0] sm:$0xff]   ;;  %v3228_v52 = vmax.f32 %v2552_v23, 0.0 }
 0x265   :  { %v7594_v17 = vpop.f32.mrf.mxu0  ;;  %v4263_v51 = vpop.f32.mrf.mxu1 }
 0x266   :  { %v2555_v39 = vadd.f32 %v9455_v49, %v7594_v17  ;;  %v9676_v13 = vadd.f32 %v4263_v51, %v9426_v21  ;;  %7923 = vmatprep.mubr.msk.bf16.mxu1 %vm3515_vm4, %v3446_v62  ;;  %v3226_v32 = vmax.f32 %v2544_v46, 0.0 }
 0x267   :  { %v2546_v57 = vpop.f32.mrf.mxu0  ;;  %v7823_v12 = vpop.f32.mrf.mxu1  ;;  %7924 = vmatmul.mubr.msk.bf16.gmra.mxu1 %vm3515_vm4, %v3447_v34  ;;  %v8281_v34 = vld [vmem:[%s10601_s0 + $0x4d8] sm:$0xff]  }
 0x268   :  { %v2547_v41 = vadd.f32 %v9455_v49, %v2546_v57  ;;  %v9686_v1 = vadd.f32 %v7823_v12, %v9437_v0  ;;  %v3229_v63 = vmax.f32 %v2555_v39, 0.0 }
 0x269   :  { %v7597_v21 = vpop.f32.mrf.mxu0  ;;  %7692 = vmatmul.mubr.msk.bf16.gmra.mxu0 %vm1199_vm2, %v8279_v7  ;;  %v4276_v19 = vpop.f32.mrf.mxu1 }
 0x26a   :  { %v3227_v33 = vmax.f32 %v2547_v41, 0.0  ;;  %v9690_v50 = vadd.f32 %v4276_v19, %v9442_v6  ;;  %7695 = vmatprep.mubr.msk.bf16.mxu0 %vm1199_vm2, %v8280_v56  ;;  %v3449_v0 = vpack.c.bf16 %v3229_v63, %v3228_v52  ;;  %v2568_v7 = vadd.f32 %v9455_v49, %v7597_v21 }
 0x26b   :  { %v2559_v10 = vpop.f32.mrf.mxu0  ;;  %v7824_v3 = vpop.f32.mrf.mxu1 }
 0x26c   :  { %v3448_v25 = vpack.c.bf16 %v3227_v33, %v3226_v32  ;;  %v9694_v53 = vadd.f32 %v7824_v3, %v9447_v38  ;;  %v2560_v17 = vadd.f32 %v9455_v49, %v2559_v10  ;;  %v8282_v38 = vld [vmem:[%s10601_s0 + $0x4e0] sm:$0xff]   ;;  %v3232_v21 = vmax.f32 %v2568_v7, 0.0 }
 0x26d   :  { %v7598_v40 = vpop.f32.mrf.mxu0  ;;  %v4279_v62 = vpop.f32.mrf.mxu1 }
 0x26e   :  { %v2571_v6 = vadd.f32 %v9455_v49, %v7598_v40  ;;  %v9702_v51 = vadd.f32 %v4279_v62, %v9459_v24  ;;  %7927 = vmatprep.mubr.msk.bf16.mxu1 %vm3515_vm4, %v3448_v25  ;;  %v3230_v41 = vmax.f32 %v2560_v17, 0.0 }
 0x26f   :  { %v2562_v46 = vpop.f32.mrf.mxu0  ;;  %v7829_v39 = vpop.f32.mrf.mxu1  ;;  %7928 = vmatmul.mubr.msk.bf16.gmra.mxu1 %vm3515_vm4, %v3449_v0  ;;  %v8283_v0 = vld [vmem:[%s10601_s0 + $0x4e8] sm:$0xff]  }
 0x270   :  { %v2563_v56 = vadd.f32 %v9455_v49, %v2562_v46  ;;  %v9712_v23 = vadd.f32 %v7829_v39, %v9469_v55  ;;  %v3233_v57 = vmax.f32 %v2571_v6, 0.0 }
 0x271   :  { %v7601_v24 = vpop.f32.mrf.mxu0  ;;  %7696 = vmatmul.mubr.msk.bf16.gmra.mxu0 %vm1199_vm2, %v8281_v34  ;;  %v4418_v12 = vpop.f32.mrf.mxu1 }
 0x272   :  { %v3231_v63 = vmax.f32 %v2563_v56, 0.0  ;;  %v9716_v19 = vadd.f32 %v4418_v12, %v9473_v2  ;;  %7699 = vmatprep.mubr.msk.bf16.mxu0 %vm1199_vm2, %v8282_v38  ;;  %v3451_v55 = vpack.c.bf16 %v3233_v57, %v3232_v21  ;;  %v2584_v34 = vadd.f32 %v9455_v49, %v7601_v24 }
 0x273   :  { %v2575_v32 = vpop.f32.mrf.mxu0  ;;  %v7830_v33 = vpop.f32.mrf.mxu1 }
 0x274   :  { %v3450_v52 = vpack.c.bf16 %v3231_v63, %v3230_v41  ;;  %v9720_v10 = vadd.f32 %v7830_v33, %v9477_v26  ;;  %v2576_v40 = vadd.f32 %v9455_v49, %v2575_v32  ;;  %v8284_v26 = vld [vmem:[%s10601_s0 + $0x4f0] sm:$0xff]   ;;  %v3236_v24 = vmax.f32 %v2584_v34, 0.0 }
 0x275   :  { %v7602_v3 = vpop.f32.mrf.mxu0  ;;  %v4421_v25 = vpop.f32.mrf.mxu1 }
 0x276   :  { %v2587_v2 = vadd.f32 %v9455_v49, %v7602_v3  ;;  %v9728_v62 = vadd.f32 %v4421_v25, %v9485_v15  ;;  %7931 = vmatprep.mubr.msk.bf16.mxu1 %vm3515_vm4, %v3450_v52  ;;  %v3234_v56 = vmax.f32 %v2576_v40, 0.0 }
 0x277   :  { %v2578_v17 = vpop.f32.mrf.mxu0  ;;  %v7833_v6 = vpop.f32.mrf.mxu1  ;;  %7932 = vmatmul.mubr.msk.bf16.gmra.mxu1 %vm3515_vm4, %v3451_v55  ;;  %v8285_v55 = vld [vmem:[%s10601_s0 + $0x4f8] sm:$0xff]  }
 0x278   :  { %v2579_v38 = vadd.f32 %v9455_v49, %v2578_v17  ;;  %v9738_v7 = vadd.f32 %v7833_v6, %v9495_v36  ;;  %v3237_v46 = vmax.f32 %v2587_v2, 0.0 }
 0x279   :  { %v7605_v15 = vpop.f32.mrf.mxu0  ;;  %7700 = vmatmul.mubr.msk.bf16.gmra.mxu0 %vm1199_vm2, %v8283_v0  ;;  %v4434_v39 = vpop.f32.mrf.mxu1 }
 0x27a   :  { %v3235_v57 = vmax.f32 %v2579_v38, 0.0  ;;  %v9742_v12 = vadd.f32 %v4434_v39, %v9499_v9  ;;  %7703 = vmatprep.mubr.msk.bf16.mxu0 %vm1199_vm2, %v8284_v26  ;;  %v3453_v36 = vpack.c.bf16 %v3237_v46, %v3236_v24  ;;  %v2600_v0 = vadd.f32 %v9455_v49, %v7605_v15 }
 0x27b   :  { %v2591_v41 = vpop.f32.mrf.mxu0  ;;  %v7834_v63 = vpop.f32.mrf.mxu1 }
 0x27c   :  { %v3452_v21 = vpack.c.bf16 %v3235_v57, %v3234_v56  ;;  %v9746_v32 = vadd.f32 %v7834_v63, %v9503_v45  ;;  %v2592_v3 = vadd.f32 %v9455_v49, %v2591_v41  ;;  %v8286_v45 = vld [vmem:[%s10601_s0 + $0x500] sm:$0xff]   ;;  %v3240_v15 = vmax.f32 %v2600_v0, 0.0 }
 0x27d   :  { %v7606_v33 = vpop.f32.mrf.mxu0  ;;  %v4437_v52 = vpop.f32.mrf.mxu1 }
 0x27e   :  { %v2603_v9 = vadd.f32 %v9455_v49, %v7606_v33  ;;  %v9754_v25 = vadd.f32 %v4437_v52, %v9511_v28  ;;  %7935 = vmatprep.mubr.msk.bf16.mxu1 %vm3515_vm4, %v3452_v21  ;;  %v3238_v38 = vmax.f32 %v2592_v3, 0.0 }
 0x27f   :  { %v2594_v40 = vpop.f32.mrf.mxu0  ;;  %v7837_v2 = vpop.f32.mrf.mxu1  ;;  %7936 = vmatmul.mubr.msk.bf16.gmra.mxu1 %vm3515_vm4, %v3453_v36  ;;  %v5462_v36 = vsel %vm3570_vm3, %v9548_v42, 0 }
 0x280   :  { %v2595_v26 = vadd.f32 %v9455_v49, %v2594_v40  ;;  %v9764_v34 = vadd.f32 %v7837_v2, %v9521_v29  ;;  %v3241_v17 = vmax.f32 %v2603_v9, 0.0 }
 0x281   :  { %v7609_v28 = vpop.f32.mrf.mxu0  ;;  %7704 = vmatmul.mubr.msk.bf16.gmra.mxu0 %vm1199_vm2, %v8285_v55  ;;  %v4450_v6 = vpop.f32.mrf.mxu1 }
 0x282   :  { %v3239_v46 = vmax.f32 %v2595_v26, 0.0  ;;  %v9768_v39 = vadd.f32 %v4450_v6, %v9525_v54  ;;  %7707 = vmatprep.mubr.msk.bf16.mxu0 %vm1199_vm2, %v8286_v45  ;;  %v3455_v29 = vpack.c.bf16 %v3241_v17, %v3240_v15  ;;  %v8287_v54 = vld [vmem:[%s10601_s0 + $0x508] sm:$0xff]   ;;  %v2616_v42 = vadd.f32 %v9455_v49, %v7609_v28 }
 0x283   :  { %v2607_v56 = vpop.f32.mrf.mxu0  ;;  %v7838_v57 = vpop.f32.mrf.mxu1 }
 0x284   :  { %v3454_v24 = vpack.c.bf16 %v3239_v46, %v3238_v38  ;;  %v9772_v41 = vadd.f32 %v7838_v57, %v9529_v4  ;;  %v2608_v33 = vadd.f32 %v9455_v49, %v2607_v56  ;;  %v9788_v4 = vld [vmem:[%s10602_s2 + $0x10] sm:$0x3]  ;;  %v3244_v6 = vmax.f32 %v2616_v42, 0.0 }
 0x285   :  { %v7610_v63 = vpop.f32.mrf.mxu0  ;;  %v4453_v21 = vpop.f32.mrf.mxu1 }
 0x286   :  { %v2619_v52 = vadd.f32 %v9455_v49, %v7610_v63  ;;  %v9782_v55 = vadd.f32 %v4453_v21, %v9539_v60  ;;  %7941 = vmatprep.mubr.msk.bf16.mxu1 %vm3515_vm4, %v3454_v24  ;;  %v3242_v26 = vmax.f32 %v2608_v33, 0.0 }
 0x287   :  { %v2610_v3 = vpop.f32.mrf.mxu0  ;;  %v7841_v9 = vpop.f32.mrf.mxu1  ;;  %7942 = vmatmul.mubr.msk.bf16.vlgmr.msra.gmra.mxu1 %vm3515_vm4, %v3455_v29 }
 0x288   :  { %v2611_v45 = vadd.f32 %v9455_v49, %v2610_v3  ;;  %v9794_v0 = vadd.f32 %v7841_v9, %v9554_v18  ;;  %7978 = vmatpush3.bf16.msra.mxu1 %v5462_v36  ;;  %v3245_v60 = vmax.f32 %v2619_v52, 0.0 }
 0x289   :  { %v7613_v40 = vpop.f32.mrf.mxu0  ;;  %7708 = vmatmul.mubr.msk.bf16.gmra.mxu0 %vm1199_vm2, %v8287_v54  ;;  %v4466_v2 = vpop.f32.mrf.mxu1  ;;  %8121 = vmatprep.subr.msk.bf16.mxu1 %vm3570_vm3, %v9788_v4 }
 0x28a   :  { %v3243_v17 = vmax.f32 %v2611_v45, 0.0  ;;  %v9800_v28 = vadd.f32 %v4466_v2, %v9560_v43  ;;  %v3457_v56 = vpack.c.bf16 %v3245_v60, %v3244_v6  ;;  %v2632_v43 = vadd.f32 %v9455_v49, %v7613_v40  ;;  %8055 = vmatprep.mubr.msk.bf16.mxu0 %vm8298_vm5, %v8297_v22 }
 0x28b   :  { %v2623_v38 = vpop.f32.mrf.mxu0  ;;  %v7842_v46 = vpop.f32.mrf.mxu1 }
 0x28c   :  { %v3456_v15 = vpack.c.bf16 %v3243_v17, %v3242_v26  ;;  %v9803_v18 = vadd.f32 %v7842_v46, %v9564_v20  ;;  %v2624_v29 = vadd.f32 %v9455_v49, %v2623_v38  ;;  %v3248_v60 = vmax.f32 %v2632_v43, 0.0 }
 0x28d   :  { %v7614_v57 = vpop.f32.mrf.mxu0  ;;  %v4469_v24 = vpop.f32.mrf.mxu1 }
 0x28e   :  { %v2635_v63 = vadd.f32 %v9455_v49, %v7614_v57  ;;  %v9808_v21 = vadd.f32 %v4469_v24, %v9572_v44  ;;  %7945 = vmatprep.mubr.msk.bf16.mxu1 %vm3515_vm4, %v3456_v15  ;;  %v3246_v9 = vmax.f32 %v2624_v29, 0.0 }
 0x28f   :  { %v2626_v36 = vpop.f32.mrf.mxu0  ;;  %v7845_v54 = vpop.f32.mrf.mxu1  ;;  %7946 = vmatmul.mubr.msk.bf16.gmra.mxu1 %vm3515_vm4, %v3457_v56 }
 0x290   :  { %v2627_v20 = vadd.f32 %v9455_v49, %v2626_v36  ;;  %v9815_v33 = vadd.f32 %v7845_v54, %v9582_v61  ;;  %v3249_v52 = vmax.f32 %v2635_v63, 0.0 }
 0x291   :  { %v7617_v42 = vpop.f32.mrf.mxu0  ;;  %v4482_v3 = vpop.f32.mrf.mxu1 }
 0x292   :  { %v3247_v45 = vmax.f32 %v2627_v20, 0.0  ;;  %v9818_v44 = vadd.f32 %v4482_v3, %v9586_v30  ;;  %v3459_v6 = vpack.c.bf16 %v3249_v52, %v3248_v60  ;;  %v2648_v30 = vadd.f32 %v9455_v49, %v7617_v42 }
 0x293   :  { %v2639_v2 = vpop.f32.mrf.mxu0  ;;  %v7846_v40 = vpop.f32.mrf.mxu1 }
 0x294   :  { %v3458_v26 = vpack.c.bf16 %v3247_v45, %v3246_v9  ;;  %v9821_v17 = vadd.f32 %v7846_v40, %v9590_v58  ;;  %v2640_v61 = vadd.f32 %v9455_v49, %v2639_v2  ;;  %v3252_v52 = vmax.f32 %v2648_v30, 0.0 }
 0x295   :  { %v7618_v38 = vpop.f32.mrf.mxu0  ;;  %v4485_v46 = vpop.f32.mrf.mxu1 }
 0x296   :  { %v2651_v15 = vadd.f32 %v9455_v49, %v7618_v38  ;;  %v9826_v56 = vadd.f32 %v4485_v46, %v9598_v59  ;;  %7949 = vmatprep.mubr.msk.bf16.mxu1 %vm3515_vm4, %v3458_v26  ;;  %v3250_v54 = vmax.f32 %v2640_v61, 0.0 }
 0x297   :  { %v2642_v57 = vpop.f32.mrf.mxu0  ;;  %v7849_v24 = vpop.f32.mrf.mxu1  ;;  %7950 = vmatmul.mubr.msk.bf16.gmra.mxu1 %vm3515_vm4, %v3459_v6 }
 0x298   :  { %v2643_v58 = vadd.f32 %v9455_v49, %v2642_v57  ;;  %v9833_v29 = vadd.f32 %v7849_v24, %v9608_v48  ;;  %v3253_v63 = vmax.f32 %v2651_v15, 0.0 }
 0x299   :  { %v7621_v43 = vpop.f32.mrf.mxu0  ;;  %v4498_v36 = vpop.f32.mrf.mxu1 }
 0x29a   :  { %v3251_v20 = vmax.f32 %v2643_v58, 0.0  ;;  %v9836_v59 = vadd.f32 %v4498_v36, %v9612_v31  ;;  %v3461_v60 = vpack.c.bf16 %v3253_v63, %v3252_v52  ;;  %v2664_v31 = vadd.f32 %v9455_v49, %v7621_v43 }
 0x29b   :  { %v2655_v3 = vpop.f32.mrf.mxu0  ;;  %v7850_v42 = vpop.f32.mrf.mxu1 }
 0x29c   :  { %v3460_v9 = vpack.c.bf16 %v3251_v20, %v3250_v54  ;;  %v9839_v45 = vadd.f32 %v7850_v42, %v9616_v5  ;;  %v2656_v48 = vadd.f32 %v9455_v49, %v2655_v3  ;;  %v3256_v63 = vmax.f32 %v2664_v31, 0.0 }
 0x29d   :  { %v7622_v2 = vpop.f32.mrf.mxu0  ;;  %v4501_v40 = vpop.f32.mrf.mxu1 }
 0x29e   :  { %v2667_v26 = vadd.f32 %v9455_v49, %v7622_v2  ;;  %v9844_v6 = vadd.f32 %v4501_v40, %v9624_v47  ;;  %7953 = vmatprep.mubr.msk.bf16.mxu1 %vm3515_vm4, %v3460_v9  ;;  %v3254_v24 = vmax.f32 %v2656_v48, 0.0 }
 0x29f   :  { %v2658_v38 = vpop.f32.mrf.mxu0  ;;  %v7853_v46 = vpop.f32.mrf.mxu1  ;;  %7954 = vmatmul.mubr.msk.bf16.gmra.mxu1 %vm3515_vm4, %v3461_v60 }
 0x2a0   :  { %v2659_v5 = vadd.f32 %v9455_v49, %v2658_v38  ;;  %v9851_v61 = vadd.f32 %v7853_v46, %v9634_v11  ;;  %v3257_v15 = vmax.f32 %v2667_v26, 0.0 }
 0x2a1   :  { %v7625_v30 = vpop.f32.mrf.mxu0  ;;  %v4514_v57 = vpop.f32.mrf.mxu1 }
 0x2a2   :  { %v3255_v58 = vmax.f32 %v2659_v5, 0.0  ;;  %v9854_v47 = vadd.f32 %v4514_v57, %v9638_v16  ;;  %v3463_v52 = vpack.c.bf16 %v3257_v15, %v3256_v63  ;;  %v2680_v16 = vadd.f32 %v9455_v49, %v7625_v30 }
 0x2a3   :  { %v2671_v36 = vpop.f32.mrf.mxu0  ;;  %v7854_v43 = vpop.f32.mrf.mxu1 }
 0x2a4   :  { %v3462_v54 = vpack.c.bf16 %v3255_v58, %v3254_v24  ;;  %v9857_v20 = vadd.f32 %v7854_v43, %v9642_v14  ;;  %v2672_v11 = vadd.f32 %v9455_v49, %v2671_v36  ;;  %v3260_v15 = vmax.f32 %v2680_v16, 0.0 }
 0x2a5   :  { %v7626_v3 = vpop.f32.mrf.mxu0  ;;  %v4517_v42 = vpop.f32.mrf.mxu1 }
 0x2a6   :  { %v2683_v9 = vadd.f32 %v9455_v49, %v7626_v3  ;;  %v9862_v60 = vadd.f32 %v4517_v42, %v9650_v37  ;;  %7957 = vmatprep.mubr.msk.bf16.mxu1 %vm3515_vm4, %v3462_v54  ;;  %v3258_v46 = vmax.f32 %v2672_v11, 0.0 }
 0x2a7   :  { %v2674_v2 = vpop.f32.mrf.mxu0  ;;  %v7857_v40 = vpop.f32.mrf.mxu1  ;;  %7958 = vmatmul.mubr.msk.bf16.gmra.mxu1 %vm3515_vm4, %v3463_v52 }
 0x2a8   :  { %v2675_v14 = vadd.f32 %v9455_v49, %v2674_v2  ;;  %v9869_v48 = vadd.f32 %v7857_v40, %v9660_v8  ;;  %v3261_v26 = vmax.f32 %v2683_v9, 0.0 }
 0x2a9   :  { %v7629_v31 = vpop.f32.mrf.mxu0  ;;  %v4530_v38 = vpop.f32.mrf.mxu1 }
 0x2aa   :  { %v3259_v5 = vmax.f32 %v2675_v14, 0.0  ;;  %v9872_v37 = vadd.f32 %v4530_v38, %v9664_v27  ;;  %v3465_v63 = vpack.c.bf16 %v3261_v26, %v3260_v15  ;;  %v2696_v27 = vadd.f32 %v9455_v49, %v7629_v31 }
 0x2ab   :  { %v2687_v57 = vpop.f32.mrf.mxu0  ;;  %v7858_v30 = vpop.f32.mrf.mxu1 }
 0x2ac   :  { %v3464_v24 = vpack.c.bf16 %v3259_v5, %v3258_v46  ;;  %v9875_v58 = vadd.f32 %v7858_v30, %v9668_v35  ;;  %v2688_v8 = vadd.f32 %v9455_v49, %v2687_v57  ;;  %v3264_v26 = vmax.f32 %v2696_v27, 0.0 }
 0x2ad   :  { %v7630_v36 = vpop.f32.mrf.mxu0  ;;  %v4533_v43 = vpop.f32.mrf.mxu1 }
 0x2ae   :  { %v2699_v54 = vadd.f32 %v9455_v49, %v7630_v36  ;;  %v9880_v52 = vadd.f32 %v4533_v43, %v9676_v13  ;;  %7961 = vmatprep.mubr.msk.bf16.mxu1 %vm3515_vm4, %v3464_v24  ;;  %v3262_v40 = vmax.f32 %v2688_v8, 0.0 }
 0x2af   :  { %v2690_v3 = vpop.f32.mrf.mxu0  ;;  %v7861_v42 = vpop.f32.mrf.mxu1  ;;  %7962 = vmatmul.mubr.msk.bf16.gmra.mxu1 %vm3515_vm4, %v3465_v63 }
 0x2b0   :  { %v2691_v35 = vadd.f32 %v9455_v49, %v2690_v3  ;;  %v9887_v11 = vadd.f32 %v7861_v42, %v9686_v1  ;;  %v3265_v9 = vmax.f32 %v2699_v54, 0.0 }
 0x2b1   :  { %v7633_v16 = vpop.f32.mrf.mxu0  ;;  %v4546_v2 = vpop.f32.mrf.mxu1 }
 0x2b2   :  { %v3263_v14 = vmax.f32 %v2691_v35, 0.0  ;;  %v9890_v13 = vadd.f32 %v4546_v2, %v9690_v50  ;;  %v3467_v15 = vpack.c.bf16 %v3265_v9, %v3264_v26  ;;  %v2712_v50 = vadd.f32 %v9455_v49, %v7633_v16 }
 0x2b3   :  { %v2703_v38 = vpop.f32.mrf.mxu0  ;;  %v7862_v31 = vpop.f32.mrf.mxu1 }
 0x2b4   :  { %v3466_v46 = vpack.c.bf16 %v3263_v14, %v3262_v40  ;;  %v9893_v5 = vadd.f32 %v7862_v31, %v9694_v53  ;;  %v2704_v1 = vadd.f32 %v9455_v49, %v2703_v38  ;;  %v3268_v9 = vmax.f32 %v2712_v50, 0.0 }
 0x2b5   :  { %v7634_v57 = vpop.f32.mrf.mxu0  ;;  %v4549_v30 = vpop.f32.mrf.mxu1 }
 0x2b6   :  { %v2715_v24 = vadd.f32 %v9455_v49, %v7634_v57  ;;  %v9898_v63 = vadd.f32 %v4549_v30, %v9702_v51  ;;  %7965 = vmatprep.mubr.msk.bf16.mxu1 %vm3515_vm4, %v3466_v46  ;;  %v3266_v42 = vmax.f32 %v2704_v1, 0.0 }
 0x2b7   :  { %v2706_v36 = vpop.f32.mrf.mxu0  ;;  %v7867_v43 = vpop.f32.mrf.mxu1  ;;  %7966 = vmatmul.mubr.msk.bf16.gmra.mxu1 %vm3515_vm4, %v3467_v15 }
 0x2b8   :  { %v2707_v53 = vadd.f32 %v9455_v49, %v2706_v36  ;;  %v9905_v8 = vadd.f32 %v7867_v43, %v9712_v23  ;;  %v3269_v54 = vmax.f32 %v2715_v24, 0.0  ;;  %v9916_v23 = vld [vmem:[%s10603_s5] ss:$0 sm:$0xff] }
 0x2b9   :  { %v7637_v27 = vpop.f32.mrf.mxu0  ;;  %v4688_v3 = vpop.f32.mrf.mxu1 }
 0x2ba   :  { %v3267_v35 = vmax.f32 %v2707_v53, 0.0  ;;  %v9908_v51 = vadd.f32 %v4688_v3, %v9716_v19  ;;  %v3469_v26 = vpack.c.bf16 %v3269_v54, %v3268_v9 }
 0x2bb   :  { %v2719_v2 = vpop.f32.mrf.mxu0  ;;  %v7868_v16 = vpop.f32.mrf.mxu1 }
 0x2bc   :  { %v3468_v40 = vpack.c.bf16 %v3267_v35, %v3266_v42  ;;  %v9911_v14 = vadd.f32 %v7868_v16, %v9720_v10  ;;  %v2720_v31 = vadd.f32 %v9916_v23, %v2719_v2  ;;  %v2728_v10 = vadd.f32 %v9916_v23, %v7637_v27 }
 0x2bd   :  { %v7638_v49 = vpop.f32.mrf.mxu0  ;;  %v4691_v38 = vpop.f32.mrf.mxu1 }
 0x2be   :  { %v2731_v19 = vadd.f32 %v9916_v23, %v7638_v49  ;;  %v9921_v46 = vadd.f32 %v4691_v38, %v9728_v62  ;;  %7969 = vmatprep.mubr.msk.bf16.mxu1 %vm3515_vm4, %v3468_v40  ;;  %v3270_v43 = vmax.f32 %v2720_v31, 0.0  ;;  %v3272_v54 = vmax.f32 %v2728_v10, 0.0 }
 0x2bf   :  { %v2722_v15 = vpop.f32.mrf.mxu0  ;;  %v7871_v57 = vpop.f32.mrf.mxu1  ;;  %7970 = vmatmul.mubr.msk.bf16.gmra.mxu1 %vm3515_vm4, %v3469_v26 }
 0x2c0   :  { %v2723_v30 = vadd.f32 %v9916_v23, %v2722_v15  ;;  %v9928_v1 = vadd.f32 %v7871_v57, %v9738_v7  ;;  %v3273_v24 = vmax.f32 %v2731_v19, 0.0 }
 0x2c1   :  { %v7641_v50 = vpop.f32.mrf.mxu0  ;;  %v4704_v36 = vpop.f32.mrf.mxu1 }
 0x2c2   :  { %v3271_v53 = vmax.f32 %v2723_v30, 0.0  ;;  %v9931_v62 = vadd.f32 %v4704_v36, %v9742_v12  ;;  %v3471_v9 = vpack.c.bf16 %v3273_v24, %v3272_v54  ;;  %v2744_v12 = vadd.f32 %v9916_v23, %v7641_v50 }
 0x2c3   :  { %v2735_v3 = vpop.f32.mrf.mxu0  ;;  %v7872_v27 = vpop.f32.mrf.mxu1 }
 0x2c4   :  { %v3470_v42 = vpack.c.bf16 %v3271_v53, %v3270_v43  ;;  %v9934_v35 = vadd.f32 %v7872_v27, %v9746_v32  ;;  %v2736_v7 = vadd.f32 %v9916_v23, %v2735_v3  ;;  %v3276_v24 = vmax.f32 %v2744_v12, 0.0 }
 0x2c5   :  { %v7642_v2 = vpop.f32.mrf.mxu0  ;;  %v4707_v16 = vpop.f32.mrf.mxu1 }
 0x2c6   :  { %v2747_v40 = vadd.f32 %v9916_v23, %v7642_v2  ;;  %v9939_v26 = vadd.f32 %v4707_v16, %v9754_v25  ;;  %7973 = vmatprep.mubr.msk.bf16.mxu1 %vm3515_vm4, %v3470_v42  ;;  %v3274_v57 = vmax.f32 %v2736_v7, 0.0 }
 0x2c7   :  { %v2738_v49 = vpop.f32.mrf.mxu0  ;;  %v7875_v38 = vpop.f32.mrf.mxu1  ;;  %7974 = vmatmul.mubr.msk.bf16.gmra.mxu1 %vm3515_vm4, %v3471_v9 }
 0x2c8   :  { %v2739_v32 = vadd.f32 %v9916_v23, %v2738_v49  ;;  %v9946_v31 = vadd.f32 %v7875_v38, %v9764_v34  ;;  %v3277_v19 = vmax.f32 %v2747_v40, 0.0  ;;  %v5732_v34 = vsel %vm3570_vm3, %v9788_v4, 0 }
 0x2c9   :  { %v7645_v10 = vpop.f32.mrf.mxu0  ;;  %v4720_v15 = vpop.f32.mrf.mxu1 }
 0x2ca   :  { %v3275_v30 = vmax.f32 %v2739_v32, 0.0  ;;  %v9949_v25 = vadd.f32 %v4720_v15, %v9768_v39  ;;  %v3473_v54 = vpack.c.bf16 %v3277_v19, %v3276_v24  ;;  %v2760_v2 = vadd.f32 %v9916_v23, %v7645_v10 }
 0x2cb   :  { %v2751_v36 = vpop.f32.mrf.mxu0  ;;  %v7876_v50 = vpop.f32.mrf.mxu1 }
 0x2cc   :  { %v3472_v43 = vpack.c.bf16 %v3275_v30, %v3274_v57  ;;  %v9952_v53 = vadd.f32 %v7876_v50, %v9772_v41  ;;  %v2752_v42 = vadd.f32 %v9916_v23, %v2751_v36  ;;  %v3280_v19 = vmax.f32 %v2760_v2, 0.0 }
 0x2cd   :  { %v7646_v3 = vpop.f32.mrf.mxu0  ;;  %v4723_v27 = vpop.f32.mrf.mxu1 }
 0x2ce   :  { %v2763_v9 = vadd.f32 %v9916_v23, %v7646_v3  ;;  %v9959_v39 = vadd.f32 %v4723_v27, %v9782_v55  ;;  %7979 = vmatprep.mubr.msk.bf16.mxu1 %vm3515_vm4, %v3472_v43  ;;  %v3278_v55 = vmax.f32 %v2752_v42, 0.0 }
 0x2cf   :  { %v2754_v16 = vpop.f32.mrf.mxu0  ;;  %v7879_v41 = vpop.f32.mrf.mxu1  ;;  %7980 = vmatmul.mubr.msk.bf16.vlgmr.msra.gmra.mxu1 %vm3515_vm4, %v3473_v54 }
 0x2d0   :  { %v2755_v7 = vadd.f32 %v9916_v23, %v2754_v16  ;;  %v9966_v40 = vadd.f32 %v7879_v41, %v9794_v0  ;;  %8016 = vmatpush3.bf16.msra.mxu1 %v5732_v34  ;;  %v3281_v4 = vmax.f32 %v2763_v9, 0.0 }
 0x2d1   :  { %v7649_v12 = vpop.f32.mrf.mxu0  ;;  %v4736_v49 = vpop.f32.mrf.mxu1  ;;  %8059 = vmatprep.subr.bf16.mxu1 %v8297_v22 }
 0x2d2   :  { %v3279_v38 = vmax.f32 %v2755_v7, 0.0  ;;  %v9970_v32 = vadd.f32 %v4736_v49, %v9800_v28  ;;  %v3475_v0 = vpack.c.bf16 %v3281_v4, %v3280_v19  ;;  %v2776_v28 = vadd.f32 %v9916_v23, %v7649_v12 }
 0x2d3   :  { %v2767_v10 = vpop.f32.mrf.mxu0  ;;  %v7880_v15 = vpop.f32.mrf.mxu1 }
 0x2d4   :  { %v3474_v57 = vpack.c.bf16 %v3279_v38, %v3278_v55  ;;  %v9973_v30 = vadd.f32 %v7880_v15, %v9803_v18  ;;  %v2768_v50 = vadd.f32 %v9916_v23, %v2767_v10  ;;  %v3284_v7 = vmax.f32 %v2776_v28, 0.0 }
 0x2d5   :  { %v7650_v24 = vpop.f32.mrf.mxu0  ;;  %v4739_v36 = vpop.f32.mrf.mxu1 }
 0x2d6   :  { %v2779_v43 = vadd.f32 %v9916_v23, %v7650_v24  ;;  %v9978_v54 = vadd.f32 %v4739_v36, %v9808_v21  ;;  %7983 = vmatprep.mubr.msk.bf16.mxu1 %vm3515_vm4, %v3474_v57  ;;  %v3282_v16 = vmax.f32 %v2768_v50, 0.0 }
 0x2d7   :  { %v2770_v3 = vpop.f32.mrf.mxu0  ;;  %v7883_v27 = vpop.f32.mrf.mxu1  ;;  %7984 = vmatmul.mubr.msk.bf16.gmra.mxu1 %vm3515_vm4, %v3475_v0 }
 0x2d8   :  { %v2771_v18 = vadd.f32 %v9916_v23, %v2770_v3  ;;  %v9985_v34 = vadd.f32 %v7883_v27, %v9815_v33  ;;  %v3285_v42 = vmax.f32 %v2779_v43, 0.0 }
 0x2d9   :  { %v7653_v9 = vpop.f32.mrf.mxu0  ;;  %v4752_v2 = vpop.f32.mrf.mxu1 }
 0x2da   :  { %v3283_v41 = vmax.f32 %v2771_v18, 0.0  ;;  %v9988_v21 = vadd.f32 %v4752_v2, %v9818_v44  ;;  %v3477_v38 = vpack.c.bf16 %v3285_v42, %v3284_v7  ;;  %v2792_v44 = vadd.f32 %v9916_v23, %v7653_v9 }
 0x2db   :  { %v2783_v4 = vpop.f32.mrf.mxu0  ;;  %v7884_v12 = vpop.f32.mrf.mxu1 }
 0x2dc   :  { %v3476_v49 = vpack.c.bf16 %v3283_v41, %v3282_v16  ;;  %v9991_v55 = vadd.f32 %v7884_v12, %v9821_v17  ;;  %v2784_v33 = vadd.f32 %v9916_v23, %v2783_v4  ;;  %v3288_v18 = vmax.f32 %v2792_v44, 0.0 }
 0x2dd   :  { %v7654_v19 = vpop.f32.mrf.mxu0  ;;  %v4755_v10 = vpop.f32.mrf.mxu1 }
 0x2de   :  { %v2795_v15 = vadd.f32 %v9916_v23, %v7654_v19  ;;  %v9996_v57 = vadd.f32 %v4755_v10, %v9826_v56  ;;  %7987 = vmatprep.mubr.msk.bf16.mxu1 %vm3515_vm4, %v3476_v49  ;;  %v3286_v3 = vmax.f32 %v2784_v33, 0.0 }
 0x2df   :  { %v2786_v0 = vpop.f32.mrf.mxu0  ;;  %v7887_v24 = vpop.f32.mrf.mxu1  ;;  %7988 = vmatmul.mubr.msk.bf16.gmra.mxu1 %vm3515_vm4, %v3477_v38 }
 0x2e0   :  { %v2787_v17 = vadd.f32 %v9916_v23, %v2786_v0  ;;  %v10003_v36 = vadd.f32 %v7887_v24, %v9833_v29  ;;  %v3289_v50 = vmax.f32 %v2795_v15, 0.0 }
 0x2e1   :  { %v7657_v43 = vpop.f32.mrf.mxu0  ;;  %v4768_v28 = vpop.f32.mrf.mxu1 }
 0x2e2   :  { %v3287_v27 = vmax.f32 %v2787_v17, 0.0  ;;  %v10006_v56 = vadd.f32 %v4768_v28, %v9836_v59  ;;  %v3479_v41 = vpack.c.bf16 %v3289_v50, %v3288_v18  ;;  %v2808_v59 = vadd.f32 %v9916_v23, %v7657_v43 }
 0x2e3   :  { %v2799_v42 = vpop.f32.mrf.mxu0  ;;  %v7888_v9 = vpop.f32.mrf.mxu1 }
 0x2e4   :  { %v3478_v2 = vpack.c.bf16 %v3287_v27, %v3286_v3  ;;  %v10009_v16 = vadd.f32 %v7888_v9, %v9839_v45  ;;  %v2800_v29 = vadd.f32 %v9916_v23, %v2799_v42  ;;  %v3292_v17 = vmax.f32 %v2808_v59, 0.0 }
 0x2e5   :  { %v7658_v7 = vpop.f32.mrf.mxu0  ;;  %v4771_v4 = vpop.f32.mrf.mxu1 }
 0x2e6   :  { %v2811_v12 = vadd.f32 %v9916_v23, %v7658_v7  ;;  %v10014_v49 = vadd.f32 %v4771_v4, %v9844_v6  ;;  %7991 = vmatprep.mubr.msk.bf16.mxu1 %vm3515_vm4, %v3478_v2  ;;  %v3290_v0 = vmax.f32 %v2800_v29, 0.0 }
 0x2e7   :  { %v2802_v38 = vpop.f32.mrf.mxu0  ;;  %v7891_v19 = vpop.f32.mrf.mxu1  ;;  %7992 = vmatmul.mubr.msk.bf16.gmra.mxu1 %vm3515_vm4, %v3479_v41 }
 0x2e8   :  { %v2803_v45 = vadd.f32 %v9916_v23, %v2802_v38  ;;  %v10021_v10 = vadd.f32 %v7891_v19, %v9851_v61  ;;  %v3293_v33 = vmax.f32 %v2811_v12, 0.0 }
 0x2e9   :  { %v7661_v15 = vpop.f32.mrf.mxu0  ;;  %v4784_v44 = vpop.f32.mrf.mxu1 }
 0x2ea   :  { %v3291_v24 = vmax.f32 %v2803_v45, 0.0  ;;  %v10024_v6 = vadd.f32 %v4784_v44, %v9854_v47  ;;  %v3481_v27 = vpack.c.bf16 %v3293_v33, %v3292_v17  ;;  %v2824_v47 = vadd.f32 %v9916_v23, %v7661_v15 }
 0x2eb   :  { %v2815_v50 = vpop.f32.mrf.mxu0  ;;  %v7892_v43 = vpop.f32.mrf.mxu1 }
 0x2ec   :  { %v3480_v28 = vpack.c.bf16 %v3291_v24, %v3290_v0  ;;  %v10027_v3 = vadd.f32 %v7892_v43, %v9857_v20  ;;  %v2816_v61 = vadd.f32 %v9916_v23, %v2815_v50  ;;  %v3296_v45 = vmax.f32 %v2824_v47, 0.0 }
 0x2ed   :  { %v7662_v18 = vpop.f32.mrf.mxu0  ;;  %v4787_v42 = vpop.f32.mrf.mxu1 }
 0x2ee   :  { %v2827_v9 = vadd.f32 %v9916_v23, %v7662_v18  ;;  %v10032_v2 = vadd.f32 %v4787_v42, %v9862_v60  ;;  %7995 = vmatprep.mubr.msk.bf16.mxu1 %vm3515_vm4, %v3480_v28  ;;  %v3294_v38 = vmax.f32 %v2816_v61, 0.0 }
 0x2ef   :  { %v2818_v41 = vpop.f32.mrf.mxu0  ;;  %v7895_v7 = vpop.f32.mrf.mxu1  ;;  %7996 = vmatmul.mubr.msk.bf16.gmra.mxu1 %vm3515_vm4, %v3481_v27 }
 0x2f0   :  { %v2819_v20 = vadd.f32 %v9916_v23, %v2818_v41  ;;  %v10039_v4 = vadd.f32 %v7895_v7, %v9869_v48  ;;  %v3297_v29 = vmax.f32 %v2827_v9, 0.0 }
 0x2f1   :  { %v7665_v12 = vpop.f32.mrf.mxu0  ;;  %v4800_v59 = vpop.f32.mrf.mxu1 }
 0x2f2   :  { %v3295_v19 = vmax.f32 %v2819_v20, 0.0  ;;  %v10042_v60 = vadd.f32 %v4800_v59, %v9872_v37  ;;  %v3483_v24 = vpack.c.bf16 %v3297_v29, %v3296_v45  ;;  %v2840_v37 = vadd.f32 %v9916_v23, %v7665_v12 }
 0x2f3   :  { %v2831_v33 = vpop.f32.mrf.mxu0  ;;  %v7896_v15 = vpop.f32.mrf.mxu1 }
 0x2f4   :  { %v3482_v44 = vpack.c.bf16 %v3295_v19, %v3294_v38  ;;  %v10045_v0 = vadd.f32 %v7896_v15, %v9875_v58  ;;  %v2832_v48 = vadd.f32 %v9916_v23, %v2831_v33  ;;  %v3300_v20 = vmax.f32 %v2840_v37, 0.0 }
 0x2f5   :  { %v7666_v17 = vpop.f32.mrf.mxu0  ;;  %v4803_v50 = vpop.f32.mrf.mxu1 }
 0x2f6   :  { %v2843_v43 = vadd.f32 %v9916_v23, %v7666_v17  ;;  %v10050_v28 = vadd.f32 %v4803_v50, %v9880_v52  ;;  %7999 = vmatprep.mubr.msk.bf16.mxu1 %vm3515_vm4, %v3482_v44  ;;  %v3298_v41 = vmax.f32 %v2832_v48, 0.0 }
 0x2f7   :  { %v2834_v27 = vpop.f32.mrf.mxu0  ;;  %v7899_v18 = vpop.f32.mrf.mxu1  ;;  %8000 = vmatmul.mubr.msk.bf16.gmra.mxu1 %vm3515_vm4, %v3483_v24 }
 0x2f8   :  { %v2835_v58 = vadd.f32 %v9916_v23, %v2834_v27  ;;  %v10057_v42 = vadd.f32 %v7899_v18, %v9887_v11  ;;  %v3301_v61 = vmax.f32 %v2843_v43, 0.0 }
 0x2f9   :  { %v7669_v9 = vpop.f32.mrf.mxu0  ;;  %v4816_v47 = vpop.f32.mrf.mxu1 }
 0x2fa   :  { %v3299_v7 = vmax.f32 %v2835_v58, 0.0  ;;  %v10060_v52 = vadd.f32 %v4816_v47, %v9890_v13  ;;  %v3485_v19 = vpack.c.bf16 %v3301_v61, %v3300_v20  ;;  %v2856_v13 = vadd.f32 %v9916_v23, %v7669_v9 }
 0x2fb   :  { %v2847_v29 = vpop.f32.mrf.mxu0  ;;  %v7900_v12 = vpop.f32.mrf.mxu1 }
 0x2fc   :  { %v3484_v59 = vpack.c.bf16 %v3299_v7, %v3298_v41  ;;  %v10063_v38 = vadd.f32 %v7900_v12, %v9893_v5  ;;  %v2848_v11 = vadd.f32 %v9916_v23, %v2847_v29  ;;  %v3304_v58 = vmax.f32 %v2856_v13, 0.0 }
 0x2fd   :  { %v7670_v45 = vpop.f32.mrf.mxu0  ;;  %v4819_v33 = vpop.f32.mrf.mxu1 }
 0x2fe   :  { %v2859_v15 = vadd.f32 %v9916_v23, %v7670_v45  ;;  %v10068_v44 = vadd.f32 %v4819_v33, %v9898_v63  ;;  %8003 = vmatprep.mubr.msk.bf16.mxu1 %vm3515_vm4, %v3484_v59  ;;  %v3302_v27 = vmax.f32 %v2848_v11, 0.0 }
 0x2ff   :  { %v2850_v24 = vpop.f32.mrf.mxu0  ;;  %v7905_v17 = vpop.f32.mrf.mxu1  ;;  %8004 = vmatmul.mubr.msk.bf16.gmra.mxu1 %vm3515_vm4, %v3485_v19 }
 0x300   :  { %v2851_v5 = vadd.f32 %v9916_v23, %v2850_v24  ;;  %v10075_v50 = vadd.f32 %v7905_v17, %v9905_v8  ;;  %v3305_v48 = vmax.f32 %v2859_v15, 0.0 }
 0x301   :  { %v7673_v43 = vpop.f32.mrf.mxu0  ;;  %v4958_v37 = vpop.f32.mrf.mxu1 }
 0x302   :  { %v3303_v18 = vmax.f32 %v2851_v5, 0.0  ;;  %v10078_v63 = vadd.f32 %v4958_v37, %v9908_v51  ;;  %v3487_v7 = vpack.c.bf16 %v3305_v48, %v3304_v58  ;;  %v2872_v51 = vadd.f32 %v9916_v23, %v7673_v43 }
 0x303   :  { %v2863_v61 = vpop.f32.mrf.mxu0  ;;  %v7906_v9 = vpop.f32.mrf.mxu1 }
 0x304   :  { %v3486_v47 = vpack.c.bf16 %v3303_v18, %v3302_v27  ;;  %v10081_v41 = vadd.f32 %v7906_v9, %v9911_v14  ;;  %v2864_v8 = vadd.f32 %v9916_v23, %v2863_v61  ;;  %v3308_v5 = vmax.f32 %v2872_v51, 0.0 }
 0x305   :  { %v7674_v20 = vpop.f32.mrf.mxu0  ;;  %v4961_v29 = vpop.f32.mrf.mxu1 }
 0x306   :  { %v2875_v12 = vadd.f32 %v9916_v23, %v7674_v20  ;;  %v10086_v59 = vadd.f32 %v4961_v29, %v9921_v46  ;;  %8007 = vmatprep.mubr.msk.bf16.mxu1 %vm3515_vm4, %v3486_v47  ;;  %v3306_v24 = vmax.f32 %v2864_v8, 0.0 }
 0x307   :  { %v2866_v19 = vpop.f32.mrf.mxu0  ;;  %v7909_v45 = vpop.f32.mrf.mxu1  ;;  %8008 = vmatmul.mubr.msk.bf16.gmra.mxu1 %vm3515_vm4, %v3487_v7 }
 0x308   :  { %v2867_v14 = vadd.f32 %v9916_v23, %v2866_v19  ;;  %v10093_v33 = vadd.f32 %v7909_v45, %v9928_v1  ;;  %v3309_v11 = vmax.f32 %v2875_v12, 0.0 }
 0x309   :  { %v7677_v15 = vpop.f32.mrf.mxu0  ;;  %v4974_v13 = vpop.f32.mrf.mxu1 }
 0x30a   :  { %v3307_v17 = vmax.f32 %v2867_v14, 0.0  ;;  %v10096_v46 = vadd.f32 %v4974_v13, %v9931_v62  ;;  %v3489_v18 = vpack.c.bf16 %v3309_v11, %v3308_v5  ;;  %v2888_v62 = vadd.f32 %v9916_v23, %v7677_v15 }
 0x30b   :  { %v2879_v48 = vpop.f32.mrf.mxu0  ;;  %v7910_v43 = vpop.f32.mrf.mxu1 }
 0x30c   :  { %v3488_v37 = vpack.c.bf16 %v3307_v17, %v3306_v24  ;;  %v10099_v27 = vadd.f32 %v7910_v43, %v9934_v35  ;;  %v2880_v1 = vadd.f32 %v9916_v23, %v2879_v48  ;;  %v3312_v14 = vmax.f32 %v2888_v62, 0.0 }
 0x30d   :  { %v7678_v58 = vpop.f32.mrf.mxu0  ;;  %v4977_v61 = vpop.f32.mrf.mxu1 }
 0x30e   :  { %v2891_v9 = vadd.f32 %v9916_v23, %v7678_v58  ;;  %v10104_v47 = vadd.f32 %v4977_v61, %v9939_v26  ;;  %8011 = vmatprep.mubr.msk.bf16.mxu1 %vm3515_vm4, %v3488_v37  ;;  %v3310_v19 = vmax.f32 %v2880_v1, 0.0 }
 0x30f   :  { %v2882_v7 = vpop.f32.mrf.mxu0  ;;  %v7913_v20 = vpop.f32.mrf.mxu1  ;;  %8012 = vmatmul.mubr.msk.bf16.gmra.mxu1 %vm3515_vm4, %v3489_v18 }
 0x310   :  { %v2883_v35 = vadd.f32 %v9916_v23, %v2882_v7  ;;  %v10111_v29 = vadd.f32 %v7913_v20, %v9946_v31  ;;  %v3313_v8 = vmax.f32 %v2891_v9, 0.0 }
 0x311   :  { %v7681_v12 = vpop.f32.mrf.mxu0  ;;  %v4990_v51 = vpop.f32.mrf.mxu1 }
 0x312   :  { %v3311_v45 = vmax.f32 %v2883_v35, 0.0  ;;  %v10114_v26 = vadd.f32 %v4990_v51, %v9949_v25  ;;  %v3491_v17 = vpack.c.bf16 %v3313_v8, %v3312_v14  ;;  %v2904_v25 = vadd.f32 %v9916_v23, %v7681_v12 }
 0x313   :  { %v2895_v11 = vpop.f32.mrf.mxu0  ;;  %v7914_v15 = vpop.f32.mrf.mxu1 }
 0x314   :  { %v3490_v13 = vpack.c.bf16 %v3311_v45, %v3310_v19  ;;  %v10117_v24 = vadd.f32 %v7914_v15, %v9952_v53  ;;  %v2896_v31 = vadd.f32 %v9916_v23, %v2895_v11  ;;  %v3316_v35 = vmax.f32 %v2904_v25, 0.0 }
 0x315   :  { %v7682_v5 = vpop.f32.mrf.mxu0  ;;  %v4993_v48 = vpop.f32.mrf.mxu1 }
 0x316   :  { %v2907_v43 = vadd.f32 %v9916_v23, %v7682_v5  ;;  %v10122_v37 = vadd.f32 %v4993_v48, %v9959_v39  ;;  %8017 = vmatprep.mubr.msk.bf16.mxu1 %vm3515_vm4, %v3490_v13  ;;  %v3314_v7 = vmax.f32 %v2896_v31, 0.0 }
 0x317   :  { %v2898_v18 = vpop.f32.mrf.mxu0  ;;  %v7917_v58 = vpop.f32.mrf.mxu1  ;;  %8018 = vmatmul.mubr.msk.bf16.vlgmr.msra.gmra.mxu1 %vm3515_vm4, %v3491_v17 }
 0x318   :  { %v2899_v53 = vadd.f32 %v9916_v23, %v2898_v18  ;;  %v10129_v61 = vadd.f32 %v7917_v58, %v9966_v40  ;;  %v3317_v1 = vmax.f32 %v2907_v43, 0.0 }
 0x319   :  { %v7685_v9 = vpop.f32.mrf.mxu0  ;;  %v5006_v62 = vpop.f32.mrf.mxu1 }
 0x31a   :  { %v3315_v20 = vmax.f32 %v2899_v53, 0.0  ;;  %v10132_v39 = vadd.f32 %v5006_v62, %v9970_v32  ;;  %v3493_v45 = vpack.c.bf16 %v3317_v1, %v3316_v35  ;;  %v2920_v32 = vadd.f32 %v9916_v23, %v7685_v9 }
 0x31b   :  { %v2911_v8 = vpop.f32.mrf.mxu0  ;;  %v7918_v12 = vpop.f32.mrf.mxu1 }
 0x31c   :  { %v3492_v51 = vpack.c.bf16 %v3315_v20, %v3314_v7  ;;  %v10135_v19 = vadd.f32 %v7918_v12, %v9973_v30  ;;  %v2912_v40 = vadd.f32 %v9916_v23, %v2911_v8  ;;  %v3320_v53 = vmax.f32 %v2920_v32, 0.0 }
 0x31d   :  { %v7686_v14 = vpop.f32.mrf.mxu0  ;;  %v5009_v11 = vpop.f32.mrf.mxu1 }
 0x31e   :  { %v2923_v15 = vadd.f32 %v9916_v23, %v7686_v14  ;;  %v10140_v13 = vadd.f32 %v5009_v11, %v9978_v54  ;;  %8021 = vmatprep.mubr.msk.bf16.mxu1 %vm3515_vm4, %v3492_v51  ;;  %v3318_v18 = vmax.f32 %v2912_v40, 0.0 }
 0x31f   :  { %v2914_v17 = vpop.f32.mrf.mxu0  ;;  %v7921_v5 = vpop.f32.mrf.mxu1  ;;  %8022 = vmatmul.mubr.msk.bf16.gmra.mxu1 %vm3515_vm4, %v3493_v45 }
 0x320   :  { %v2915_v30 = vadd.f32 %v9916_v23, %v2914_v17  ;;  %v10147_v48 = vadd.f32 %v7921_v5, %v9985_v34  ;;  %v3321_v31 = vmax.f32 %v2923_v15, 0.0 }
 0x321   :  { %v7689_v43 = vpop.f32.mrf.mxu0  ;;  %v5022_v25 = vpop.f32.mrf.mxu1 }
 0x322   :  { %v3319_v58 = vmax.f32 %v2915_v30, 0.0  ;;  %v10150_v54 = vadd.f32 %v5022_v25, %v9988_v21  ;;  %v3495_v20 = vpack.c.bf16 %v3321_v31, %v3320_v53  ;;  %v2936_v21 = vadd.f32 %v9916_v23, %v7689_v43 }
 0x323   :  { %v2927_v1 = vpop.f32.mrf.mxu0  ;;  %v7922_v9 = vpop.f32.mrf.mxu1 }
 0x324   :  { %v3494_v62 = vpack.c.bf16 %v3319_v58, %v3318_v18  ;;  %v10153_v7 = vadd.f32 %v7922_v9, %v9991_v55  ;;  %v2928_v34 = vadd.f32 %v9916_v23, %v2927_v1  ;;  %v3324_v30 = vmax.f32 %v2936_v21, 0.0 }
 0x325   :  { %v7690_v35 = vpop.f32.mrf.mxu0  ;;  %v5025_v8 = vpop.f32.mrf.mxu1 }
 0x326   :  { %v2939_v12 = vadd.f32 %v9916_v23, %v7690_v35  ;;  %v10158_v51 = vadd.f32 %v5025_v8, %v9996_v57  ;;  %8025 = vmatprep.mubr.msk.bf16.mxu1 %vm3515_vm4, %v3494_v62  ;;  %v3322_v17 = vmax.f32 %v2928_v34, 0.0 }
 0x327   :  { %v2930_v45 = vpop.f32.mrf.mxu0  ;;  %v7925_v14 = vpop.f32.mrf.mxu1  ;;  %8026 = vmatmul.mubr.msk.bf16.gmra.mxu1 %vm3515_vm4, %v3495_v20 }
 0x328   :  { %v2931_v55 = vadd.f32 %v9916_v23, %v2930_v45  ;;  %v10165_v11 = vadd.f32 %v7925_v14, %v10003_v36  ;;  %v3325_v40 = vmax.f32 %v2939_v12, 0.0 }
 0x329   :  { %v7693_v15 = vpop.f32.mrf.mxu0  ;;  %v5038_v32 = vpop.f32.mrf.mxu1 }
 0x32a   :  { %v3323_v5 = vmax.f32 %v2931_v55, 0.0  ;;  %v10168_v57 = vadd.f32 %v5038_v32, %v10006_v56  ;;  %v3497_v58 = vpack.c.bf16 %v3325_v40, %v3324_v30  ;;  %v2952_v56 = vadd.f32 %v9916_v23, %v7693_v15 }
 0x32b   :  { %v2943_v31 = vpop.f32.mrf.mxu0  ;;  %v7926_v43 = vpop.f32.mrf.mxu1 }
 0x32c   :  { %v3496_v25 = vpack.c.bf16 %v3323_v5, %v3322_v17  ;;  %v10171_v18 = vadd.f32 %v7926_v43, %v10009_v16  ;;  %v2944_v36 = vadd.f32 %v9916_v23, %v2943_v31  ;;  %v3328_v55 = vmax.f32 %v2952_v56, 0.0 }
 0x32d   :  { %v7694_v53 = vpop.f32.mrf.mxu0  ;;  %v5041_v1 = vpop.f32.mrf.mxu1 }
 0x32e   :  { %v2955_v9 = vadd.f32 %v9916_v23, %v7694_v53  ;;  %v10176_v62 = vadd.f32 %v5041_v1, %v10014_v49  ;;  %8029 = vmatprep.mubr.msk.bf16.mxu1 %vm3515_vm4, %v3496_v25  ;;  %v3326_v45 = vmax.f32 %v2944_v36, 0.0 }
 0x32f   :  { %v2946_v20 = vpop.f32.mrf.mxu0  ;;  %v7929_v35 = vpop.f32.mrf.mxu1  ;;  %8030 = vmatmul.mubr.msk.bf16.gmra.mxu1 %vm3515_vm4, %v3497_v58 }
 0x330   :  { %v2947_v16 = vadd.f32 %v9916_v23, %v2946_v20  ;;  %v10183_v8 = vadd.f32 %v7929_v35, %v10021_v10  ;;  %v3329_v34 = vmax.f32 %v2955_v9, 0.0 }
 0x331   :  { %v7697_v12 = vpop.f32.mrf.mxu0  ;;  %v5054_v21 = vpop.f32.mrf.mxu1 }
 0x332   :  { %v3327_v14 = vmax.f32 %v2947_v16, 0.0  ;;  %v10186_v49 = vadd.f32 %v5054_v21, %v10024_v6  ;;  %v3499_v5 = vpack.c.bf16 %v3329_v34, %v3328_v55  ;;  %v2968_v6 = vadd.f32 %v9916_v23, %v7697_v12 }
 0x333   :  { %v2959_v40 = vpop.f32.mrf.mxu0  ;;  %v7930_v15 = vpop.f32.mrf.mxu1 }
 0x334   :  { %v3498_v32 = vpack.c.bf16 %v3327_v14, %v3326_v45  ;;  %v10189_v17 = vadd.f32 %v7930_v15, %v10027_v3  ;;  %v2960_v10 = vadd.f32 %v9916_v23, %v2959_v40  ;;  %v3332_v16 = vmax.f32 %v2968_v6, 0.0 }
 0x335   :  { %v7698_v30 = vpop.f32.mrf.mxu0  ;;  %v5057_v31 = vpop.f32.mrf.mxu1 }
 0x336   :  { %v2971_v43 = vadd.f32 %v9916_v23, %v7698_v30  ;;  %v10194_v25 = vadd.f32 %v5057_v31, %v10032_v2  ;;  %8033 = vmatprep.mubr.msk.bf16.mxu1 %vm3515_vm4, %v3498_v32  ;;  %v3330_v20 = vmax.f32 %v2960_v10, 0.0 }
 0x337   :  { %v2962_v58 = vpop.f32.mrf.mxu0  ;;  %v7933_v53 = vpop.f32.mrf.mxu1  ;;  %8034 = vmatmul.mubr.msk.bf16.gmra.mxu1 %vm3515_vm4, %v3499_v5 }
 0x338   :  { %v2963_v3 = vadd.f32 %v9916_v23, %v2962_v58  ;;  %v10201_v1 = vadd.f32 %v7933_v53, %v10039_v4  ;;  %v3333_v36 = vmax.f32 %v2971_v43, 0.0 }
 0x339   :  { %v7701_v9 = vpop.f32.mrf.mxu0  ;;  %v5070_v56 = vpop.f32.mrf.mxu1 }
 0x33a   :  { %v3331_v35 = vmax.f32 %v2963_v3, 0.0  ;;  %v10204_v2 = vadd.f32 %v5070_v56, %v10042_v60  ;;  %v3501_v14 = vpack.c.bf16 %v3333_v36, %v3332_v16  ;;  %v2984_v60 = vadd.f32 %v9916_v23, %v7701_v9 }
 0x33b   :  { %v2975_v34 = vpop.f32.mrf.mxu0  ;;  %v7934_v12 = vpop.f32.mrf.mxu1 }
 0x33c   :  { %v3500_v21 = vpack.c.bf16 %v3331_v35, %v3330_v20  ;;  %v10207_v45 = vadd.f32 %v7934_v12, %v10045_v0  ;;  %v2976_v4 = vadd.f32 %v9916_v23, %v2975_v34  ;;  %v3336_v3 = vmax.f32 %v2984_v60, 0.0 }
 0x33d   :  { %v7702_v55 = vpop.f32.mrf.mxu0  ;;  %v5073_v40 = vpop.f32.mrf.mxu1 }
 0x33e   :  { %v2987_v15 = vadd.f32 %v9916_v23, %v7702_v55  ;;  %v10212_v32 = vadd.f32 %v5073_v40, %v10050_v28  ;;  %8037 = vmatprep.mubr.msk.bf16.mxu1 %vm3515_vm4, %v3500_v21  ;;  %v3334_v58 = vmax.f32 %v2976_v4, 0.0 }
 0x33f   :  { %v2978_v5 = vpop.f32.mrf.mxu0  ;;  %v7937_v30 = vpop.f32.mrf.mxu1  ;;  %8038 = vmatmul.mubr.msk.bf16.gmra.mxu1 %vm3515_vm4, %v3501_v14 }
 0x340   :  { %v2979_v0 = vadd.f32 %v9916_v23, %v2978_v5  ;;  %v10219_v31 = vadd.f32 %v7937_v30, %v10057_v42  ;;  %v3337_v10 = vmax.f32 %v2987_v15, 0.0 }
 0x341   :  { %v7705_v43 = vpop.f32.mrf.mxu0  ;;  %v5086_v6 = vpop.f32.mrf.mxu1 }
 0x342   :  { %v3335_v53 = vmax.f32 %v2979_v0, 0.0  ;;  %v10222_v28 = vadd.f32 %v5086_v6, %v10060_v52  ;;  %v3503_v35 = vpack.c.bf16 %v3337_v10, %v3336_v3  ;;  %v3000_v52 = vadd.f32 %v9916_v23, %v7705_v43 }
 0x343   :  { %v2991_v36 = vpop.f32.mrf.mxu0  ;;  %v7938_v9 = vpop.f32.mrf.mxu1 }
 0x344   :  { %v3502_v56 = vpack.c.bf16 %v3335_v53, %v3334_v58  ;;  %v10225_v20 = vadd.f32 %v7938_v9, %v10063_v38  ;;  %v2992_v42 = vadd.f32 %v9916_v23, %v2991_v36  ;;  %v3340_v0 = vmax.f32 %v3000_v52, 0.0 }
 0x345   :  { %v7706_v16 = vpop.f32.mrf.mxu0  ;;  %v10227_v34 = vpop.f32.mrf.mxu1 }
 0x346   :  { %v3003_v12 = vadd.f32 %v9916_v23, %v7706_v16  ;;  %8041 = vmatprep.mubr.msk.bf16.mxu1 %vm3515_vm4, %v3502_v56  ;;  %v3338_v60 = vmax.f32 %v2992_v42, 0.0 }
 0x347   :  { %v2994_v21 = vpop.f32.mrf.mxu0  ;;  %v7943_v14 = vpop.f32.mrf.mxu1  ;;  %8042 = vmatmul.mubr.msk.bf16.gmra.mxu1 %vm3515_vm4, %v3503_v35 }
 0x348   :  { %v2995_v55 = vadd.f32 %v9916_v23, %v2994_v21  ;;  %v10236_v38 = vadd.f32 %v7943_v14, %v10075_v50  ;;  %v3341_v40 = vmax.f32 %v3003_v12, 0.0 }
 0x349   :  { %v7709_v4 = vpop.f32.mrf.mxu0  ;;  %v5228_v15 = vpop.f32.mrf.mxu1 }
 0x34a   :  { %v3339_v5 = vmax.f32 %v2995_v55, 0.0  ;;  %v10239_v30 = vadd.f32 %v5228_v15, %v10078_v63  ;;  %v3016_v10 = vadd.f32 %v9916_v23, %v7709_v4  ;;  %v3505_v50 = vpack.c.bf16 %v3341_v40, %v3340_v0 }
 0x34b   :  { %v3007_v43 = vpop.f32.mrf.mxu0  ;;  %v7944_v6 = vpop.f32.mrf.mxu1 }
 0x34c   :  { %v3504_v58 = vpack.c.bf16 %v3339_v5, %v3338_v60  ;;  %v3008_v53 = vadd.f32 %v9916_v23, %v3007_v43  ;;  %v10244_v3 = vadd.f32 %v7944_v6, %v10081_v41  ;;  %v3344_v63 = vmax.f32 %v3016_v10, 0.0 }
 0x34d   :  { %v7710_v36 = vpop.f32.mrf.mxu0  ;;  %v10246_v9 = vpop.f32.mrf.mxu1 }
 0x34e   :  { %v3019_v56 = vadd.f32 %v9916_v23, %v7710_v36  ;;  %8045 = vmatprep.mubr.msk.bf16.mxu1 %vm3515_vm4, %v3504_v58  ;;  %v3342_v42 = vmax.f32 %v3008_v53, 0.0 }
 0x34f   :  { %v3010_v35 = vpop.f32.mrf.mxu0  ;;  %v7947_v16 = vpop.f32.mrf.mxu1  ;;  %8046 = vmatmul.mubr.msk.bf16.gmra.mxu1 %vm3515_vm4, %v3505_v50 }
 0x350   :  { %v3345_v12 = vmax.f32 %v3019_v56, 0.0  ;;  %v3011_v52 = vadd.f32 %v9916_v23, %v3010_v35  ;;  %v10253_v41 = vadd.f32 %v7947_v16, %v10093_v33  ;;  %v369_v23 = vld [vmem:[%s10604_s3 + $0x4] sm:$0xf] }
 0x351   :  { %v5244_v21 = vpop.f32.mrf.mxu1 }
 0x352   :  { %v3343_v14 = vmax.f32 %v3011_v52, 0.0  ;;  %v10256_v55 = vadd.f32 %v5244_v21, %v10096_v46  ;;  %v3507_v40 = vpack.c.bf16 %v3345_v12, %v3344_v63  ;;  %v6071_v46 = vsel %vm1686_vm0, %v369_v23, 0 }
 0x353   :  { %v7948_v4 = vpop.f32.mrf.mxu1  ;;  %8060 = vmatpush3.bf16.msra.mxu1 %v6071_v46 }
 0x354   :  { %v3506_v15 = vpack.c.bf16 %v3343_v14, %v3342_v42  ;;  %v10259_v60 = vadd.f32 %v7948_v4, %v10099_v27  ;;  %8071 = vmatprep.subr.bf16.mxu1 %v8297_v22 }
 0x355   :  { %v10261_v5 = vpop.f32.mrf.mxu1 }
 0x356   :  { %8049 = vmatprep.mubr.msk.bf16.mxu1 %vm3515_vm4, %v3506_v15 }
 0x357   :  { %v7951_v33 = vpop.f32.mrf.mxu1  ;;  %8050 = vmatmul.mubr.msk.bf16.gmra.mxu1 %vm3515_vm4, %v3507_v40 }
 0x358   :  { %v10270_v0 = vadd.f32 %v7951_v33, %v10111_v29  ;;  %8061 = vmatprep.mubr.msk.bf16.mxu1 %vm8298_vm5, %v8297_v22 }
 0x359   :  { %v5260_v10 = vpop.f32.mrf.mxu1 }
 0x35a   :  { %v10274_v27 = vadd.f32 %v5260_v10, %v10114_v26 }
 0x35b   :  { %v7952_v43 = vpop.f32.mrf.mxu1 }
 0x35c   :  { %v10277_v6 = vadd.f32 %v7952_v43, %v10117_v24 }
 0x35d   :  { %v10279_v58 = vpop.f32.mrf.mxu1 }
 0x35f   :  { %v7955_v53 = vpop.f32.mrf.mxu1 }
 0x360   :  { %v10282_v50 = vadd.f32 %v7955_v53, %v10129_v61 }
 0x361   :  { %v5276_v36 = vpop.f32.mrf.mxu1 }
 0x362   :  { %v10285_v29 = vadd.f32 %v5276_v36, %v10132_v39 }
 0x363   :  { %v7956_v56 = vpop.f32.mrf.mxu1 }
 0x364   :  { %v10288_v63 = vadd.f32 %v7956_v56, %v10135_v19 }
 0x365   :  { %v10290_v26 = vpop.f32.mrf.mxu1 }
 0x367   :  { %v7959_v35 = vpop.f32.mrf.mxu1 }
 0x368   :  { %v10293_v24 = vadd.f32 %v7959_v35, %v10147_v48 }
 0x369   :  { %v5292_v16 = vpop.f32.mrf.mxu1 }
 0x36a   :  { %v10296_v42 = vadd.f32 %v5292_v16, %v10150_v54 }
 0x36b   :  { %v7960_v61 = vpop.f32.mrf.mxu1 }
 0x36c   :  { %v10299_v12 = vadd.f32 %v7960_v61, %v10153_v7 }
 0x36d   :  { %v5295_v39 = vpop.f32.mrf.mxu1 }
 0x36e   :  { %v10302_v52 = vadd.f32 %v5295_v39, %v10158_v51 }
 0x36f   :  { %v7963_v19 = vpop.f32.mrf.mxu1 }
 0x370   :  { %v10305_v21 = vadd.f32 %v7963_v19, %v10165_v11 }
 0x371   :  { %v5308_v14 = vpop.f32.mrf.mxu1 }
 0x372   :  { %v10308_v48 = vadd.f32 %v5308_v14, %v10168_v57 }
 0x373   :  { %v7964_v40 = vpop.f32.mrf.mxu1 }
 0x374   :  { %v10311_v54 = vadd.f32 %v7964_v40, %v10171_v18  ;;  %v5372_v40 = vadd.f32 %v10246_v9, %v10086_v59  ;;  %v5376_v9 = vadd.f32 %v10261_v5, %v10104_v47 }
 0x375   :  { %v5311_v4 = vpop.f32.mrf.mxu1 }
 0x376   :  { %v10314_v7 = vadd.f32 %v5311_v4, %v10176_v62 }
 0x377   :  { %v7967_v15 = vpop.f32.mrf.mxu1 }
 0x378   :  { %v10317_v51 = vadd.f32 %v7967_v15, %v10183_v8 }
 0x379   :  { %v5324_v23 = vpop.f32.mrf.mxu1 }
 0x37a   :  { %v10320_v11 = vadd.f32 %v5324_v23, %v10186_v49 }
 0x37b   :  { %v7968_v33 = vpop.f32.mrf.mxu1 }
 0x37c   :  { %v10323_v57 = vadd.f32 %v7968_v33, %v10189_v17 }
 0x37d   :  { %v5327_v46 = vpop.f32.mrf.mxu1 }
 0x37e   :  { %v10326_v18 = vadd.f32 %v5327_v46, %v10194_v25 }
 0x37f   :  { %v7971_v10 = vpop.f32.mrf.mxu1 }
 0x380   :  { %v10329_v62 = vadd.f32 %v7971_v10, %v10201_v1 }
 0x381   :  { %v5340_v43 = vpop.f32.mrf.mxu1 }
 0x382   :  { %v10332_v8 = vadd.f32 %v5340_v43, %v10204_v2  ;;  %v5134_v2 = vadd.f32 %v10227_v34, %v10068_v44 }
 0x383   :  { %v7972_v53 = vpop.f32.mrf.mxu1 }
 0x384   :  { %v10335_v49 = vadd.f32 %v7972_v53, %v10207_v45  ;;  %v5380_v53 = vadd.f32 %v10279_v58, %v10122_v37 }
 0x385   :  { %v5343_v36 = vpop.f32.mrf.mxu1 }
 0x386   :  { %v10338_v17 = vadd.f32 %v5343_v36, %v10212_v32 }
 0x387   :  { %v7975_v56 = vpop.f32.mrf.mxu1 }
 0x388   :  { %v10341_v25 = vadd.f32 %v7975_v56, %v10219_v31 }
 0x389   :  { %v5356_v35 = vpop.f32.mrf.mxu1 }
 0x38a   :  { %v10344_v1 = vadd.f32 %v5356_v35, %v10222_v28 }
 0x38b   :  { %v7976_v16 = vpop.f32.mrf.mxu1 }
 0x38c   :  { %v10349_v61 = vadd.f32 %v7976_v16, %v10225_v20  ;;  %v5384_v16 = vadd.f32 %v10290_v26, %v10140_v13 }
 0x38d   :  { %v5359_v45 = vpop.f32.mrf.mxu1 }
 0x38e   :  { %v10351_v39 = vadd.f32 %v5359_v45, %v5134_v2 }
 0x38f   :  { %v7981_v32 = vpop.f32.mrf.mxu1 }
 0x390   :  { %v10354_v19 = vadd.f32 %v7981_v32, %v10236_v38 }
 0x391   :  { %v5498_v31 = vpop.f32.mrf.mxu1 }
 0x392   :  { %v10357_v14 = vadd.f32 %v5498_v31, %v10239_v30 }
 0x393   :  { %v7982_v28 = vpop.f32.mrf.mxu1 }
 0x394   :  { %v10362_v44 = vadd.f32 %v7982_v28, %v10244_v3 }
 0x395   :  { %v5501_v20 = vpop.f32.mrf.mxu1 }
 0x396   :  { %v10368_v34 = vadd.f32 %v5501_v20, %v5372_v40 }
 0x397   :  { %v7985_v38 = vpop.f32.mrf.mxu1 }
 0x398   :  { %v10371_v30 = vadd.f32 %v7985_v38, %v10253_v41 }
 0x399   :  { %v5514_v4 = vpop.f32.mrf.mxu1 }
 0x39a   :  { %v10374_v59 = vadd.f32 %v5514_v4, %v10256_v55 }
 0x39b   :  { %v7986_v3 = vpop.f32.mrf.mxu1 }
 0x39c   :  { %v10379_v15 = vadd.f32 %v7986_v3, %v10259_v60 }
 0x39d   :  { %v5517_v23 = vpop.f32.mrf.mxu1 }
 0x39e   :  { %v10381_v33 = vadd.f32 %v5517_v23, %v5376_v9 }
 0x39f   :  { %v7989_v46 = vpop.f32.mrf.mxu1 }
 0x3a0   :  { %v10384_v10 = vadd.f32 %v7989_v46, %v10270_v0 }
 0x3a1   :  { %v5530_v41 = vpop.f32.mrf.mxu1 }
 0x3a2   :  { %v10387_v43 = vadd.f32 %v5530_v41, %v10274_v27 }
 0x3a3   :  { %v7990_v55 = vpop.f32.mrf.mxu1 }
 0x3a4   :  { %v10392_v47 = vadd.f32 %v7990_v55, %v10277_v6 }
 0x3a5   :  { %v5533_v60 = vpop.f32.mrf.mxu1 }
 0x3a6   :  { %v10394_v5 = vadd.f32 %v5533_v60, %v5380_v53 }
 0x3a7   :  { %v7993_v36 = vpop.f32.mrf.mxu1 }
 0x3a8   :  { %v10397_v56 = vadd.f32 %v7993_v36, %v10282_v50 }
 0x3a9   :  { %v5546_v0 = vpop.f32.mrf.mxu1 }
 0x3aa   :  { %v10400_v35 = vadd.f32 %v5546_v0, %v10285_v29 }
 0x3ab   :  { %v7994_v27 = vpop.f32.mrf.mxu1 }
 0x3ac   :  { %v10405_v37 = vadd.f32 %v7994_v27, %v10288_v63 }
 0x3ad   :  { %v5549_v6 = vpop.f32.mrf.mxu1 }
 0x3ae   :  { %v10407_v58 = vadd.f32 %v5549_v6, %v5384_v16 }
 0x3af   :  { %v7997_v2 = vpop.f32.mrf.mxu1 }
 0x3b0   :  { %v10410_v45 = vadd.f32 %v7997_v2, %v10293_v24 }
 0x3b1   :  { %v5562_v50 = vpop.f32.mrf.mxu1 }
 0x3b2   :  { %v10413_v32 = vadd.f32 %v5562_v50, %v10296_v42 }
 0x3b3   :  { %v7998_v29 = vpop.f32.mrf.mxu1 }
 0x3b4   :  { %v10416_v31 = vadd.f32 %v7998_v29, %v10299_v12 }
 0x3b5   :  { %v5565_v28 = vpop.f32.mrf.mxu1 }
 0x3b6   :  { %v10419_v13 = vadd.f32 %v5565_v28, %v10302_v52 }
 0x3b7   :  { %v8001_v63 = vpop.f32.mrf.mxu1 }
 0x3b8   :  { %v10422_v26 = vadd.f32 %v8001_v63, %v10305_v21 }
 0x3b9   :  { %v5578_v40 = vpop.f32.mrf.mxu1 }
 0x3ba   :  { %v10425_v24 = vadd.f32 %v5578_v40, %v10308_v48 }
 0x3bb   :  { %v8002_v20 = vpop.f32.mrf.mxu1 }
 0x3bc   :  { %v10428_v42 = vadd.f32 %v8002_v20, %v10311_v54 }
 0x3bd   :  { %v5581_v38 = vpop.f32.mrf.mxu1 }
 0x3be   :  { %v10431_v12 = vadd.f32 %v5581_v38, %v10314_v7 }
 0x3bf   :  { %v8005_v4 = vpop.f32.mrf.mxu1 }
 0x3c0   :  { %v10434_v52 = vadd.f32 %v8005_v4, %v10317_v51 }
 0x3c1   :  { %v5594_v3 = vpop.f32.mrf.mxu1 }
 0x3c2   :  { %v10437_v21 = vadd.f32 %v5594_v3, %v10320_v11 }
 0x3c3   :  { %v8006_v9 = vpop.f32.mrf.mxu1 }
 0x3c4   :  { %v10440_v48 = vadd.f32 %v8006_v9, %v10323_v57 }
 0x3c5   :  { %v5597_v23 = vpop.f32.mrf.mxu1 }
 0x3c6   :  { %v10443_v54 = vadd.f32 %v5597_v23, %v10326_v18 }
 0x3c7   :  { %v8009_v46 = vpop.f32.mrf.mxu1 }
 0x3c8   :  { %v10446_v7 = vadd.f32 %v8009_v46, %v10329_v62 }
 0x3c9   :  { %v5610_v41 = vpop.f32.mrf.mxu1 }
 0x3ca   :  { %v10449_v51 = vadd.f32 %v5610_v41, %v10332_v8 }
 0x3cb   :  { %v8010_v55 = vpop.f32.mrf.mxu1 }
 0x3cc   :  { %v10452_v11 = vadd.f32 %v8010_v55, %v10335_v49 }
 0x3cd   :  { %v5613_v53 = vpop.f32.mrf.mxu1 }
 0x3ce   :  { %v10455_v57 = vadd.f32 %v5613_v53, %v10338_v17 }
 0x3cf   :  { %v8013_v60 = vpop.f32.mrf.mxu1 }
 0x3d0   :  { %v10458_v18 = vadd.f32 %v8013_v60, %v10341_v25 }
 0x3d1   :  { %v5626_v36 = vpop.f32.mrf.mxu1 }
 0x3d2   :  { %v10461_v62 = vadd.f32 %v5626_v36, %v10344_v1 }
 0x3d3   :  { %v8014_v0 = vpop.f32.mrf.mxu1 }
 0x3d4   :  { %v10464_v8 = vadd.f32 %v8014_v0, %v10349_v61 }
 0x3d5   :  { %v5629_v27 = vpop.f32.mrf.mxu1 }
 0x3d6   :  { %v10467_v49 = vadd.f32 %v5629_v27, %v10351_v39 }
 0x3d7   :  { %v8019_v16 = vpop.f32.mrf.mxu1 }
 0x3d8   :  { %v5913_v39 = vadd.f32 %v8019_v16, %v10354_v19 }
 0x3d9   :  { %v5768_v6 = vpop.f32.mrf.mxu1 }
 0x3da   :  { %v5949_v55 = vmax.f32 %v5913_v39, 0.0 }
 0x3db   :  { %v8020_v17 = vpop.f32.mrf.mxu1 }
 0x3dc   :  { %v5914_v19 = vadd.f32 %v8020_v17, %v10362_v44 }
 0x3dd   :  { %v5771_v2 = vpop.f32.mrf.mxu1 }
 0x3de   :  { %v5912_v40 = vadd.f32 %v5771_v2, %v10368_v34 }
 0x3df   :  { %v8023_v50 = vpop.f32.mrf.mxu1 }
 0x3e0   :  { %v5917_v25 = vadd.f32 %v8023_v50, %v10371_v30  ;;  %v5948_v4 = vmax.f32 %v5912_v40, 0.0  ;;  %v5911_v30 = vadd.f32 %v5768_v6, %v10357_v14  ;;  %v5950_v50 = vmax.f32 %v5914_v19, 0.0 }
 0x3e1   :  { %v5784_v29 = vpop.f32.mrf.mxu1 }
 0x3e2   :  { %v5947_v36 = vmax.f32 %v5911_v30, 0.0  ;;  %v5953_v40 = vmax.f32 %v5917_v25, 0.0 }
 0x3e3   :  { %v8024_v28 = vpop.f32.mrf.mxu1 }
 0x3e4   :  { %v5918_v1 = vadd.f32 %v8024_v28, %v10379_v15  ;;  %v5915_v28 = vadd.f32 %v5784_v29, %v10374_v59 }
 0x3e5   :  { %v5787_v63 = vpop.f32.mrf.mxu1 }
 0x3e6   :  { %v5916_v34 = vadd.f32 %v5787_v63, %v10381_v33  ;;  %v5951_v39 = vmax.f32 %v5915_v28, 0.0  ;;  %v5954_v30 = vmax.f32 %v5918_v1, 0.0  ;;  %v370_v28 = vld [vmem:[%s10604_s3 + $0x8] sm:$0xf] }
 0x3e7   :  { %v8027_v61 = vpop.f32.mrf.mxu1 }
 0x3e8   :  { %v5921_v20 = vadd.f32 %v8027_v61, %v10384_v10  ;;  %v5952_v16 = vmax.f32 %v5916_v34, 0.0 }
 0x3e9   :  { %v5800_v38 = vpop.f32.mrf.mxu1 }
 0x3ea   :  { %v5957_v3 = vmax.f32 %v5921_v20, 0.0  ;;  %v5919_v9 = vadd.f32 %v5800_v38, %v10387_v43 }
 0x3eb   :  { %v8028_v23 = vpop.f32.mrf.mxu1 }
 0x3ec   :  { %v10476_v46 = vmax.f32 %v5948_v4, %v5957_v3  ;;  %v5922_v15 = vadd.f32 %v8028_v23, %v10392_v47 }
 0x3ed   :  { %v5803_v41 = vpop.f32.mrf.mxu1 }
 0x3ee   :  { %v5958_v53 = vmax.f32 %v5922_v15, 0.0  ;;  %v5920_v10 = vadd.f32 %v5803_v41, %v10394_v5 }
 0x3ef   :  { %v8031_v60 = vpop.f32.mrf.mxu1 }
 0x3f0   :  { %v10482_v0 = vmax.f32 %v5949_v55, %v5958_v53  ;;  %v5956_v43 = vmax.f32 %v5920_v10, 0.0  ;;  %v5925_v14 = vadd.f32 %v8031_v60, %v10397_v56 }
 0x3f1   :  { %v5816_v27 = vpop.f32.mrf.mxu1 }
 0x3f2   :  { %v5983_v6 = vmax.f32 %v5947_v36, %v5956_v43  ;;  %v5961_v47 = vmax.f32 %v5925_v14, 0.0  ;;  %v5923_v2 = vadd.f32 %v5816_v27, %v10400_v35 }
 0x3f3   :  { %v8032_v33 = vpop.f32.mrf.mxu1 }
 0x3f4   :  { %v10487_v5 = vmax.f32 %v5952_v16, %v5961_v47  ;;  %v5959_v44 = vmax.f32 %v5923_v2, 0.0  ;;  %v5926_v17 = vadd.f32 %v8032_v33, %v10405_v37 }
 0x3f5   :  { %v5819_v63 = vpop.f32.mrf.mxu1 }
 0x3f6   :  { %v5986_v61 = vmax.f32 %v5950_v50, %v5959_v44  ;;  %v5962_v20 = vmax.f32 %v5926_v17, 0.0  ;;  %v5924_v56 = vadd.f32 %v5819_v63, %v10407_v58  ;;  %v5955_v58 = vmax.f32 %v5919_v9, 0.0 }
 0x3f7   :  { %v8035_v38 = vpop.f32.mrf.mxu1 }
 0x3f8   :  { %v10491_v4 = vmax.f32 %v5953_v40, %v5962_v20  ;;  %v5960_v35 = vmax.f32 %v5924_v56, 0.0  ;;  %v6119_v56 = vsel %vm1686_vm0, %v370_v28, 0 }
 0x3f9   :  { %v5832_v3 = vpop.f32.mrf.mxu1 }
 0x3fa   :  { %v10493_v23 = vmax.f32 %v5951_v39, %v5960_v35  ;;  %v5927_v59 = vadd.f32 %v5832_v3, %v10413_v32  ;;  %v5929_v32 = vadd.f32 %v8035_v38, %v10410_v45 }
 0x3fb   :  { %v8036_v29 = vpop.f32.mrf.mxu1 }
 0x3fc   :  { %v5963_v15 = vmax.f32 %v5927_v59, 0.0  ;;  %v5965_v16 = vmax.f32 %v5929_v32, 0.0  ;;  %v5930_v9 = vadd.f32 %v8036_v29, %v10416_v31 }
 0x3fd   :  { %v5835_v37 = vpop.f32.mrf.mxu1 }
 0x3fe   :  { %v10496_v41 = vmax.f32 %v5954_v30, %v5963_v15  ;;  %v5928_v25 = vadd.f32 %v5835_v37, %v10419_v13 }
 0x3ff   :  { %v8039_v55 = vpop.f32.mrf.mxu1 }
 0x400   :  { %v5964_v34 = vmax.f32 %v5928_v25, 0.0  ;;  %v5933_v45 = vadd.f32 %v8039_v55, %v10422_v26 }
 0x401   :  { %v5848_v53 = vpop.f32.mrf.mxu1 }
 0x402   :  { %v10499_v10 = vmax.f32 %v5955_v58, %v5964_v34  ;;  %v5931_v20 = vadd.f32 %v5848_v53, %v10425_v24  ;;  %v5969_v3 = vmax.f32 %v5933_v45, 0.0  ;;  %v371_v24 = vld [vmem:[%s10604_s3 + $0xc] sm:$0xf] }
 0x403   :  { %v8040_v19 = vpop.f32.mrf.mxu1 }
 0x405   :  { %v5851_v60 = vpop.f32.mrf.mxu1 }
 0x406   :  { %v5932_v47 = vadd.f32 %v5851_v60, %v10431_v12  ;;  %v5966_v12 = vmax.f32 %v5930_v9, 0.0 }
 0x407   :  { %v8043_v36 = vpop.f32.mrf.mxu1 }
 0x408   :  { %v5968_v17 = vmax.f32 %v5932_v47, 0.0  ;;  %v5937_v55 = vadd.f32 %v8043_v36, %v10434_v52 }
 0x409   :  { %v5864_v43 = vpop.f32.mrf.mxu1 }
 0x40a   :  { %v5935_v52 = vadd.f32 %v5864_v43, %v10437_v21 }
 0x40b   :  { %v8044_v14 = vpop.f32.mrf.mxu1 }
 0x40c   :  { %v5938_v1 = vadd.f32 %v8044_v14, %v10440_v48  ;;  %v5971_v43 = vmax.f32 %v5935_v52, 0.0 }
 0x40d   :  { %v5867_v27 = vpop.f32.mrf.mxu1 }
 0x40e   :  { %v5974_v13 = vmax.f32 %v5938_v1, 0.0  ;;  %v5936_v15 = vadd.f32 %v5867_v27, %v10443_v54 }
 0x40f   :  { %v8047_v2 = vpop.f32.mrf.mxu1 }
 0x410   :  { %v5992_v50 = vmax.f32 %v5965_v16, %v5974_v13  ;;  %v5941_v33 = vadd.f32 %v8047_v2, %v10446_v7  ;;  %v5972_v14 = vmax.f32 %v5936_v15, 0.0 }
 0x411   :  { %v5880_v44 = vpop.f32.mrf.mxu1 }
 0x412   :  { %v6001_v48 = vmax.f32 %v5983_v6, %v5992_v50  ;;  %v5977_v63 = vmax.f32 %v5941_v33, 0.0  ;;  %v5939_v40 = vadd.f32 %v5880_v44, %v10449_v51  ;;  %v5934_v51 = vadd.f32 %v8040_v19, %v10428_v42 }
 0x413   :  { %v8048_v31 = vpop.f32.mrf.mxu1  ;;  %v6167_v42 = vsel %vm1686_vm0, %v371_v24, 0 }
 0x414   :  { %v6017_v7 = vpack.c.bf16 %v6001_v48, %v6001_v48  ;;  %v5995_v38 = vmax.f32 %v5968_v17, %v5977_v63  ;;  %v5975_v39 = vmax.f32 %v5939_v40, 0.0  ;;  %v5942_v35 = vadd.f32 %v8048_v31, %v10452_v11  ;;  %v375_v40 = vld [vmem:[%s10604_s3 + $0x1c] sm:$0xf] }
 0x415   :  { %v5883_v26 = vpop.f32.mrf.mxu1  ;;  %v5967_v11 = vmax.f32 %v5931_v20, 0.0  ;;  %v5970_v32 = vmax.f32 %v5934_v51, 0.0  ;;  %v376_v20 = vld [vmem:[%s10604_s3 + $0x20] sm:$0xf] }
 0x416   :  { %v6004_v59 = vmax.f32 %v5986_v61, %v5995_v38  ;;  %v5993_v29 = vmax.f32 %v5966_v12, %v5975_v39  ;;  %v5978_v6 = vmax.f32 %v5942_v35, 0.0  ;;  %v5940_v30 = vadd.f32 %v5883_v26, %v10455_v57  ;;  %8056 = vmatmul.mubr.msk.bf16.vlgmr.msra.gmra.mxu0 %vm6018_vm6, %v6017_v7  ;;  %v8288_v39 = vld [vmem:[%s10606_s4] sm:$0xff]  }
 0x417   :  { %v8051_v37 = vpop.f32.mrf.mxu1  ;;  %8066 = vmatpush3.bf16.msra.mxu0 %v6119_v56  ;;  %8067 = vmatprep.mubr.msk.bf16.mxu0 %vm8298_vm5, %v8297_v22  ;;  %v6359_v12 = vsel %vm1686_vm0, %v375_v40, 0  ;;  %v6407_v56 = vsel %vm1686_vm0, %v376_v20, 0 }
 0x418   :  { %v6002_v61 = vmax.f32 %v10476_v46, %v5993_v29  ;;  %v5996_v25 = vmax.f32 %v5969_v3, %v5978_v6  ;;  %v5976_v57 = vmax.f32 %v5940_v30, 0.0  ;;  %8077 = vmatprep.subr.bf16.mxu0 %v8297_v22  ;;  %v5945_v58 = vadd.f32 %v8051_v37, %v10458_v18  ;;  %v372_v46 = vld [vmem:[%s10604_s3 + $0x10] sm:$0xf] }
 0x419   :  { %v5896_v34 = vpop.f32.mrf.mxu1  ;;  %v6215_v13 = vsel %vm1686_vm0, %v372_v46, 0 }
 0x41a   :  { %v6066_v54 = vpack.c.bf16 %v6002_v61, %v6002_v61  ;;  %v6005_v53 = vmax.f32 %v10493_v23, %v5996_v25  ;;  %v5994_v19 = vmax.f32 %v5967_v11, %v5976_v57  ;;  %v5943_v60 = vadd.f32 %v5896_v34, %v10461_v62  ;;  %v7018_v11 = vld [vmem:[%s10607_s7] ss:$0 sm:$0xff] }
 0x41b   :  { %v5981_v1 = vmax.f32 %v5945_v58, 0.0  ;;  %v8052_v27 = vpop.f32.mrf.mxu1  ;;  %v5973_v23 = vmax.f32 %v5937_v55, 0.0 }
 0x41c   :  { %v6003_v18 = vmax.f32 %v10482_v0, %v5994_v19  ;;  %v5979_v36 = vmax.f32 %v5943_v60, 0.0  ;;  %v5946_v16 = vadd.f32 %v8052_v27, %v10464_v8  ;;  %8062 = vmatmul.mubr.msk.bf16.vlgmr.msra.gmra.mxu1 %vm6018_vm6, %v6066_v54  ;;  %v373_v0 = vld [vmem:[%s10604_s3 + $0x14] sm:$0xf]  ;;  %v6210_v63 = vpack.c.bf16 %v6005_v53, %v6005_v53 }
 0x41d   :  { %v5999_v47 = vmax.f32 %v5972_v14, %v5981_v1  ;;  %v5899_v62 = vpop.f32.mrf.mxu1  ;;  %8072 = vmatpush3.bf16.msra.mxu1 %v6167_v42  ;;  %8073 = vmatprep.mubr.msk.bf16.mxu1 %vm8298_vm5, %v8297_v22 }
 0x41e   :  { %v6114_v9 = vpack.c.bf16 %v6003_v18, %v6003_v18  ;;  %v5997_v2 = vmax.f32 %v5970_v32, %v5979_v36  ;;  %v5982_v50 = vmax.f32 %v5946_v16, 0.0  ;;  %v5944_v21 = vadd.f32 %v5899_v62, %v10467_v49  ;;  %8083 = vmatprep.subr.bf16.mxu1 %v8297_v22 }
 0x41f   :  { %v6008_v8 = vmax.f32 %v10496_v41, %v5999_v47  ;;  %v6162_v49 = vpack.c.bf16 %v6004_v59, %v6004_v59  ;;  %v6263_v41 = vsel %vm1686_vm0, %v373_v0, 0 }
 0x420   :  { %v6006_v33 = vmax.f32 %v10487_v5, %v5997_v2  ;;  %v6000_v28 = vmax.f32 %v5973_v23, %v5982_v50  ;;  %v5980_v45 = vmax.f32 %v5944_v21, 0.0  ;;  %8068 = vmatmul.mubr.msk.bf16.vlgmr.msra.gmra.mxu0 %vm6018_vm6, %v6114_v9  ;;  %v374_v5 = vld [vmem:[%s10604_s3 + $0x18] sm:$0xf] }
 0x421   :  { %8078 = vmatpush3.bf16.msra.mxu0 %v6215_v13  ;;  %8079 = vmatprep.mubr.msk.bf16.mxu0 %vm8298_vm5, %v8297_v22  ;;  %v6354_v7 = vpack.c.bf16 %v6008_v8, %v6008_v8 }
 0x422   :  { %v6009_v44 = vmax.f32 %v10499_v10, %v6000_v28  ;;  %v5998_v17 = vmax.f32 %v5971_v43, %v5980_v45  ;;  %8089 = vmatprep.subr.bf16.mxu0 %v8297_v22  ;;  %v6311_v10 = vsel %vm1686_vm0, %v374_v5, 0 }
 0x424   :  { %v6007_v48 = vmax.f32 %v10491_v4, %v5998_v17  ;;  %8074 = vmatmul.mubr.msk.bf16.vlgmr.msra.gmra.mxu1 %vm6018_vm6, %v6162_v49  ;;  %v6258_v4 = vpack.c.bf16 %v6006_v33, %v6006_v33  ;;  %v6402_v38 = vpack.c.bf16 %v6009_v44, %v6009_v44  ;;  %v7028_v44 = vld [vmem:[%s10608_s8] ss:$0 sm:$0xff] }
 0x425   :  { %8084 = vmatpush3.bf16.msra.mxu1 %v6263_v41  ;;  %8085 = vmatprep.mubr.msk.bf16.mxu1 %vm8298_vm5, %v8297_v22 }
 0x426   :  { %8095 = vmatprep.subr.bf16.mxu1 %v8297_v22  ;;  %v6306_v31 = vpack.c.bf16 %v6007_v48, %v6007_v48 }
 0x428   :  { %8080 = vmatmul.mubr.msk.bf16.vlgmr.msra.gmra.mxu0 %vm6018_vm6, %v6210_v63 }
 0x429   :  { %8090 = vmatpush3.bf16.msra.mxu0 %v6311_v10  ;;  %8091 = vmatprep.mubr.msk.bf16.mxu0 %vm8298_vm5, %v8297_v22 }
 0x42a   :  { %8101 = vmatprep.subr.bf16.mxu0 %v8297_v22 }
 0x42c   :  { %8086 = vmatmul.mubr.msk.bf16.vlgmr.msra.gmra.mxu1 %vm6018_vm6, %v6258_v4 }
 0x42d   :  { %8096 = vmatpush3.bf16.msra.mxu1 %v6359_v12  ;;  %8097 = vmatprep.mubr.msk.bf16.mxu1 %vm8298_vm5, %v8297_v22 }
 0x42e   :  { %8107 = vmatprep.subr.bf16.mxu1 %v8297_v22 }
 0x430   :  { %8092 = vmatmul.mubr.msk.bf16.vlgmr.msra.gmra.mxu0 %vm6018_vm6, %v6306_v31 }
 0x431   :  { %8102 = vmatpush3.bf16.msra.mxu0 %v6407_v56  ;;  %8103 = vmatprep.mubr.msk.bf16.mxu0 %vm8298_vm5, %v8297_v22 }
 0x434   :  { %8098 = vmatmul.mubr.msk.bf16.vlgmr.msra.gmra.mxu1 %vm6018_vm6, %v6354_v7 }
 0x435   :  { %8109 = vmatprep.mubr.msk.bf16.mxu1 %vm8298_vm5, %v8297_v22  ;;  %8108 = vmatpush3.bf16.msra.mxu1 %v8288_v39 }
 0x438   :  { %8104 = vmatmul.mubr.msk.bf16.vlgmr.msra.gmra.mxu0 %vm6018_vm6, %v6402_v38 }
 0x4d6   :  { %v6059_v35 = vpop.f32.mrf.mxu0 }
 0x4d7   :  { %v6065_v58 = vadd.f32 %v7018_v11, %v6059_v35 }
 0x4d8   :  { %v8057_v3 = vpop.f32.mrf.mxu0 }
 0x4da   :  { %v6062_v26 = vpop.f32.mrf.mxu0 }
 0x4dc   :  { %v8058_v59 = vpop.f32.mrf.mxu0  ;;  %v6107_v29 = vpop.f32.mrf.mxu1 }
 0x4dd   :  { %v6113_v54 = vadd.f32 %v6107_v29, %v6065_v58 }
 0x4de   :  { %v8063_v6 = vpop.f32.mrf.mxu1 }
 0x4e0   :  { %v6110_v30 = vpop.f32.mrf.mxu1  ;;  %v6155_v24 = vpop.f32.mrf.mxu0 }
 0x4e1   :  { %v6161_v60 = vadd.f32 %v6155_v24, %v6113_v54 }
 0x4e2   :  { %v8064_v51 = vpop.f32.mrf.mxu1  ;;  %v8069_v15 = vpop.f32.mrf.mxu0 }
 0x4e4   :  { %v6158_v37 = vpop.f32.mrf.mxu0  ;;  %v6203_v22 = vpop.f32.mrf.mxu1 }
 0x4e5   :  { %v6209_v14 = vadd.f32 %v6203_v22, %v6161_v60 }
 0x4e6   :  { %v8070_v61 = vpop.f32.mrf.mxu0  ;;  %v8075_v25 = vpop.f32.mrf.mxu1 }
 0x4e8   :  { %v6206_v57 = vpop.f32.mrf.mxu1  ;;  %v6251_v55 = vpop.f32.mrf.mxu0 }
 0x4e9   :  { %v6257_v52 = vadd.f32 %v6251_v55, %v6209_v14 }
 0x4ea   :  { %v8076_v34 = vpop.f32.mrf.mxu1  ;;  %v8081_v42 = vpop.f32.mrf.mxu0 }
 0x4ec   :  { %v6254_v53 = vpop.f32.mrf.mxu0  ;;  %v6299_v19 = vpop.f32.mrf.mxu1 }
 0x4ed   :  { %v6305_v16 = vadd.f32 %v6299_v19, %v6257_v52 }
 0x4ee   :  { %v8082_v46 = vpop.f32.mrf.mxu0  ;;  %v8087_v32 = vpop.f32.mrf.mxu1 }
 0x4f0   :  { %v6302_v1 = vpop.f32.mrf.mxu1  ;;  %v6347_v27 = vpop.f32.mrf.mxu0 }
 0x4f1   :  { %v6353_v62 = vadd.f32 %v6347_v27, %v6305_v16 }
 0x4f2   :  { %v8088_v18 = vpop.f32.mrf.mxu1  ;;  %v8093_v36 = vpop.f32.mrf.mxu0 }
 0x4f4   :  { %v6350_v23 = vpop.f32.mrf.mxu0  ;;  %v6395_v47 = vpop.f32.mrf.mxu1 }
 0x4f5   :  { %v6401_v2 = vadd.f32 %v6395_v47, %v6353_v62 }
 0x4f6   :  { %v8094_v13 = vpop.f32.mrf.mxu0  ;;  %v8099_v9 = vpop.f32.mrf.mxu1 }
 0x4f8   :  { %v6398_v50 = vpop.f32.mrf.mxu1  ;;  %v6443_v21 = vpop.f32.mrf.mxu0 }
 0x4f9   :  { %v6449_v8 = vadd.f32 %v6443_v21, %v6401_v2 }
 0x4fa   :  { %v8100_v0 = vpop.f32.mrf.mxu1  ;;  %v8105_v43 = vpop.f32.mrf.mxu0 }
 0x4fb   :  { %v6450_v33 = vmax.f32 %v6449_v8, 0.0 }
 0x4fc   :  { %v6446_v28 = vpop.f32.mrf.mxu0 }
 0x4fd   :  { %v6451_v45 = vpack.c.bf16 %v6450_v33, %v6450_v33 }
 0x4fe   :  { %v8106_v49 = vpop.f32.mrf.mxu0 }
 0x4ff   :  { %8110 = vmatmul.mubr.msk.bf16.vlgmr.msra.gmra.mxu1 %vm6467_vm7, %v6451_v45 }
 0x5bf   :  { %v6505_v17 = vpop.f32.mrf.mxu1 }
 0x5c0   :  { %v6506_v41 = vadd.f32 %v7028_v44, %v6505_v17 }
 0x5c1   :  { %v8111_v5 = vpop.f32.mrf.mxu1 }
 0x5c2   :  { %v6512_v48 = vsel %vm6511_vm8, %v6506_v41, -inf }
 0x5c3   :  { %6513 = vmax.xlane.f32.xlu0 %v6512_v48  ;;  %v6508_v63 = vpop.f32.mrf.mxu1 }
 0x5c5   :  { %v8112_v10 = vpop.f32.mrf.mxu1 }
 0x64c   :  { %v6514_v40 = vpop.xlane.xlu0 %6513 }
 0x64d   :  { %v6515_v4 = vsub.f32 %v6506_v41, %v6514_v40 }
 0x64f   :  { %v6516_v12 = vmul.f32 1.442695, %v6515_v4 }
 0x651   :  { %8289 = vpow2.f32 %v6516_v12 }
 0x65e   :  { %v8290_v20 = vpop.eup %8289 }
 0x65f   :  { %v6518_v31 = vsel %vm6511_vm8, %v8290_v20, 0.0 }
 0x660   :  { %6519 = vadd.xlane.f32.xlu0 %v6518_v31 }
 0x6e9   :  { %v6520_v56 = vpop.xlane.xlu0 %6519 }
 0x6ea   :  { %8291 = vlog2.f32 %v6520_v56 }
 0x6f7   :  { %v8292_v7 = vpop.eup %8291 }
 0x6f8   :  { %v6522_v38 = vmul.f32 0.6931472, %v8292_v7 }
 0x6fa   :  { %v6523_v39 = vsub.f32 %v6515_v4, %v6522_v38 }
 0x6fc   :  { %6524 = vst.msk [vmem:[%s10609_s9] sm:$0xff] %vm6511_vm8, %v6523_v39 }

</bundles_post_ra>
